<compile_context>
chip_gen: v7x
topology: tpu7x:2x2x1
jax: 0.10.0
libtpu: 0.0.40
codegen_flags: <defaults>
</compile_context>

<pallas_src>
import functools

import jax
import jax.numpy as jnp
from jax import lax
from jax.experimental import pallas as pl
from jax.experimental.pallas import tpu as pltpu

KERNEL_SIZES = (5, 9, 13)
N_POOL = len(KERNEL_SIZES) + 1   # original + 3 pools
HALO = 6                         # 3 cascaded 5x5 pools -> 2 halo rows/side/pool
CPAD = 8                         # right-side -inf column pad (>=2 needed; 8 keeps stores aligned)


def _silu(x):
    return x * jax.nn.sigmoid(x)


def spp_kernel(x_ref, w1_ref, s1_ref, b1_ref, w2_ref, s2_ref, b2_ref, o_ref,
               pbuf, *, img_h, pool_dtype):
    # x_ref block: (1, 1, TH + 2*HALO, W, Cin) -- one batch element, one H tile
    # (halo rows already gathered by the wrapper).
    _, _, th12, W, Cin = x_ref.shape
    TH = th12 - 2 * HALO
    Ch = w1_ref.shape[1]
    Cout = w2_ref.shape[2]
    t = pl.program_id(1)
    neg_inf = jnp.asarray(-jnp.inf, pool_dtype)

    # ---- conv1 (1x1) + folded BN + SiLU on the haloed tile ------------------
    xm = x_ref[...].reshape(th12 * W, Cin)
    y = jnp.dot(xm, w1_ref[...], preferred_element_type=jnp.float32)
    y = _silu(y * s1_ref[...] + b1_ref[...])
    y3 = y.reshape(th12, W, Ch).astype(pool_dtype)

    # Halo rows that fall outside the image must behave as -inf in max pooling.
    row_img = lax.broadcasted_iota(jnp.int32, (th12, W, Ch), 0) + (t * TH - HALO)
    y3 = jnp.where((row_img >= 0) & (row_img < img_h), y3, neg_inf)

    # ---- -inf padded pooling scratch ----------------------------------------
    # pbuf layout: 2 -inf halo rows above/below, CPAD -inf columns on the right.
    # Re-initialized every step: with 'parallel' grid axes (megacore) a core's
    # first step need not be program_id == 0, so scratch persistence cannot be
    # relied on; the pad region is tiny vs. the tile, so this is cheap.
    pbuf[0:2] = jnp.full((2, W + CPAD, Ch), -jnp.inf, pool_dtype)
    pbuf[th12 + 2:th12 + 4] = jnp.full((2, W + CPAD, Ch), -jnp.inf, pool_dtype)
    pbuf[:, W:W + CPAD] = jnp.full((th12 + 4, CPAD, Ch), -jnp.inf, pool_dtype)

    def maxpool5(p):
        """5x5 max pool, stride 1, pad 2 (-inf), separable rows-then-cols."""
        # rows: leading-axis slices of the -inf padded scratch (no re-tiling).
        pbuf[2:th12 + 2, 0:W] = p
        r = pbuf[0:th12]
        for s in range(1, 5):
            r = jnp.maximum(r, pbuf[s:s + th12])
        # cols: XLU rolls; wrap-around lands in the -inf pad columns so no
        # masks and no sublane-misaligned slices/stores are needed.  Shifts
        # {1, 2, P-2, P-1} are the +-1/+-2 column neighbours in either rotate
        # convention.
        P = W + CPAD
        out = r
        for s in (1, 2, P - 2, P - 1):
            out = jnp.maximum(out, pltpu.roll(r, shift=s, axis=1))
        return out[:, 0:W]

    def dot_pool(p, j):
        pm = p[HALO:HALO + TH].reshape(TH * W, Ch)
        wj = w2_ref[j]
        if pm.dtype != wj.dtype:           # e.g. f32 pooling + bf16 MXU (v5e)
            pm = pm.astype(wj.dtype)
        return jnp.dot(pm, wj, preferred_element_type=jnp.float32)

    # z = [y | mp5(y) | mp9(y) | mp13(y)](interior rows) @ w2, as a running sum
    # so the (TH, W, 4*Ch) concat is never materialized.  mp9 = mp5(mp5) and
    # mp13 = mp5(mp5(mp5)) exactly (stride 1, -inf padding).
    z = dot_pool(y3, 0)
    p = y3
    for j in range(1, N_POOL):
        p = maxpool5(p)
        z = z + dot_pool(p, j)

    # ---- conv2 epilogue: folded BN + SiLU -----------------------------------
    z = _silu(z * s2_ref[...] + b2_ref[...])
    o_ref[...] = z.reshape(1, TH, W, Cout).astype(o_ref.dtype)


def _vmem_capacity_bytes():
    try:
        cap = getattr(pltpu.get_tpu_info(), "vmem_capacity_bytes", None)
        if cap:
            return int(cap)
    except Exception:
        pass
    return 64 * 1024 * 1024    # conservative default (v7x per-TensorCore VMEM)


def _tile_vmem_bytes(th, W, Cin, Ch, Cout, x_dtype, w_dtype, pool_dtype, out_dtype):
    """Generous per-grid-step footprint: double-buffered blocks + weights +
    scratch + value intermediates (accumulator, pool temps, iota)."""
    th12 = th + 2 * HALO
    xb = jnp.dtype(x_dtype).itemsize
    wb = jnp.dtype(w_dtype).itemsize
    pb = jnp.dtype(pool_dtype).itemsize
    ob = jnp.dtype(out_dtype).itemsize
    blocks = 2 * th12 * W * Cin * xb + 2 * th * W * Cout * ob
    weights = 2 * ((Cin * Ch + N_POOL * Ch * Cout) * wb + 2 * (Ch + Cout) * 4)
    scratch = (th12 + 4) * (W + CPAD) * Ch * pb
    temps = 8 * th12 * (W + CPAD) * Ch * max(pb, 4)     # y/y3/r/roll temps + iota
    temps += 2 * th * W * Cout * 4                      # f32 conv2 accumulator
    return blocks + weights + scratch + temps + (1 << 20)


def _choose_tile_h(H, W, Cin, Ch, Cout, x_dtype, w_dtype, pool_dtype, out_dtype,
                   vmem_cap):
    """Largest divisor of H whose per-step footprint fits in ~75% of VMEM."""
    budget = int(vmem_cap * 0.75)
    divisors = sorted((d for d in range(1, H + 1) if H % d == 0), reverse=True)
    for th in divisors:
        if _tile_vmem_bytes(th, W, Cin, Ch, Cout, x_dtype, w_dtype, pool_dtype,
                            out_dtype) <= budget:
            return th
    return divisors[-1]


def spp_bottleneck(x, w1, s1, b1, w2, s2, b2, *, tile_h=None,
                   use_bf16_matmul=False, use_bf16_pool=None):
    """SPPBottleneck forward.

    x : (N, H, W, Cin) NHWC.  w1: (Cin, Ch), s1/b1: (1, Ch) folded BN.
    w2: (4*Ch, Cout), s2/b2: (1, Cout).
    use_bf16_matmul: pre-cast x/w1/w2 to bf16 (MXU fast path, f32 accumulate).
    use_bf16_pool:   run the pooling stage in bf16 (recommended on v6e/v7x,
                     keep False on v5e which has no bf16 VALU).  Defaults to
                     use_bf16_matmul.
    """
    N, H, W, Cin = x.shape
    Ch = w1.shape[1]
    Cout = w2.shape[1]
    out_dtype = x.dtype
    if use_bf16_pool is None:
        use_bf16_pool = use_bf16_matmul
    pool_dtype = jnp.bfloat16 if use_bf16_pool else jnp.float32

    # Pre-cast matmul operands once in the wrapper (halves their HBM DMA and
    # VMEM residency, removes per-grid-step VPU casts inside the kernel).
    if use_bf16_matmul:
        x = x.astype(jnp.bfloat16)
        w1 = w1.astype(jnp.bfloat16)
        w2 = w2.astype(jnp.bfloat16)
    w2b = w2.reshape(N_POOL, Ch, Cout)    # one (Ch, Cout) block per pyramid branch

    vmem_cap = _vmem_capacity_bytes()
    if tile_h is None:
        tile_h = _choose_tile_h(H, W, Cin, Ch, Cout, x.dtype, w1.dtype,
                                pool_dtype, out_dtype, vmem_cap)
    if H % tile_h != 0:
        raise ValueError(f"tile_h={tile_h} must divide H={H}")
    n_tiles = H // tile_h
    th12 = tile_h + 2 * HALO

    # Overlapped ("haloed") copy of x so every H tile arrives with its 6-row
    # halo through a plain Blocked BlockSpec (keeps auto double-buffering and a
    # parallel tile axis).  Out-of-image halo rows are -inf-masked in-kernel,
    # so the pad value here is irrelevant.
    # TODO(synk): switch to element-indexed overlapping blocks (pl.Element) or a
    # manual halo DMA to avoid duplicating 2*HALO/tile_h of x in HBM.
    xp = jnp.pad(x, ((0, 0), (HALO, HALO), (0, 0), (0, 0)))
    xh = jnp.stack([xp[:, t * tile_h:t * tile_h + th12] for t in range(n_tiles)],
                   axis=1)                                   # (N, nT, th12, W, Cin)

    est = _tile_vmem_bytes(tile_h, W, Cin, Ch, Cout, x.dtype, w1.dtype,
                           pool_dtype, out_dtype)
    vmem_limit = int(min(max(est * 1.2, 32 * 1024 * 1024), vmem_cap * 0.9))

    kernel = functools.partial(spp_kernel, img_h=H, pool_dtype=pool_dtype)

    # TODO(synk): pipeline_mode=pl.Buffered(1) on the constant-index weight /
    # scale / bias blocks would drop their redundant second VMEM buffer; left
    # off here for portability across jax versions.
    return pl.pallas_call(
        kernel,
        out_shape=jax.ShapeDtypeStruct((N, H, W, Cout), out_dtype),
        grid_spec=pltpu.PrefetchScalarGridSpec(
            num_scalar_prefetch=0,
            grid=(N, n_tiles),
            in_specs=[
                pl.BlockSpec((1, 1, th12, W, Cin), lambda n, t: (n, t, 0, 0, 0)),
                pl.BlockSpec((Cin, Ch), lambda n, t: (0, 0)),
                pl.BlockSpec((1, Ch), lambda n, t: (0, 0)),
                pl.BlockSpec((1, Ch), lambda n, t: (0, 0)),
                pl.BlockSpec((N_POOL, Ch, Cout), lambda n, t: (0, 0, 0)),
                pl.BlockSpec((1, Cout), lambda n, t: (0, 0)),
                pl.BlockSpec((1, Cout), lambda n, t: (0, 0)),
            ],
            out_specs=pl.BlockSpec((1, tile_h, W, Cout), lambda n, t: (n, t, 0, 0)),
            scratch_shapes=[
                pltpu.VMEM((th12 + 4, W + CPAD, Ch), pool_dtype),  # -inf padded pool scratch
            ],
        ),
        compiler_params=pltpu.CompilerParams(
            dimension_semantics=("parallel", "parallel"),
            vmem_limit_bytes=vmem_limit),
    )(xh, w1, s1, b1, w2b, s2, b2)


def fold_bn(gamma, beta, mean, var, eps=1e-5):
    scale = gamma / jnp.sqrt(var + eps)
    bias = beta - mean * scale
    return scale[None, :], bias[None, :]


def ref_forward(x, w1, s1, b1, w2, s2, b2):
    """Pure-JAX reference (PyTorch SPPBottleneck forward, eval-mode BN)."""
    def conv_bn_silu(x, w, s, b):
        y = jnp.einsum('nhwc,cd->nhwd', x, w) * s[0] + b[0]
        return y * jax.nn.sigmoid(y)

    y = conv_bn_silu(x, w1, s1, b1)
    pools = [y]
    for k in KERNEL_SIZES:
        p = k // 2
        pools.append(lax.reduce_window(
            y, -jnp.inf, lax.max,
            (1, k, k, 1), (1, 1, 1, 1),
            [(0, 0), (p, p), (p, p), (0, 0)]))
    cat = jnp.concatenate(pools, axis=-1)
    return conv_bn_silu(cat, w2, s2, b2)


if __name__ == "__main__":
    # SPPBottleneck(in_channels=4, out_channels=4): hidden=2, conv2_in=8.
    # NOTE: benchmark with realistic channel counts (Ch/Cout multiples of 128);
    # these tiny shapes are only a correctness check.
    N, H, W = 2, 16, 16
    Cin, Cout = 4, 4
    Ch = Cin // 2
    Ccat = Ch * N_POOL

    key = jax.random.PRNGKey(0)
    keys = jax.random.split(key, 12)

    x = jax.random.normal(keys[0], (N, H, W, Cin), jnp.float32)

    # conv1 weights (1x1 conv == (Cin, Ch) matmul) + BN params (eval stats)
    w1 = jax.random.normal(keys[1], (Cin, Ch), jnp.float32) * 0.2
    g1 = jax.random.uniform(keys[2], (Ch,), jnp.float32, 0.5, 1.5)
    be1 = jax.random.normal(keys[3], (Ch,), jnp.float32) * 0.1
    m1 = jax.random.normal(keys[4], (Ch,), jnp.float32) * 0.1
    v1 = jax.random.uniform(keys[5], (Ch,), jnp.float32, 0.5, 1.5)
    s1, b1 = fold_bn(g1, be1, m1, v1)

    # conv2 weights + BN params
    w2 = jax.random.normal(keys[6], (Ccat, Cout), jnp.float32) * 0.2
    g2 = jax.random.uniform(keys[7], (Cout,), jnp.float32, 0.5, 1.5)
    be2 = jax.random.normal(keys[8], (Cout,), jnp.float32) * 0.1
    m2 = jax.random.normal(keys[9], (Cout,), jnp.float32) * 0.1
    v2 = jax.random.uniform(keys[10], (Cout,), jnp.float32, 0.5, 1.5)
    s2, b2 = fold_bn(g2, be2, m2, v2)

    ref = ref_forward(x, w1, s1, b1, w2, s2, b2)

    # Exact f32 path, H-tiled (2 tiles of 8 rows, each with its 6-row halo).
    out = jax.block_until_ready(
        spp_bottleneck(x, w1, s1, b1, w2, s2, b2, tile_h=8))
    assert out.shape == (N, H, W, Cout)
    assert jnp.allclose(out, ref, atol=1e-5, rtol=1e-5)

    # Auto-chosen tile (whole image at this size).
    out_auto = jax.block_until_ready(
        spp_bottleneck(x, w1, s1, b1, w2, s2, b2))
    assert jnp.allclose(out_auto, ref, atol=1e-5, rtol=1e-5)

    # bf16 MXU + bf16 pooling fast path (v6e/v7x); looser tolerance for casts.
    out_bf16 = jax.block_until_ready(
        spp_bottleneck(x, w1, s1, b1, w2, s2, b2, tile_h=8,
                       use_bf16_matmul=True))
    assert jnp.allclose(out_bf16, ref, atol=5e-2, rtol=5e-2)

    print("KERNEL_OK")
</pallas_src>

<mosaic_0001>
module attributes {stable_mosaic.version = 11 : i64} {
  func.func @spp_kernel(%arg0: i32, %arg1: i32, %arg2: memref<1x1x20x16x4xf32, #tpu.memory_space<vmem>>, %arg3: memref<4x2xf32, #tpu.memory_space<vmem>>, %arg4: memref<1x2xf32, #tpu.memory_space<vmem>>, %arg5: memref<1x2xf32, #tpu.memory_space<vmem>>, %arg6: memref<4x2x4xf32, #tpu.memory_space<vmem>>, %arg7: memref<1x4xf32, #tpu.memory_space<vmem>>, %arg8: memref<1x4xf32, #tpu.memory_space<vmem>>, %arg9: memref<1x8x16x4xf32, #tpu.memory_space<vmem>>, %arg10: memref<24x24x2xf32, #tpu.memory_space<vmem>>) attributes {dimension_semantics = [#tpu.dimension_semantics<parallel>, #tpu.dimension_semantics<parallel>], iteration_bounds = array<i64: 2, 2>, scalar_prefetch = 0 : i64, scratch_operands = 1 : i64, tpu.core_type = #tpu.core_type<tc>, window_params = [{transform_indices = @transform_0, window_bounds = array<i64: 1, 1, 20, 16, 4>}, {pipeline_mode = #tpu.pipeline_mode<synchronous>, transform_indices = @transform_1, window_bounds = array<i64: 4, 2>}, {pipeline_mode = #tpu.pipeline_mode<synchronous>, transform_indices = @transform_2, window_bounds = array<i64: 1, 2>}, {pipeline_mode = #tpu.pipeline_mode<synchronous>, transform_indices = @transform_3, window_bounds = array<i64: 1, 2>}, {pipeline_mode = #tpu.pipeline_mode<synchronous>, transform_indices = @transform_4, window_bounds = array<i64: 4, 2, 4>}, {pipeline_mode = #tpu.pipeline_mode<synchronous>, transform_indices = @transform_5, window_bounds = array<i64: 1, 4>}, {pipeline_mode = #tpu.pipeline_mode<synchronous>, transform_indices = @transform_6, window_bounds = array<i64: 1, 4>}, {transform_indices = @transform_7, window_bounds = array<i64: 1, 8, 16, 4>}]} {
    %c0 = arith.constant 0 : index
    %c0_0 = arith.constant 0 : index
    %c0_1 = arith.constant 0 : index
    %c0_2 = arith.constant 0 : index
    %c0_3 = arith.constant 0 : index
    %0 = vector.load %arg2[%c0, %c0_0, %c0_1, %c0_2, %c0_3] : memref<1x1x20x16x4xf32, #tpu.memory_space<vmem>>, vector<1x1x20x16x4xf32>
    %1 = vector.shape_cast %0 : vector<1x1x20x16x4xf32> to vector<320x4xf32>
    %c0_4 = arith.constant 0 : index
    %c0_5 = arith.constant 0 : index
    %2 = vector.load %arg3[%c0_4, %c0_5] : memref<4x2xf32, #tpu.memory_space<vmem>>, vector<4x2xf32>
    %cst = arith.constant dense<0.000000e+00> : vector<320x2xf32>
    %3 = tpu.matmul %1, %2, %cst {dimension_numbers = #tpu.dot_dimension_numbers<[1], [0], [0], [1], [0, 0, 1, 1], [], []>} : vector<320x4xf32>, vector<4x2xf32>, vector<320x2xf32> -> vector<320x2xf32>
    %c0_6 = arith.constant 0 : index
    %c0_7 = arith.constant 0 : index
    %4 = vector.load %arg4[%c0_6, %c0_7] : memref<1x2xf32, #tpu.memory_space<vmem>>, vector<1x2xf32>
    %5 = vector.broadcast %4 : vector<1x2xf32> to vector<320x2xf32>
    %6 = arith.mulf %3, %5 : vector<320x2xf32>
    %c0_8 = arith.constant 0 : index
    %c0_9 = arith.constant 0 : index
    %7 = vector.load %arg5[%c0_8, %c0_9] : memref<1x2xf32, #tpu.memory_space<vmem>>, vector<1x2xf32>
    %8 = vector.broadcast %7 : vector<1x2xf32> to vector<320x2xf32>
    %9 = arith.addf %6, %8 : vector<320x2xf32>
    %10 = arith.negf %9 : vector<320x2xf32>
    %11 = math.exp %10 : vector<320x2xf32>
    %cst_10 = arith.constant 1.000000e+00 : f32
    %12 = vector.broadcast %cst_10 : f32 to vector<320x2xf32>
    %13 = arith.addf %12, %11 : vector<320x2xf32>
    %14 = arith.divf %12, %13 : vector<320x2xf32>
    %15 = arith.mulf %9, %14 : vector<320x2xf32>
    %16 = vector.shape_cast %15 : vector<320x2xf32> to vector<20x16x2xf32>
    %17 = tpu.iota {dimensions = array<i32: 0>} : vector<20x16x2xi32>
    %c8_i32 = arith.constant 8 : i32
    %18 = arith.muli %arg1, %c8_i32 : i32
    %c6_i32 = arith.constant 6 : i32
    %19 = arith.subi %18, %c6_i32 : i32
    %20 = vector.broadcast %19 : i32 to vector<20x16x2xi32>
    %21 = arith.addi %17, %20 : vector<20x16x2xi32>
    %c0_i32 = arith.constant 0 : i32
    %22 = vector.broadcast %c0_i32 : i32 to vector<20x16x2xi32>
    %23 = arith.cmpi sge, %21, %22 : vector<20x16x2xi32>
    %c16_i32 = arith.constant 16 : i32
    %24 = vector.broadcast %c16_i32 : i32 to vector<20x16x2xi32>
    %25 = arith.cmpi slt, %21, %24 : vector<20x16x2xi32>
    %26 = arith.andi %23, %25 : vector<20x16x2xi1>
    %cst_11 = arith.constant 0xFF800000 : f32
    %27 = vector.broadcast %cst_11 : f32 to vector<20x16x2xf32>
    %28 = arith.select %26, %16, %27 : vector<20x16x2xi1>, vector<20x16x2xf32>
    %cst_12 = arith.constant 0xFF800000 : f32
    %29 = vector.broadcast %cst_12 : f32 to vector<2x24x2xf32>
    %c0_13 = arith.constant 0 : index
    %c0_14 = arith.constant 0 : index
    %c0_15 = arith.constant 0 : index
    %30 = vector.load %arg10[%c0_13, %c0_14, %c0_15] : memref<24x24x2xf32, #tpu.memory_space<vmem>>, vector<2x24x2xf32>
    tpu.vector_store %arg10[%c0_13, %c0_14, %c0_15], %29 {strides = array<i32>} : memref<24x24x2xf32, #tpu.memory_space<vmem>>, vector<2x24x2xf32>,
    %cst_16 = arith.constant 0xFF800000 : f32
    %31 = vector.broadcast %cst_16 : f32 to vector<2x24x2xf32>
    %c22 = arith.constant 22 : index
    %c0_17 = arith.constant 0 : index
    %c0_18 = arith.constant 0 : index
    %32 = vector.load %arg10[%c22, %c0_17, %c0_18] : memref<24x24x2xf32, #tpu.memory_space<vmem>>, vector<2x24x2xf32>
    tpu.vector_store %arg10[%c22, %c0_17, %c0_18], %31 {strides = array<i32>} : memref<24x24x2xf32, #tpu.memory_space<vmem>>, vector<2x24x2xf32>,
    %cst_19 = arith.constant 0xFF800000 : f32
    %33 = vector.broadcast %cst_19 : f32 to vector<24x8x2xf32>
    %c0_20 = arith.constant 0 : index
    %c16 = arith.constant 16 : index
    %c0_21 = arith.constant 0 : index
    %34 = vector.load %arg10[%c0_20, %c16, %c0_21] : memref<24x24x2xf32, #tpu.memory_space<vmem>>, vector<24x8x2xf32>
    tpu.vector_store %arg10[%c0_20, %c16, %c0_21], %33 {strides = array<i32>} : memref<24x24x2xf32, #tpu.memory_space<vmem>>, vector<24x8x2xf32>,
    %35 = vector.extract_strided_slice %28 {offsets = [6, 0, 0], sizes = [8, 16, 2], strides = [1, 1, 1]} : vector<20x16x2xf32> to vector<8x16x2xf32>
    %36 = vector.shape_cast %35 : vector<8x16x2xf32> to vector<128x2xf32>
    %c0_22 = arith.constant 0 : index
    %c0_23 = arith.constant 0 : index
    %c0_24 = arith.constant 0 : index
    %37 = vector.load %arg6[%c0_22, %c0_23, %c0_24] : memref<4x2x4xf32, #tpu.memory_space<vmem>>, vector<1x2x4xf32>
    %38 = vector.shape_cast %37 : vector<1x2x4xf32> to vector<2x4xf32>
    %cst_25 = arith.constant dense<0.000000e+00> : vector<128x4xf32>
    %39 = tpu.matmul %36, %38, %cst_25 {dimension_numbers = #tpu.dot_dimension_numbers<[1], [0], [0], [1], [0, 0, 1, 1], [], []>} : vector<128x2xf32>, vector<2x4xf32>, vector<128x4xf32> -> vector<128x4xf32>
    %c2 = arith.constant 2 : index
    %c0_26 = arith.constant 0 : index
    %c0_27 = arith.constant 0 : index
    %40 = vector.load %arg10[%c2, %c0_26, %c0_27] : memref<24x24x2xf32, #tpu.memory_space<vmem>>, vector<20x16x2xf32>
    tpu.vector_store %arg10[%c2, %c0_26, %c0_27], %28 {strides = array<i32>} : memref<24x24x2xf32, #tpu.memory_space<vmem>>, vector<20x16x2xf32>,
    %c0_28 = arith.constant 0 : index
    %c0_29 = arith.constant 0 : index
    %c0_30 = arith.constant 0 : index
    %41 = vector.load %arg10[%c0_28, %c0_29, %c0_30] : memref<24x24x2xf32, #tpu.memory_space<vmem>>, vector<20x24x2xf32>
    %c1 = arith.constant 1 : index
    %c0_31 = arith.constant 0 : index
    %c0_32 = arith.constant 0 : index
    %42 = vector.load %arg10[%c1, %c0_31, %c0_32] : memref<24x24x2xf32, #tpu.memory_space<vmem>>, vector<20x24x2xf32>
    %43 = arith.maximumf %41, %42 : vector<20x24x2xf32>
    %c2_33 = arith.constant 2 : index
    %c0_34 = arith.constant 0 : index
    %c0_35 = arith.constant 0 : index
    %44 = vector.load %arg10[%c2_33, %c0_34, %c0_35] : memref<24x24x2xf32, #tpu.memory_space<vmem>>, vector<20x24x2xf32>
    %45 = arith.maximumf %43, %44 : vector<20x24x2xf32>
    %c3 = arith.constant 3 : index
    %c0_36 = arith.constant 0 : index
    %c0_37 = arith.constant 0 : index
    %46 = vector.load %arg10[%c3, %c0_36, %c0_37] : memref<24x24x2xf32, #tpu.memory_space<vmem>>, vector<20x24x2xf32>
    %47 = arith.maximumf %45, %46 : vector<20x24x2xf32>
    %c4 = arith.constant 4 : index
    %c0_38 = arith.constant 0 : index
    %c0_39 = arith.constant 0 : index
    %48 = vector.load %arg10[%c4, %c0_38, %c0_39] : memref<24x24x2xf32, #tpu.memory_space<vmem>>, vector<20x24x2xf32>
    %49 = arith.maximumf %47, %48 : vector<20x24x2xf32>
    %c1_i32 = arith.constant 1 : i32
    %50 = tpu.dynamic_rotate %49 by %c1_i32 dim 1 : vector<20x24x2xf32>, i32 -> vector<20x24x2xf32>
    %51 = arith.maximumf %49, %50 : vector<20x24x2xf32>
    %c2_i32 = arith.constant 2 : i32
    %52 = tpu.dynamic_rotate %49 by %c2_i32 dim 1 : vector<20x24x2xf32>, i32 -> vector<20x24x2xf32>
    %53 = arith.maximumf %51, %52 : vector<20x24x2xf32>
    %c22_i32 = arith.constant 22 : i32
    %54 = tpu.dynamic_rotate %49 by %c22_i32 dim 1 : vector<20x24x2xf32>, i32 -> vector<20x24x2xf32>
    %55 = arith.maximumf %53, %54 : vector<20x24x2xf32>
    %c23_i32 = arith.constant 23 : i32
    %56 = tpu.dynamic_rotate %49 by %c23_i32 dim 1 : vector<20x24x2xf32>, i32 -> vector<20x24x2xf32>
    %57 = arith.maximumf %55, %56 : vector<20x24x2xf32>
    %58 = vector.extract_strided_slice %57 {offsets = [0, 0, 0], sizes = [20, 16, 2], strides = [1, 1, 1]} : vector<20x24x2xf32> to vector<20x16x2xf32>
    %59 = vector.extract_strided_slice %58 {offsets = [6, 0, 0], sizes = [8, 16, 2], strides = [1, 1, 1]} : vector<20x16x2xf32> to vector<8x16x2xf32>
    %60 = vector.shape_cast %59 : vector<8x16x2xf32> to vector<128x2xf32>
    %c1_40 = arith.constant 1 : index
    %c0_41 = arith.constant 0 : index
    %c0_42 = arith.constant 0 : index
    %61 = vector.load %arg6[%c1_40, %c0_41, %c0_42] : memref<4x2x4xf32, #tpu.memory_space<vmem>>, vector<1x2x4xf32>
    %62 = vector.shape_cast %61 : vector<1x2x4xf32> to vector<2x4xf32>
    %cst_43 = arith.constant dense<0.000000e+00> : vector<128x4xf32>
    %63 = tpu.matmul %60, %62, %cst_43 {dimension_numbers = #tpu.dot_dimension_numbers<[1], [0], [0], [1], [0, 0, 1, 1], [], []>} : vector<128x2xf32>, vector<2x4xf32>, vector<128x4xf32> -> vector<128x4xf32>
    %64 = arith.addf %39, %63 : vector<128x4xf32>
    %c2_44 = arith.constant 2 : index
    %c0_45 = arith.constant 0 : index
    %c0_46 = arith.constant 0 : index
    %65 = vector.load %arg10[%c2_44, %c0_45, %c0_46] : memref<24x24x2xf32, #tpu.memory_space<vmem>>, vector<20x16x2xf32>
    tpu.vector_store %arg10[%c2_44, %c0_45, %c0_46], %58 {strides = array<i32>} : memref<24x24x2xf32, #tpu.memory_space<vmem>>, vector<20x16x2xf32>,
    %c0_47 = arith.constant 0 : index
    %c0_48 = arith.constant 0 : index
    %c0_49 = arith.constant 0 : index
    %66 = vector.load %arg10[%c0_47, %c0_48, %c0_49] : memref<24x24x2xf32, #tpu.memory_space<vmem>>, vector<20x24x2xf32>
    %c1_50 = arith.constant 1 : index
    %c0_51 = arith.constant 0 : index
    %c0_52 = arith.constant 0 : index
    %67 = vector.load %arg10[%c1_50, %c0_51, %c0_52] : memref<24x24x2xf32, #tpu.memory_space<vmem>>, vector<20x24x2xf32>
    %68 = arith.maximumf %66, %67 : vector<20x24x2xf32>
    %c2_53 = arith.constant 2 : index
    %c0_54 = arith.constant 0 : index
    %c0_55 = arith.constant 0 : index
    %69 = vector.load %arg10[%c2_53, %c0_54, %c0_55] : memref<24x24x2xf32, #tpu.memory_space<vmem>>, vector<20x24x2xf32>
    %70 = arith.maximumf %68, %69 : vector<20x24x2xf32>
    %c3_56 = arith.constant 3 : index
    %c0_57 = arith.constant 0 : index
    %c0_58 = arith.constant 0 : index
    %71 = vector.load %arg10[%c3_56, %c0_57, %c0_58] : memref<24x24x2xf32, #tpu.memory_space<vmem>>, vector<20x24x2xf32>
    %72 = arith.maximumf %70, %71 : vector<20x24x2xf32>
    %c4_59 = arith.constant 4 : index
    %c0_60 = arith.constant 0 : index
    %c0_61 = arith.constant 0 : index
    %73 = vector.load %arg10[%c4_59, %c0_60, %c0_61] : memref<24x24x2xf32, #tpu.memory_space<vmem>>, vector<20x24x2xf32>
    %74 = arith.maximumf %72, %73 : vector<20x24x2xf32>
    %c1_i32_62 = arith.constant 1 : i32
    %75 = tpu.dynamic_rotate %74 by %c1_i32_62 dim 1 : vector<20x24x2xf32>, i32 -> vector<20x24x2xf32>
    %76 = arith.maximumf %74, %75 : vector<20x24x2xf32>
    %c2_i32_63 = arith.constant 2 : i32
    %77 = tpu.dynamic_rotate %74 by %c2_i32_63 dim 1 : vector<20x24x2xf32>, i32 -> vector<20x24x2xf32>
    %78 = arith.maximumf %76, %77 : vector<20x24x2xf32>
    %c22_i32_64 = arith.constant 22 : i32
    %79 = tpu.dynamic_rotate %74 by %c22_i32_64 dim 1 : vector<20x24x2xf32>, i32 -> vector<20x24x2xf32>
    %80 = arith.maximumf %78, %79 : vector<20x24x2xf32>
    %c23_i32_65 = arith.constant 23 : i32
    %81 = tpu.dynamic_rotate %74 by %c23_i32_65 dim 1 : vector<20x24x2xf32>, i32 -> vector<20x24x2xf32>
    %82 = arith.maximumf %80, %81 : vector<20x24x2xf32>
    %83 = vector.extract_strided_slice %82 {offsets = [0, 0, 0], sizes = [20, 16, 2], strides = [1, 1, 1]} : vector<20x24x2xf32> to vector<20x16x2xf32>
    %84 = vector.extract_strided_slice %83 {offsets = [6, 0, 0], sizes = [8, 16, 2], strides = [1, 1, 1]} : vector<20x16x2xf32> to vector<8x16x2xf32>
    %85 = vector.shape_cast %84 : vector<8x16x2xf32> to vector<128x2xf32>
    %c2_66 = arith.constant 2 : index
    %c0_67 = arith.constant 0 : index
    %c0_68 = arith.constant 0 : index
    %86 = vector.load %arg6[%c2_66, %c0_67, %c0_68] : memref<4x2x4xf32, #tpu.memory_space<vmem>>, vector<1x2x4xf32>
    %87 = vector.shape_cast %86 : vector<1x2x4xf32> to vector<2x4xf32>
    %cst_69 = arith.constant dense<0.000000e+00> : vector<128x4xf32>
    %88 = tpu.matmul %85, %87, %cst_69 {dimension_numbers = #tpu.dot_dimension_numbers<[1], [0], [0], [1], [0, 0, 1, 1], [], []>} : vector<128x2xf32>, vector<2x4xf32>, vector<128x4xf32> -> vector<128x4xf32>
    %89 = arith.addf %64, %88 : vector<128x4xf32>
    %c2_70 = arith.constant 2 : index
    %c0_71 = arith.constant 0 : index
    %c0_72 = arith.constant 0 : index
    %90 = vector.load %arg10[%c2_70, %c0_71, %c0_72] : memref<24x24x2xf32, #tpu.memory_space<vmem>>, vector<20x16x2xf32>
    tpu.vector_store %arg10[%c2_70, %c0_71, %c0_72], %83 {strides = array<i32>} : memref<24x24x2xf32, #tpu.memory_space<vmem>>, vector<20x16x2xf32>,
    %c0_73 = arith.constant 0 : index
    %c0_74 = arith.constant 0 : index
    %c0_75 = arith.constant 0 : index
    %91 = vector.load %arg10[%c0_73, %c0_74, %c0_75] : memref<24x24x2xf32, #tpu.memory_space<vmem>>, vector<20x24x2xf32>
    %c1_76 = arith.constant 1 : index
    %c0_77 = arith.constant 0 : index
    %c0_78 = arith.constant 0 : index
    %92 = vector.load %arg10[%c1_76, %c0_77, %c0_78] : memref<24x24x2xf32, #tpu.memory_space<vmem>>, vector<20x24x2xf32>
    %93 = arith.maximumf %91, %92 : vector<20x24x2xf32>
    %c2_79 = arith.constant 2 : index
    %c0_80 = arith.constant 0 : index
    %c0_81 = arith.constant 0 : index
    %94 = vector.load %arg10[%c2_79, %c0_80, %c0_81] : memref<24x24x2xf32, #tpu.memory_space<vmem>>, vector<20x24x2xf32>
    %95 = arith.maximumf %93, %94 : vector<20x24x2xf32>
    %c3_82 = arith.constant 3 : index
    %c0_83 = arith.constant 0 : index
    %c0_84 = arith.constant 0 : index
    %96 = vector.load %arg10[%c3_82, %c0_83, %c0_84] : memref<24x24x2xf32, #tpu.memory_space<vmem>>, vector<20x24x2xf32>
    %97 = arith.maximumf %95, %96 : vector<20x24x2xf32>
    %c4_85 = arith.constant 4 : index
    %c0_86 = arith.constant 0 : index
    %c0_87 = arith.constant 0 : index
    %98 = vector.load %arg10[%c4_85, %c0_86, %c0_87] : memref<24x24x2xf32, #tpu.memory_space<vmem>>, vector<20x24x2xf32>
    %99 = arith.maximumf %97, %98 : vector<20x24x2xf32>
    %c1_i32_88 = arith.constant 1 : i32
    %100 = tpu.dynamic_rotate %99 by %c1_i32_88 dim 1 : vector<20x24x2xf32>, i32 -> vector<20x24x2xf32>
    %101 = arith.maximumf %99, %100 : vector<20x24x2xf32>
    %c2_i32_89 = arith.constant 2 : i32
    %102 = tpu.dynamic_rotate %99 by %c2_i32_89 dim 1 : vector<20x24x2xf32>, i32 -> vector<20x24x2xf32>
    %103 = arith.maximumf %101, %102 : vector<20x24x2xf32>
    %c22_i32_90 = arith.constant 22 : i32
    %104 = tpu.dynamic_rotate %99 by %c22_i32_90 dim 1 : vector<20x24x2xf32>, i32 -> vector<20x24x2xf32>
    %105 = arith.maximumf %103, %104 : vector<20x24x2xf32>
    %c23_i32_91 = arith.constant 23 : i32
    %106 = tpu.dynamic_rotate %99 by %c23_i32_91 dim 1 : vector<20x24x2xf32>, i32 -> vector<20x24x2xf32>
    %107 = arith.maximumf %105, %106 : vector<20x24x2xf32>
    %108 = vector.extract_strided_slice %107 {offsets = [0, 0, 0], sizes = [20, 16, 2], strides = [1, 1, 1]} : vector<20x24x2xf32> to vector<20x16x2xf32>
    %109 = vector.extract_strided_slice %108 {offsets = [6, 0, 0], sizes = [8, 16, 2], strides = [1, 1, 1]} : vector<20x16x2xf32> to vector<8x16x2xf32>
    %110 = vector.shape_cast %109 : vector<8x16x2xf32> to vector<128x2xf32>
    %c3_92 = arith.constant 3 : index
    %c0_93 = arith.constant 0 : index
    %c0_94 = arith.constant 0 : index
    %111 = vector.load %arg6[%c3_92, %c0_93, %c0_94] : memref<4x2x4xf32, #tpu.memory_space<vmem>>, vector<1x2x4xf32>
    %112 = vector.shape_cast %111 : vector<1x2x4xf32> to vector<2x4xf32>
    %cst_95 = arith.constant dense<0.000000e+00> : vector<128x4xf32>
    %113 = tpu.matmul %110, %112, %cst_95 {dimension_numbers = #tpu.dot_dimension_numbers<[1], [0], [0], [1], [0, 0, 1, 1], [], []>} : vector<128x2xf32>, vector<2x4xf32>, vector<128x4xf32> -> vector<128x4xf32>
    %114 = arith.addf %89, %113 : vector<128x4xf32>
    %c0_96 = arith.constant 0 : index
    %c0_97 = arith.constant 0 : index
    %115 = vector.load %arg7[%c0_96, %c0_97] : memref<1x4xf32, #tpu.memory_space<vmem>>, vector<1x4xf32>
    %116 = vector.broadcast %115 : vector<1x4xf32> to vector<128x4xf32>
    %117 = arith.mulf %114, %116 : vector<128x4xf32>
    %c0_98 = arith.constant 0 : index
    %c0_99 = arith.constant 0 : index
    %118 = vector.load %arg8[%c0_98, %c0_99] : memref<1x4xf32, #tpu.memory_space<vmem>>, vector<1x4xf32>
    %119 = vector.broadcast %118 : vector<1x4xf32> to vector<128x4xf32>
    %120 = arith.addf %117, %119 : vector<128x4xf32>
    %121 = arith.negf %120 : vector<128x4xf32>
    %122 = math.exp %121 : vector<128x4xf32>
    %cst_100 = arith.constant 1.000000e+00 : f32
    %123 = vector.broadcast %cst_100 : f32 to vector<128x4xf32>
    %124 = arith.addf %123, %122 : vector<128x4xf32>
    %125 = arith.divf %123, %124 : vector<128x4xf32>
    %126 = arith.mulf %120, %125 : vector<128x4xf32>
    %127 = vector.shape_cast %126 : vector<128x4xf32> to vector<1x8x16x4xf32>
    %c0_101 = arith.constant 0 : index
    %c0_102 = arith.constant 0 : index
    %c0_103 = arith.constant 0 : index
    %c0_104 = arith.constant 0 : index
    %128 = vector.load %arg9[%c0_101, %c0_102, %c0_103, %c0_104] : memref<1x8x16x4xf32, #tpu.memory_space<vmem>>, vector<1x8x16x4xf32>
    tpu.vector_store %arg9[%c0_101, %c0_102, %c0_103, %c0_104], %127 {strides = array<i32>} : memref<1x8x16x4xf32, #tpu.memory_space<vmem>>, vector<1x8x16x4xf32>,
    return
  }
  func.func @transform_0(%arg0: i32, %arg1: i32) -> (i32, i32, i32, i32, i32) {
    %c0_i32 = arith.constant 0 : i32
    %c0_i32_0 = arith.constant 0 : i32
    %c0_i32_1 = arith.constant 0 : i32
    %c0_i32_2 = arith.constant 0 : i32
    return %arg0, %arg1, %c0_i32, %c0_i32_0, %c0_i32_1 : i32, i32, i32, i32, i32
  }
  func.func @transform_1(%arg0: i32, %arg1: i32) -> (i32, i32) {
    %c0_i32 = arith.constant 0 : i32
    %c0_i32_0 = arith.constant 0 : i32
    %c0_i32_1 = arith.constant 0 : i32
    return %c0_i32, %c0_i32_0 : i32, i32
  }
  func.func @transform_2(%arg0: i32, %arg1: i32) -> (i32, i32) {
    %c0_i32 = arith.constant 0 : i32
    %c0_i32_0 = arith.constant 0 : i32
    %c0_i32_1 = arith.constant 0 : i32
    return %c0_i32, %c0_i32_0 : i32, i32
  }
  func.func @transform_3(%arg0: i32, %arg1: i32) -> (i32, i32) {
    %c0_i32 = arith.constant 0 : i32
    %c0_i32_0 = arith.constant 0 : i32
    %c0_i32_1 = arith.constant 0 : i32
    return %c0_i32, %c0_i32_0 : i32, i32
  }
  func.func @transform_4(%arg0: i32, %arg1: i32) -> (i32, i32, i32) {
    %c0_i32 = arith.constant 0 : i32
    %c0_i32_0 = arith.constant 0 : i32
    %c0_i32_1 = arith.constant 0 : i32
    %c0_i32_2 = arith.constant 0 : i32
    return %c0_i32, %c0_i32_0, %c0_i32_1 : i32, i32, i32
  }
  func.func @transform_5(%arg0: i32, %arg1: i32) -> (i32, i32) {
    %c0_i32 = arith.constant 0 : i32
    %c0_i32_0 = arith.constant 0 : i32
    %c0_i32_1 = arith.constant 0 : i32
    return %c0_i32, %c0_i32_0 : i32, i32
  }
  func.func @transform_6(%arg0: i32, %arg1: i32) -> (i32, i32) {
    %c0_i32 = arith.constant 0 : i32
    %c0_i32_0 = arith.constant 0 : i32
    %c0_i32_1 = arith.constant 0 : i32
    return %c0_i32, %c0_i32_0 : i32, i32
  }
  func.func @transform_7(%arg0: i32, %arg1: i32) -> (i32, i32, i32, i32) {
    %c0_i32 = arith.constant 0 : i32
    %c0_i32_0 = arith.constant 0 : i32
    %c0_i32_1 = arith.constant 0 : i32
    return %arg0, %arg1, %c0_i32, %c0_i32_0 : i32, i32, i32, i32
  }
}

</mosaic_0001>

<bundles_post_ra>
// kernel: tpu_custom_call.1
= control target key start
LH: loop header
LB: loop body
LE: loop exit
PB: predicated region body
PF: predicated region fallthrough
CT: control target
= control target key end

     0   :  { %s6014_s24 = smov 0   ;;  %s6016_s25 = smov 0   ;;  %s9897_s0 = inlined_call_operand.vmem [shape: f32[2,2,20,16,4], index: 0, kind: input, shape index: {}]   ;;  %s9898_s1 = inlined_call_operand.vmem [shape: f32[4,2], index: 1, kind: input, shape index: {}]   ;;  %s9899_s2 = inlined_call_operand.vmem [shape: f32[1,2], index: 2, kind: input, shape index: {}]   ;;  %s9900_s3 = inlined_call_operand.vmem [shape: f32[1,2], index: 3, kind: input, shape index: {}]   ;;  %s9901_s4 = inlined_call_operand.vmem [shape: f32[4,2,4], index: 4, kind: input, shape index: {}]   ;;  %s9902_s5 = inlined_call_operand.vmem [shape: f32[1,4], index: 5, kind: input, shape index: {}]   ;;  %s9903_s6 = inlined_call_operand.vmem [shape: f32[1,4], index: 6, kind: input, shape index: {}]   ;;  %s9904_s7 = inlined_call_operand.vmem [shape: f32[2,16,16,4], index: 7, kind: output, shape index: {}]  }
   0x1   :  { %s6018_s26 = smov 0   ;;  %s6020_s27 = smov 0  }
   0x2   :  { %s6022_s28 = smov 0  }
   0x3 LB: > { %s26_s29 = sadd.s32 1, %s5963_s26  ;;  %s29_s30 = sadd.s32 1, %s5967_s27  ;;  %s5971_s28 = sphi %s6022_s28, %s17_s28   ;;  %s5967_s27 = sphi %s6020_s27, %s10264_s27   ;;  %s5963_s26 = sphi %s6018_s26, %s10263_s26   ;;  %s5959_s25 = sphi %s6016_s25, %s10262_s25   ;;  %s5955_s24 = sphi %s6014_s24, %s10261_s24  }
   0x4   : > { %p27_p0 = scmp.ge.s32.totalorder %s26_s29, 2  ;;  %p5154_p1 = scmp.ge.s32.totalorder %s5971_s28, 1 }
   0x5   : > { %p257_p2 = scmp.lt.s32.totalorder %s5971_s28, 5 }
   0x6   : > { %s10266_s29 = smov (%p27_p0, %s26_s29), 0  ;;  %s10268_s30 = smov (!%p27_p0, %s29_s30), %s5967_s27 }
   0x7   : > { %p258_p3 = pnand %p5154_p1, %p257_p2  ;;  %p31_p4 = scmp.ge.s32.totalorder %s10268_s30, 2 }
   0x9   : > { %s10270_s30 = smov (%p31_p4, %s10268_s30), 0  ;;  %261 = sbr.rel (%p258_p3) target bundleno = 1075 (0x433), region = 48 }
  0x10   : > { %v358_v0 = vld [vmem:[%s9898_s1] sm:$0xf]  ;;  %vm480_vm0 = vcmask 1043456   ;;  %p298_p5 = scmp.lt.s32.totalorder %s5959_s25, 1  ;;  %p300_p6 = scmp.lt.s32.totalorder %s5955_s24, 1  ;;  %vm9930_vm1 = vcmask 31744   ;;  %v1928_v63 = vlaneseq }
  0x11   : > { %5445 = vmatprep.subr.msk.mxu0 %vm480_vm0, %v358_v0  ;;  %vm1245_vm2 = vcmask 15360   ;;  %v5973_v41 = vmov -inf   ;;  %s6176_s18 = sshll.u32 %s5955_s24, 3  ;;  %v6190_v60 = vld [vmem:[%s9899_s2] ss:$0 sm:$0xff]  ;;  %vm2484_vm15 = vcmask 1041408  }
  0x12   : > { %5446 = vmatpush3.msk.msra.mxu0 %vm480_vm0, %v358_v0  ;;  %s10272_s25 = smov (!%p298_p5, %s5959_s25), 1  ;;  %1247 = vst.msk [vmem:[#allocation2 + $0x8] sm:$0xff] %vm1245_vm2, %v5973_v41  ;;  %1250 = vst.msk [vmem:[#allocation2 + $0x20] sm:$0xff] %vm1245_vm2, %v5973_v41  ;;  %s5244_s19 = sadd.s32 4294967290, %s6176_s18 }
  0x13   : > { %s301_s10 = scalar_select %p300_p6, %s5955_s24, 1  ;;  %1246 = vst.msk [vmem:[#allocation2] sm:$0xff] %vm1245_vm2, %v5973_v41  ;;  %1248 = vst.msk [vmem:[#allocation2 + $0x10] sm:$0xff] %vm1245_vm2, %v5973_v41  ;;  %v6192_v61 = vstv %s5244_s19 }
  0x14   : > { %s5662_s11 = smul.u32 80, %s10272_s25  ;;  %1249 = vst.msk [vmem:[#allocation2 + $0x18] sm:$0xff] %vm1245_vm2, %v5973_v41  ;;  %1251 = vst.msk [vmem:[#allocation2 + $0x28] sm:$0xff] %vm1245_vm2, %v5973_v41  ;;  %vm1145_vm3 = vcmp.ge.s32.totalorder %v6192_v61, 0  ;;  %vm1165_vm4 = vcmp.lt.s32.totalorder %v6192_v61, 16  ;;  %p310_p7 = scmp.lt.s32.totalorder %s6176_s18, 15 }
  0x15   : > { %s5661_s12 = smul.u32 40, %s301_s10  ;;  %1253 = vst.msk [vmem:[#allocation2 + $0x210] sm:$0xff] %vm1245_vm2, %v5973_v41  ;;  %1254 = vst.msk [vmem:[#allocation2 + $0x218] sm:$0xff] %vm1245_vm2, %v5973_v41  ;;  %s5158_s10 = sshll.u32 %s10272_s25, 5 }
  0x16   : > { %1255 = vst.msk [vmem:[#allocation2 + $0x220] sm:$0xff] %vm1245_vm2, %v5973_v41  ;;  %1256 = vst.msk [vmem:[#allocation2 + $0x228] sm:$0xff] %vm1245_vm2, %v5973_v41  ;;  %s10274_s18 = smov (!%p310_p7, %s6176_s18), 15 }
  0x17   : > { %s304_s13 = sadd.s32 %s5662_s11, %s5661_s12  ;;  %1257 = vst.msk [vmem:[#allocation2 + $0x230] sm:$0xff] %vm1245_vm2, %v5973_v41  ;;  %1258 = vst.msk [vmem:[#allocation2 + $0x238] sm:$0xff] %vm1245_vm2, %v5973_v41  ;;  %s5157_s9 = sshll.u32 %s10274_s18, 1 }
  0x18   : > { %s5155_s14 = sshll.u32 %s304_s13, 3  ;;  %1261 = vst.msk [vmem:[#allocation2 + $0x40] sm:$0xff] %vm1245_vm2, %v5973_v41  ;;  %1262 = vst.msk [vmem:[#allocation2 + $0x58] sm:$0xff] %vm1245_vm2, %v5973_v41  ;;  %s314_s11 = sadd.s32 %s5158_s10, %s5157_s9 }
  0x19   : > { %s6057_s17 = scalar_lea.vmem %s9897_s0, %s5155_s14  ;;  %1263 = vst.msk [vmem:[#allocation2 + $0x70] sm:$0xff] %vm1245_vm2, %v5973_v41  ;;  %1264 = vst.msk [vmem:[#allocation2 + $0x88] sm:$0xff] %vm1245_vm2, %v5973_v41  ;;  %v6179_v53 = vld [vmem:[#allocation2 + $0x8] sm:$0xff]  ;;  %v6181_v55 = vld [vmem:[#allocation2 + $0x20] sm:$0xff]  ;;  %s5159_s18 = sshll.u32 %s314_s11, 3 }
  0x1a   : > { %v318_v1 = vld [vmem:[%s6057_s17] sm:$0xff]  ;;  %v319_v2 = vld [vmem:[%s6057_s17 + $0x8] sm:$0xff]  ;;  %v320_v3 = vld [vmem:[%s6057_s17 + $0x10] sm:$0xff]  ;;  %1265 = vst.msk [vmem:[#allocation2 + $0xa0] sm:$0xff] %vm1245_vm2, %v5973_v41  ;;  %s9804_s13 = scalar_lea.vmem %s9904_s7, %s5159_s18 }
  0x1b   : > { %5447 = vmatprep.mubr.msk.f32.mxu0 %vm9930_vm1, %v318_v1  ;;  %v321_v4 = vld [vmem:[%s6057_s17 + $0x18] sm:$0xff]  ;;  %v322_v5 = vld [vmem:[%s6057_s17 + $0x20] sm:$0xff]  ;;  %v323_v6 = vld [vmem:[%s6057_s17 + $0x28] sm:$0xff]  ;;  %1266 = vst.msk [vmem:[#allocation2 + $0xb8] sm:$0xff] %vm1245_vm2, %v5973_v41  ;;  %v6197_v1 = vadd.s32 1, %v6192_v61 }
  0x1c   : > { %5448 = vmatmul.mubr.msk.f32.vlgmr.msra.gmra.mrb[0].mxu0 %vm9930_vm1, %v319_v2  ;;  %v324_v7 = vld [vmem:[%s6057_s17 + $0x30] sm:$0xff]  ;;  %v325_v8 = vld [vmem:[%s6057_s17 + $0x38] sm:$0xff]  ;;  %v326_v9 = vld [vmem:[%s6057_s17 + $0x40] sm:$0xff]  ;;  %1267 = vst.msk [vmem:[#allocation2 + $0xd0] sm:$0xff] %vm1245_vm2, %v5973_v41 }
  0x1d   : > { %5450 = vmatprep.mubr.msk.f32.mxu0 %vm9930_vm1, %v320_v3  ;;  %v327_v10 = vld [vmem:[%s6057_s17 + $0x48] sm:$0xff]  ;;  %v328_v11 = vld [vmem:[%s6057_s17 + $0x50] sm:$0xff]  ;;  %v329_v12 = vld [vmem:[%s6057_s17 + $0x58] sm:$0xff]  ;;  %1268 = vst.msk [vmem:[#allocation2 + $0xe8] sm:$0xff] %vm1245_vm2, %v5973_v41  ;;  %vm1146_vm5 = vcmp.ge.s32.totalorder %v6197_v1, 0  ;;  %vm1166_vm6 = vcmp.lt.s32.totalorder %v6197_v1, 16 }
  0x1e   : > { %v330_v13 = vld [vmem:[%s6057_s17 + $0x60] sm:$0xff]  ;;  %v331_v14 = vld [vmem:[%s6057_s17 + $0x68] sm:$0xff]  ;;  %v332_v15 = vld [vmem:[%s6057_s17 + $0x70] sm:$0xff]  ;;  %1269 = vst.msk [vmem:[#allocation2 + $0x100] sm:$0xff] %vm1245_vm2, %v5973_v41 }
  0x1f   : > { %v333_v16 = vld [vmem:[%s6057_s17 + $0x78] sm:$0xff]  ;;  %v334_v17 = vld [vmem:[%s6057_s17 + $0x80] sm:$0xff]  ;;  %v335_v18 = vld [vmem:[%s6057_s17 + $0x88] sm:$0xff]  ;;  %1270 = vst.msk [vmem:[#allocation2 + $0x118] sm:$0xff] %vm1245_vm2, %v5973_v41 }
  0x20   : > { %5451 = vmatmul.mubr.msk.f32.gmra.mrb[2].mxu0 %vm9930_vm1, %v321_v4  ;;  %v336_v19 = vld [vmem:[%s6057_s17 + $0x90] sm:$0xff]  ;;  %v337_v20 = vld [vmem:[%s6057_s17 + $0x98] sm:$0xff]  ;;  %v338_v21 = vld [vmem:[%s6057_s17 + $0xa0] sm:$0xff]  ;;  %1271 = vst.msk [vmem:[#allocation2 + $0x130] sm:$0xff] %vm1245_vm2, %v5973_v41 }
  0x21   : > { %5453 = vmatprep.mubr.msk.f32.mxu0 %vm9930_vm1, %v322_v5  ;;  %v339_v22 = vld [vmem:[%s6057_s17 + $0xa8] sm:$0xff]  ;;  %v340_v23 = vld [vmem:[%s6057_s17 + $0xb0] sm:$0xff]  ;;  %v341_v24 = vld [vmem:[%s6057_s17 + $0xb8] sm:$0xff]  ;;  %1272 = vst.msk [vmem:[#allocation2 + $0x148] sm:$0xff] %vm1245_vm2, %v5973_v41  ;;  %v1447_v5 = vmax.f32 %v6179_v53, %v6181_v55 }
  0x22   : > { %v342_v25 = vld [vmem:[%s6057_s17 + $0xc0] sm:$0xff]  ;;  %v343_v26 = vld [vmem:[%s6057_s17 + $0xc8] sm:$0xff]  ;;  %v344_v27 = vld [vmem:[%s6057_s17 + $0xd0] sm:$0xff]  ;;  %1273 = vst.msk [vmem:[#allocation2 + $0x160] sm:$0xff] %vm1245_vm2, %v5973_v41 }
  0x23   : > { %v345_v28 = vld [vmem:[%s6057_s17 + $0xd8] sm:$0xff]  ;;  %v346_v29 = vld [vmem:[%s6057_s17 + $0xe0] sm:$0xff]  ;;  %v347_v30 = vld [vmem:[%s6057_s17 + $0xe8] sm:$0xff]  ;;  %1274 = vst.msk [vmem:[#allocation2 + $0x178] sm:$0xff] %vm1245_vm2, %v5973_v41 }
  0x24   : > { %5454 = vmatmul.mubr.msk.f32.gmra.mrb[4].mxu0 %vm9930_vm1, %v323_v6  ;;  %v348_v31 = vld [vmem:[%s6057_s17 + $0xf0] sm:$0xff]  ;;  %v349_v32 = vld [vmem:[%s6057_s17 + $0xf8] sm:$0xff]  ;;  %v350_v33 = vld [vmem:[%s6057_s17 + $0x100] sm:$0xff]  ;;  %1275 = vst.msk [vmem:[#allocation2 + $0x190] sm:$0xff] %vm1245_vm2, %v5973_v41 }
  0x25   : > { %5456 = vmatprep.mubr.msk.f32.mxu0 %vm9930_vm1, %v324_v7  ;;  %v351_v34 = vld [vmem:[%s6057_s17 + $0x108] sm:$0xff]  ;;  %v352_v35 = vld [vmem:[%s6057_s17 + $0x110] sm:$0xff]  ;;  %v353_v36 = vld [vmem:[%s6057_s17 + $0x118] sm:$0xff]  ;;  %1276 = vst.msk [vmem:[#allocation2 + $0x1a8] sm:$0xff] %vm1245_vm2, %v5973_v41  ;;  %v6209_v7 = vadd.s32 2, %v6192_v61 }
  0x26   : > { %v354_v37 = vld [vmem:[%s6057_s17 + $0x120] sm:$0xff]  ;;  %v355_v38 = vld [vmem:[%s6057_s17 + $0x128] sm:$0xff]  ;;  %v356_v39 = vld [vmem:[%s6057_s17 + $0x130] sm:$0xff]  ;;  %1277 = vst.msk [vmem:[#allocation2 + $0x1c0] sm:$0xff] %vm1245_vm2, %v5973_v41 }
  0x27   : > { %v357_v40 = vld [vmem:[%s6057_s17 + $0x138] sm:$0xff]  ;;  %1278 = vst.msk [vmem:[#allocation2 + $0x1d8] sm:$0xff] %vm1245_vm2, %v5973_v41  ;;  %1279 = vst.msk [vmem:[#allocation2 + $0x1f0] sm:$0xff] %vm1245_vm2, %v5973_v41  ;;  %v1508_v45 = vld [vmem:[#allocation2 + $0x40] sm:$0xff]  ;;  %vm1147_vm7 = vcmp.ge.s32.totalorder %v6209_v7, 0  ;;  %vm1167_vm8 = vcmp.lt.s32.totalorder %v6209_v7, 16 }
  0x28   : > { %5457 = vmatmul.mubr.msk.f32.gmra.mrb[6].mxu0 %vm9930_vm1, %v325_v8  ;;  %1280 = vst.msk [vmem:[#allocation2 + $0x208] sm:$0xff] %vm1245_vm2, %v5973_v41  ;;  %1259 = vst.msk [vmem:[#allocation2 + $0x10] sm:$0xff] %vm1245_vm2, %v5973_v41  ;;  %v1629_v48 = vld [vmem:[#allocation2 + $0x58] sm:$0xff]  ;;  %v1750_v52 = vld [vmem:[#allocation2 + $0x70] sm:$0xff] }
  0x29   : > { %5459 = vmatprep.mubr.msk.f32.mxu0 %vm9930_vm1, %v326_v9  ;;  %1260 = vst.msk [vmem:[#allocation2 + $0x28] sm:$0xff] %vm1245_vm2, %v5973_v41  ;;  %1281 = vst.msk [vmem:[#allocation2 + $0x220] sm:$0xff] %vm1245_vm2, %v5973_v41  ;;  %v1454_v49 = vmax.f32 %v1508_v45, %v1629_v48  ;;  %v6183_v56 = vld [vmem:[#allocation2] sm:$0xff]  ;;  %v6185_v57 = vld [vmem:[#allocation2 + $0x18] sm:$0xff]  ;;  %v1457_v59 = vmax.f32 %v1629_v48, %v1750_v52 }
  0x2a   : > { %1282 = vst.msk [vmem:[#allocation2 + $0x238] sm:$0xff] %vm1245_vm2, %v5973_v41  ;;  %v1753_v0 = vld [vmem:[#allocation2 + $0x88] sm:$0xff]  ;;  %v6202_v4 = vld [vmem:[%s9900_s3] ss:$0 sm:$0xff]  ;;  %vm6369_vm9 = vmand %vm1145_vm3, %vm1165_vm4 }
  0x2b   : > { %v1574_v54 = vmax.f32 %v1454_v49, %v1750_v52  ;;  %v1460_v2 = vmax.f32 %v1750_v52, %v1753_v0  ;;  %vm6398_vm12 = vmand %vm1146_vm5, %vm1166_vm6 }
  0x2c   : > { %5460 = vmatmul.mubr.msk.f32.gmra.mrb[8].mxu0 %vm9930_vm1, %v327_v10  ;;  %vm6432_vm0 = vmand %vm1147_vm7, %vm1167_vm8 }
  0x2d   : > { %5462 = vmatprep.mubr.msk.f32.mxu0 %vm9930_vm1, %v328_v11  ;;  %v1695_v8 = vmax.f32 %v1574_v54, %v1753_v0  ;;  %v6213_v11 = vadd.s32 3, %v6192_v61  ;;  %v6258_v54 = vadd.s32 5, %v6192_v61 }
  0x2f   : > { %v1327_v42 = vld [vmem:[#allocation2 + $0x10] sm:$0xff]  ;;  %vm1148_vm10 = vcmp.ge.s32.totalorder %v6213_v11, 0  ;;  %vm1168_vm11 = vcmp.lt.s32.totalorder %v6213_v11, 16 }
  0x30   : > { %5463 = vmatmul.mubr.msk.f32.gmra.mrb[10].mxu0 %vm9930_vm1, %v329_v12  ;;  %v1388_v43 = vld [vmem:[#allocation2 + $0x28] sm:$0xff]  ;;  %vm6469_vm3 = vmand %vm1148_vm10, %vm1168_vm11  ;;  %vm1170_vm10 = vcmp.lt.s32.totalorder %v6258_v54, 16 }
  0x31   : > { %5465 = vmatprep.mubr.msk.f32.mxu0 %vm9930_vm1, %v330_v13  ;;  %v1448_v44 = vmax.f32 %v1327_v42, %v1388_v43  ;;  %v1451_v46 = vmax.f32 %v1388_v43, %v1508_v45  ;;  %v1756_v13 = vld [vmem:[#allocation2 + $0xa0] sm:$0xff] }
  0x33   : > { %v1568_v47 = vmax.f32 %v1448_v44, %v1508_v45  ;;  %v1571_v50 = vmax.f32 %v1451_v46, %v1629_v48  ;;  %v1762_v44 = vld [vmem:[#allocation2 + $0xd0] sm:$0xff] }
  0x34   : > { %5466 = vmatmul.mubr.msk.f32.gmra.mrb[12].mxu0 %vm9930_vm1, %v331_v14  ;;  %v1577_v14 = vmax.f32 %v1457_v59, %v1753_v0 }
  0x35   : > { %5468 = vmatprep.mubr.msk.f32.mxu0 %vm9930_vm1, %v332_v15  ;;  %v1689_v51 = vmax.f32 %v1568_v47, %v1629_v48  ;;  %v1692_v58 = vmax.f32 %v1571_v50, %v1750_v52 }
  0x37   : > { %v6194_v62 = vmax.f32 %v1689_v51, %v1750_v52  ;;  %v6215_v12 = vmax.f32 %v1692_v58, %v1753_v0  ;;  %v6261_v58 = vadd.s32 6, %v6192_v61 }
  0x38   : > { %5469 = vmatmul.mubr.msk.f32.gmra.mrb[14].mxu0 %vm9930_vm1, %v333_v16  ;;  %v6218_v16 = vshrl.u32 %v1928_v63, 7  ;;  %v1345_v63 = vld [vmem:[#allocation2 + $0xa0] sm:$0xff] }
  0x39   : > { %5471 = vmatprep.mubr.msk.f32.mxu0 %vm9930_vm1, %v334_v17  ;;  %v6386_v17 = vadd.s32 17, %v6192_v61  ;;  %vm1151_vm11 = vcmp.ge.s32.totalorder %v6261_v58, 0 }
  0x3a   : > { %vm2212_vm4 = vcmp.lt.s32.totalorder %v6218_v16, 6  ;;  %vm2353_vm5 = vcmp.lt.s32.totalorder %v6218_v16, 7  ;;  %vm1930_vm6 = vcmp.lt.s32.totalorder %v6218_v16, 1  ;;  %vm2071_vm7 = vcmp.lt.s32.totalorder %v6218_v16, 2 }
  0x3b   : > { %9999 = vst [vmem:[#allocation18_spill] sm:$0xff] %v6386_v17 }
  0x3c   : > { %5472 = vmatmul.mubr.msk.f32.gmra.mrb[16].mxu0 %vm9930_vm1, %v335_v18  ;;  %v6222_v18 = vadd.s32 4, %v6192_v61 }
  0x3d   : > { %5474 = vmatprep.mubr.msk.f32.mxu0 %vm9930_vm1, %v336_v19 }
  0x3e   : > { %vm1149_vm13 = vcmp.ge.s32.totalorder %v6222_v18, 0  ;;  %vm1169_vm14 = vcmp.lt.s32.totalorder %v6222_v18, 16 }
  0x3f   : > { %vm6515_vm8 = vmand %vm1149_vm13, %vm1169_vm14 }
  0x40   : > { %5475 = vmatmul.mubr.msk.f32.gmra.mrb[18].mxu0 %vm9930_vm1, %v337_v20 }
  0x41   : > { %5477 = vmatprep.mubr.msk.f32.mxu0 %vm9930_vm1, %v338_v21 }
  0x44   : > { %5478 = vmatmul.mubr.msk.f32.gmra.mrb[20].mxu0 %vm9930_vm1, %v339_v22  ;;  %v1580_v22 = vmax.f32 %v1460_v2, %v1756_v13 }
  0x45   : > { %5480 = vmatprep.mubr.msk.f32.mxu0 %vm9930_vm1, %v340_v23 }
  0x48   : > { %5481 = vmatmul.mubr.msk.f32.gmra.mrb[22].mxu0 %vm9930_vm1, %v341_v24 }
  0x49   : > { %5483 = vmatprep.mubr.msk.f32.mxu0 %vm9930_vm1, %v342_v25 }
  0x4c   : > { %5484 = vmatmul.mubr.msk.f32.gmra.mrb[24].mxu0 %vm9930_vm1, %v343_v26  ;;  %v6233_v26 = vmax.f32 %v1695_v8, %v1756_v13  ;;  %v6355_v8 = vadd.s32 14, %v6192_v61 }
  0x4d   : > { %5486 = vmatprep.mubr.msk.f32.mxu0 %vm9930_vm1, %v344_v27  ;;  %v1463_v27 = vmax.f32 %v1753_v0, %v1756_v13 }
  0x4e   : > { %9992 = vst [vmem:[#allocation13_spill] sm:$0xff] %v6355_v8 }
  0x50   : > { %5487 = vmatmul.mubr.msk.f32.gmra.mrb[26].mxu0 %vm9930_vm1, %v345_v28 }
  0x51   : > { %5489 = vmatprep.mubr.msk.f32.mxu0 %vm9930_vm1, %v346_v29 }
  0x54   : > { %5490 = vmatmul.mubr.msk.f32.gmra.mrb[28].mxu0 %vm9930_vm1, %v347_v30 }
  0x55   : > { %5492 = vmatprep.mubr.msk.f32.mxu0 %vm9930_vm1, %v348_v31 }
  0x58   : > { %5493 = vmatmul.mubr.msk.f32.gmra.mrb[30].mxu0 %vm9930_vm1, %v349_v32  ;;  %v1698_v32 = vmax.f32 %v1577_v14, %v1756_v13 }
  0x59   : > { %5495 = vmatprep.mubr.msk.f32.mxu0 %vm9930_vm1, %v350_v33 }
  0x5c   : > { %5496 = vmatmul.mubr.msk.f32.gmra.mrb[32].mxu0 %vm9930_vm1, %v351_v34 }
  0x5d   : > { %5498 = vmatprep.mubr.msk.f32.mxu0 %vm9930_vm1, %v352_v35 }
  0x60   : > { %5499 = vmatmul.mubr.msk.f32.gmra.mrb[34].mxu0 %vm9930_vm1, %v353_v36 }
  0x61   : > { %5501 = vmatprep.mubr.msk.f32.mxu0 %vm9930_vm1, %v354_v37  ;;  %v1759_v37 = vld [vmem:[#allocation2 + $0xb8] sm:$0xff] }
  0x62   : > { %v1583_v45 = vmax.f32 %v1463_v27, %v1759_v37  ;;  %v6253_v50 = vmax.f32 %v1698_v32, %v1759_v37 }
  0x64   : > { %5502 = vmatmul.mubr.msk.f32.gmra.mrb[36].mxu0 %vm9930_vm1, %v355_v38  ;;  %9982 = vst [vmem:[#allocation3_spill] sm:$0xff] %v6253_v50 }
  0x65   : > { %5504 = vmatprep.mubr.msk.f32.mxu0 %vm9930_vm1, %v356_v39 }
  0x68   : > { %5505 = vmatmul.mubr.msk.f32.gmra.mrb[38].mxu0 %vm9930_vm1, %v357_v40  ;;  %v1701_v40 = vmax.f32 %v1580_v22, %v1759_v37 }
  0x6a   : > { %v6267_v0 = vmax.f32 %v1701_v40, %v1762_v44 }
  0x6c   : > { %9983 = vst [vmem:[#allocation4_spill] sm:$0xff] %v6267_v0 }
  0xef   : > { %v5449_v3 = vpop.f32.mrb[0].mxu0 }
  0xf0   : > { %v757_v9 = vmul.f32 %v5449_v3, %v6190_v60  ;;  %v550_v10 = vpop.f32.mrb[1].mxu0 }
  0xf1   : > { %v756_v15 = vmul.f32 %v6190_v60, %v550_v10 }
  0xf2   : > { %v6225_v19 = vadd.f32 %v6202_v4, %v757_v9  ;;  %v1704_v9 = vmax.f32 %v1583_v45, %v1762_v44 }
  0xf3   : > { %v6230_v23 = vadd.f32 %v6202_v4, %v756_v15  ;;  %v5452_v24 = vpop.f32.mrb[2].mxu0 }
  0xf4   : > { %v5204_v28 = vmul.f32 -1.442695, %v6225_v19  ;;  %v759_v29 = vmul.f32 %v5452_v24, %v6190_v60  ;;  %v560_v30 = vpop.f32.mrb[3].mxu0  ;;  %v1765_v24 = vld [vmem:[#allocation2 + $0xe8] sm:$0xff] }
  0xf5   : > { %v5203_v33 = vmul.f32 -1.442695, %v6230_v23  ;;  %v758_v34 = vmul.f32 %v6190_v60, %v560_v30  ;;  %v6281_v30 = vadd.s32 7, %v6192_v61  ;;  %v6292_v44 = vmax.f32 %v1704_v9, %v1765_v24 }
  0xf6   : > { %5704 = vpow2.f32 %v5204_v28  ;;  %v6243_v38 = vadd.f32 %v6202_v4, %v759_v29 }
  0xf7   : > { %5706 = vpow2.f32 %v5203_v33  ;;  %v6247_v41 = vadd.f32 %v6202_v4, %v758_v34  ;;  %v5455_v42 = vpop.f32.mrb[4].mxu0  ;;  %9984 = vst [vmem:[#allocation5_spill] sm:$0xff] %v6281_v30  ;;  %9985 = vst [vmem:[#allocation6_spill] sm:$0xff] %v6292_v44 }
  0xf8   : > { %v5206_v46 = vmul.f32 -1.442695, %v6243_v38  ;;  %v761_v47 = vmul.f32 %v5455_v42, %v6190_v60  ;;  %v570_v48 = vpop.f32.mrb[5].mxu0 }
  0xf9   : > { %v5205_v51 = vmul.f32 -1.442695, %v6247_v41  ;;  %v760_v52 = vmul.f32 %v6190_v60, %v570_v48 }
  0xfa   : > { %5708 = vpow2.f32 %v5206_v46  ;;  %v6264_v59 = vadd.f32 %v6202_v4, %v761_v47 }
  0xfb   : > { %5710 = vpow2.f32 %v5205_v51  ;;  %v6270_v2 = vadd.f32 %v6202_v4, %v760_v52  ;;  %v5458_v3 = vpop.f32.mrb[6].mxu0 }
  0xfc   : > { %v5208_v10 = vmul.f32 -1.442695, %v6264_v59  ;;  %v763_v13 = vmul.f32 %v5458_v3, %v6190_v60  ;;  %v580_v14 = vpop.f32.mrb[7].mxu0 }
  0xfd   : > { %v5207_v27 = vmul.f32 -1.442695, %v6270_v2  ;;  %v762_v28 = vmul.f32 %v6190_v60, %v580_v14 }
  0xfe   : > { %5712 = vpow2.f32 %v5208_v10  ;;  %v6284_v32 = vadd.f32 %v6202_v4, %v763_v13 }
  0xff   : > { %5714 = vpow2.f32 %v5207_v27  ;;  %v6289_v37 = vadd.f32 %v6202_v4, %v762_v28  ;;  %v5461_v40 = vpop.f32.mrb[8].mxu0  ;;  %v6301_v27 = vadd.s32 8, %v6192_v61  ;;  %v6309_v28 = vadd.s32 9, %v6192_v61 }
 0x100   : > { %v5705_v45 = vpop.eup %5704  ;;  %v5210_v46 = vmul.f32 -1.442695, %v6284_v32  ;;  %v765_v47 = vmul.f32 %v5461_v40, %v6190_v60  ;;  %v590_v48 = vpop.f32.mrb[9].mxu0 }
 0x101   : > { %v5707_v3 = vpop.eup %5706  ;;  %v964_v10 = vadd.f32 1.0, %v5705_v45  ;;  %v5209_v13 = vmul.f32 -1.442695, %v6289_v37  ;;  %v764_v14 = vmul.f32 %v6190_v60, %v590_v48  ;;  %9986 = vst [vmem:[#allocation7_spill] sm:$0xff] %v6301_v27  ;;  %9987 = vst [vmem:[#allocation8_spill] sm:$0xff] %v6309_v28  ;;  %v10020_v28 = vrot.slane %v6194_v62, 6 }
 0x102   : > { %v963_v9 = vadd.f32 1.0, %v5707_v3  ;;  %5716 = vpow2.f32 %v5210_v46  ;;  %v6306_v24 = vadd.f32 %v6202_v4, %v765_v47 }
 0x103   : > { %5718 = vrcp.f32 %v964_v10  ;;  %v6312_v40 = vadd.f32 %v6202_v4, %v764_v14  ;;  %v5464_v45 = vpop.f32.mrb[10].mxu0 }
 0x104   : > { %v5709_v51 = vpop.eup %5708  ;;  %5720 = vrcp.f32 %v963_v9  ;;  %v5212_v3 = vmul.f32 -1.442695, %v6306_v24  ;;  %v767_v46 = vmul.f32 %v5464_v45, %v6190_v60  ;;  %v600_v47 = vpop.f32.mrb[11].mxu0  ;;  %v6339_v45 = vadd.s32 12, %v6192_v61 }
 0x105   : > { %v5711_v34 = vpop.eup %5710  ;;  %v966_v33 = vadd.f32 1.0, %v5709_v51  ;;  %5722 = vpow2.f32 %v5209_v13  ;;  %v5211_v10 = vmul.f32 -1.442695, %v6312_v40  ;;  %v766_v14 = vmul.f32 %v6190_v60, %v600_v47 }
 0x106   : > { %v965_v52 = vadd.f32 1.0, %v5711_v34  ;;  %5724 = vpow2.f32 %v5212_v3  ;;  %v6324_v9 = vadd.f32 %v6202_v4, %v767_v46  ;;  %v6331_v13 = vadd.s32 10, %v6192_v61  ;;  %9990 = vst [vmem:[#allocation11_spill] sm:$0xff] %v6339_v45 }
 0x107   : > { %5726 = vrcp.f32 %v966_v33  ;;  %v6328_v42 = vadd.f32 %v6202_v4, %v766_v14  ;;  %v5467_v51 = vpop.f32.mrb[12].mxu0  ;;  %v6334_v47 = vadd.s32 11, %v6192_v61 }
 0x108   : > { %9988 = vst [vmem:[#allocation9_spill] sm:$0xff] %v6331_v13  ;;  %v5713_v48 = vpop.eup %5712  ;;  %5728 = vrcp.f32 %v965_v52  ;;  %v5214_v34 = vmul.f32 -1.442695, %v6324_v9  ;;  %v769_v3 = vmul.f32 %v5467_v51, %v6190_v60  ;;  %v610_v46 = vpop.f32.mrb[13].mxu0  ;;  %v6349_v51 = vadd.s32 13, %v6192_v61 }
 0x109   : > { %9989 = vst [vmem:[#allocation10_spill] sm:$0xff] %v6334_v47  ;;  %v5715_v33 = vpop.eup %5714  ;;  %v968_v14 = vadd.f32 1.0, %v5713_v48  ;;  %5730 = vpow2.f32 %v5211_v10  ;;  %v5213_v29 = vmul.f32 -1.442695, %v6328_v42  ;;  %v768_v22 = vmul.f32 %v6190_v60, %v610_v46 }
 0x10a   : > { %v967_v52 = vadd.f32 1.0, %v5715_v33  ;;  %5732 = vpow2.f32 %v5214_v34  ;;  %v6346_v15 = vadd.f32 %v6202_v4, %v769_v3  ;;  %9991 = vst [vmem:[#allocation12_spill] sm:$0xff] %v6349_v51  ;;  %v6358_v46 = vadd.s32 15, %v6192_v61  ;;  %v1406_v33 = vld [vmem:[#allocation2 + $0xb8] sm:$0xff] }
 0x10b   : > { %5734 = vrcp.f32 %v968_v14  ;;  %v6352_v48 = vadd.f32 %v6202_v4, %v768_v22  ;;  %v5470_v10 = vpop.f32.mrb[14].mxu0  ;;  %v6363_v14 = vadd.s32 16, %v6192_v61  ;;  %v1466_v21 = vmax.f32 %v1345_v63, %v1406_v33 }
 0x10c   : > { %9993 = vst [vmem:[#allocation14_spill] sm:$0xff] %v6358_v46  ;;  %v5717_v34 = vpop.eup %5716  ;;  %5736 = vrcp.f32 %v967_v52  ;;  %v5216_v3 = vmul.f32 -1.442695, %v6346_v15  ;;  %v771_v49 = vmul.f32 %v5470_v10, %v6190_v60  ;;  %v620_v43 = vpop.f32.mrb[15].mxu0 }
 0x10d   : > { %9994 = vst [vmem:[#allocation15_spill] sm:$0xff] %v6363_v14  ;;  %v5719_v22 = vpop.eup %5718  ;;  %v970_v35 = vadd.f32 1.0, %v5717_v34  ;;  %5738 = vpow2.f32 %v5213_v29  ;;  %v5215_v52 = vmul.f32 -1.442695, %v6352_v48  ;;  %v770_v36 = vmul.f32 %v6190_v60, %v620_v43 }
 0x10e   : > { %v5721_v10 = vpop.eup %5720  ;;  %v1084_v31 = vmul.f32 %v5719_v22, %v6225_v19  ;;  %5740 = vpow2.f32 %v5216_v3  ;;  %v6379_v25 = vadd.f32 %v6202_v4, %v771_v49  ;;  %v1526_v19 = vld [vmem:[#allocation2 + $0xd0] sm:$0xff] }
 0x10f   : > { %v5723_v20 = vpop.eup %5722  ;;  %v1083_v34 = vmul.f32 %v5721_v10, %v6230_v23  ;;  %5742 = vrcp.f32 %v970_v35  ;;  %v6383_v29 = vadd.f32 %v6202_v4, %v770_v36  ;;  %v5473_v43 = vpop.f32.mrb[16].mxu0  ;;  %v6409_v39 = vmax.f32 %v1466_v21, %v1526_v19 }
 0x110   : > { %9997 = vst [vmem:[#allocation16_spill] sm:$0xff] %v6379_v25  ;;  %v5725_v22 = vpop.eup %5724  ;;  %v1206_v3 = vsel %vm6369_vm9, %v1084_v31, -inf  ;;  %v969_v6 = vadd.f32 1.0, %v5723_v20  ;;  %5744 = vpow2.f32 %v5215_v52  ;;  %v5218_v49 = vmul.f32 -1.442695, %v6379_v25  ;;  %v630_v63 = vpop.f32.mrb[17].mxu0 }
 0x111   : > { %9998 = vst [vmem:[#allocation17_spill] sm:$0xff] %v6383_v29  ;;  %v5727_v33 = vpop.eup %5726  ;;  %1286 = vst.msk [vmem:[#allocation2 + $0x38] sm:$0xff] %vm1245_vm2, %v1206_v3  ;;  %v1205_v23 = vsel %vm6369_vm9, %v1083_v34, -inf  ;;  %v972_v31 = vadd.f32 1.0, %v5725_v22  ;;  %v5217_v20 = vmul.f32 -1.442695, %v6383_v29  ;;  %v773_v36 = vmul.f32 %v5473_v43, %v6190_v60 }
 0x112   : > { %v5729_v52 = vpop.eup %5728  ;;  %1285 = vst.msk [vmem:[#allocation2 + $0x30] sm:$0xff] %vm1245_vm2, %v1205_v23  ;;  %v1086_v10 = vmul.f32 %v5727_v33, %v6243_v38  ;;  %5746 = vrcp.f32 %v969_v6  ;;  %v772_v1 = vmul.f32 %v6190_v60, %v630_v63  ;;  %10002 = vst [vmem:[#allocation19_spill] sm:$0xff] %v6409_v39  ;;  %v5245_v6 = vld [vmem:[%s9901_s4 + $0x2] sm:$0x3]  ;;  %vm1150_vm9 = vcmp.ge.s32.totalorder %v6258_v54, 0 }
 0x113   : > { %v5731_v34 = vpop.eup %5730  ;;  %v1085_v22 = vmul.f32 %v5729_v52, %v6247_v41  ;;  %5748 = vrcp.f32 %v972_v31  ;;  %v6413_v43 = vadd.f32 %v6202_v4, %v773_v36  ;;  %v5476_v3 = vpop.f32.mrb[18].mxu0  ;;  %5507 = vmatprep.subr.msk.mxu0 %vm2484_vm15, %v5245_v6  ;;  %5611 = vmatprep.subr.msk.mxu1 %vm2484_vm15, %v5245_v6  ;;  %vm6688_vm13 = vmand %vm1150_vm9, %vm1170_vm10 }
 0x114   : > { %v5733_v38 = vpop.eup %5732  ;;  %v1208_v33 = vsel %vm6398_vm12, %v1086_v10, -inf  ;;  %v971_v63 = vadd.f32 1.0, %v5731_v34  ;;  %5750 = vpow2.f32 %v5218_v49  ;;  %v6421_v21 = vadd.f32 %v6202_v4, %v772_v1  ;;  %v640_v41 = vpop.f32.mrb[19].mxu0  ;;  %5508 = vmatpush3.msk.msra.mxu0 %vm2484_vm15, %v5245_v6  ;;  %5612 = vmatpush3.msk.msra.mxu1 %vm2484_vm15, %v5245_v6 }
 0x115   : > { %10003 = vst [vmem:[#allocation20_spill] sm:$0xff] %v6413_v43  ;;  %v5735_v19 = vpop.eup %5734  ;;  %1288 = vst.msk [vmem:[#allocation2 + $0x50] sm:$0xff] %vm1245_vm2, %v1208_v33  ;;  %v1207_v23 = vsel %vm6398_vm12, %v1085_v22, -inf  ;;  %v974_v31 = vadd.f32 1.0, %v5733_v38  ;;  %5752 = vpow2.f32 %v5217_v20  ;;  %v5220_v36 = vmul.f32 -1.442695, %v6413_v43 }
 0x116   : > { %10004 = vst [vmem:[#allocation21_spill] sm:$0xff] %v6421_v21  ;;  %v5737_v52 = vpop.eup %5736  ;;  %1287 = vst.msk [vmem:[#allocation2 + $0x48] sm:$0xff] %vm1245_vm2, %v1207_v23  ;;  %v1088_v35 = vmul.f32 %v5735_v19, %v6264_v59  ;;  %5754 = vrcp.f32 %v971_v63  ;;  %v775_v7 = vmul.f32 %v5476_v3, %v6190_v60  ;;  %v6443_v10 = vadd.s32 18, %v6192_v61 }
 0x117   : > { %v5739_v1 = vpop.eup %5738  ;;  %v1087_v20 = vmul.f32 %v5737_v52, %v6270_v2  ;;  %5756 = vrcp.f32 %v974_v31  ;;  %v5219_v34 = vmul.f32 -1.442695, %v6421_v21  ;;  %v5479_v22 = vpop.f32.mrb[20].mxu0  ;;  %v6448_v6 = vadd.s32 19, %v6192_v61 }
 0x118   : > { %10007 = vst [vmem:[#allocation22_spill] sm:$0xff] %v6443_v10  ;;  %v5741_v38 = vpop.eup %5740  ;;  %v6450_v33 = vld [vmem:[#allocation2 + $0x38] sm:$0xff]  ;;  %v1210_v59 = vsel %vm6432_vm0, %v1088_v35, -inf  ;;  %v973_v3 = vadd.f32 1.0, %v5739_v1  ;;  %v6455_v63 = vadd.f32 %v6202_v4, %v775_v7  ;;  %v774_v19 = vmul.f32 %v6190_v60, %v640_v41  ;;  %v650_v2 = vpop.f32.mrb[21].mxu0 }
 0x119   : > { %10008 = vst [vmem:[#allocation23_spill] sm:$0xff] %v6448_v6  ;;  %v5743_v23 = vpop.eup %5742  ;;  %v1450_v31 = vmax.f32 %v6181_v55, %v6450_v33  ;;  %v6460_v52 = vld [vmem:[#allocation2 + $0x30] sm:$0xff]  ;;  %1290 = vst.msk [vmem:[#allocation2 + $0x68] sm:$0xff] %vm1245_vm2, %v1210_v59  ;;  %v1209_v61 = vsel %vm6432_vm0, %v1087_v20, -inf  ;;  %v976_v41 = vadd.f32 1.0, %v5741_v38  ;;  %5758 = vpow2.f32 %v5220_v36 }
 0x11a   : > { %10009 = vst [vmem:[#allocation24_spill] sm:$0xff] %v6455_v63  ;;  %v5745_v7 = vpop.eup %5744  ;;  %v1567_v1 = vmax.f32 %v1447_v5, %v6450_v33  ;;  %v1449_v49 = vmax.f32 %v6185_v57, %v6460_v52  ;;  %1289 = vst.msk [vmem:[#allocation2 + $0x60] sm:$0xff] %vm1245_vm2, %v1209_v61  ;;  %v1090_v11 = vmul.f32 %v5743_v23, %v6284_v32  ;;  %5760 = vrcp.f32 %v973_v3 }
 0x11b   : > { %v10012_v36 = vmax.f32 %v6183_v56, %v6185_v57  ;;  %5762 = vrcp.f32 %v976_v41  ;;  %v975_v53 = vadd.f32 1.0, %v5745_v7  ;;  %v5222_v55 = vmul.f32 -1.442695, %v6455_v63  ;;  %v6490_v5 = vpop.f32.mrb[22].mxu0 }
 0x11c   : > { %v5747_v38 = vpop.eup %5746  ;;  %v6492_v59 = vld [vmem:[#allocation2 + $0x50] sm:$0xff]  ;;  %v1212_v32 = vsel %vm6469_vm3, %v1090_v11, -inf  ;;  %5764 = vpow2.f32 %v5219_v34  ;;  %v6497_v56 = vadd.f32 %v6202_v4, %v774_v19  ;;  %v777_v57 = vmul.f32 %v5479_v22, %v6190_v60  ;;  %v6500_v3 = vpop.f32.mrb[23].mxu0 }
 0x11d   : > { %v1566_v20 = vmax.f32 %v10012_v36, %v6460_v52  ;;  %v5749_v23 = vpop.eup %5748  ;;  %v1453_v61 = vmax.f32 %v6450_v33, %v6492_v59  ;;  %v6505_v41 = vmax.f32 %v1450_v31, %v6492_v59  ;;  %v6507_v7 = vld [vmem:[#allocation2 + $0x48] sm:$0xff]  ;;  %1292 = vst.msk [vmem:[#allocation2 + $0x80] sm:$0xff] %vm1245_vm2, %v1212_v32  ;;  %v1089_v34 = vmul.f32 %v5747_v38, %v6289_v37 }
 0x11e   : > { %10013 = vst [vmem:[#allocation25_spill] sm:$0xff] %v6497_v56  ;;  %v6520_v19 = vmul.f32 %v6190_v60, %v650_v2  ;;  %v5751_v33 = vpop.eup %5750  ;;  %v1688_v31 = vmax.f32 %v1567_v1, %v6492_v59  ;;  %v1452_v11 = vmax.f32 %v6460_v52, %v6507_v7  ;;  %v6526_v36 = vmax.f32 %v1449_v49, %v6507_v7 }
 0x11f   : > { %v1092_v37 = vmul.f32 %v5749_v23, %v6306_v24  ;;  %v5753_v38 = vpop.eup %5752  ;;  %v1687_v18 = vmax.f32 %v1566_v20, %v6507_v7  ;;  %v1211_v32 = vsel %vm6469_vm3, %v1089_v34, -inf  ;;  %5766 = vrcp.f32 %v975_v53  ;;  %v6534_v39 = vpop.f32.mrb[24].mxu0 }
 0x120   : > { %v6532_v2 = vadd.f32 1.0, %v5751_v33  ;;  %v6536_v1 = vpop.eup %5754  ;;  %v6538_v6 = vld [vmem:[#allocation2 + $0x68] sm:$0xff]  ;;  %1291 = vst.msk [vmem:[#allocation2 + $0x78] sm:$0xff] %vm1245_vm2, %v1211_v32  ;;  %v6543_v52 = vadd.f32 1.0, %v5753_v38  ;;  %5768 = vpow2.f32 %v5222_v55  ;;  %v6546_v35 = vmul.f32 -1.442695, %v6497_v56 }
 0x121   : > { %v1214_v24 = vsel %vm6515_vm8, %v1092_v37, -inf  ;;  %v6548_v49 = vpop.f32.mrb[25].mxu0  ;;  %v6550_v20 = vpop.eup %5756  ;;  %v1456_v53 = vmax.f32 %v6492_v59, %v6538_v6  ;;  %v6555_v23 = vmax.f32 %v1453_v61, %v6538_v6  ;;  %v1809_v34 = vmax.f32 %v1688_v31, %v6538_v6  ;;  %v6558_v33 = vld [vmem:[#allocation2 + $0x60] sm:$0xff] }
 0x122   : > { %1294 = vst.msk [vmem:[#allocation2 + $0x98] sm:$0xff] %vm1245_vm2, %v1214_v24  ;;  %v6562_v55 = vadd.f32 %v6202_v4, %v777_v57  ;;  %v1691_v37 = vmax.f32 %v6505_v41, %v6538_v6  ;;  %v1455_v38 = vmax.f32 %v6507_v7, %v6558_v33  ;;  %v6569_v59 = vmax.f32 %v1452_v11, %v6558_v33 }
 0x123   : > { %v1808_v61 = vmax.f32 %v1687_v18, %v6558_v33  ;;  %v6572_v32 = vpop.eup %5758  ;;  %v1888_v31 = vrot.slane %v1809_v34, 7  ;;  %v2031_v10 = vrot.slane %v1809_v34, 6  ;;  %v2172_v17 = vrot.slane %v1809_v34, 2  ;;  %v6574_v14 = vpop.f32.mrb[26].mxu0 }
 0x124   : > { %v2313_v24 = vrot.slane %v1809_v34, 1  ;;  %v6576_v57 = vpop.eup %5760  ;;  %v6578_v7 = vld [vmem:[#allocation2 + $0x80] sm:$0xff]  ;;  %v6580_v11 = vpop.f32.mrb[27].mxu0  ;;  %v10017_v18 = vrot.slane %v6194_v62, 2  ;;  %v10018_v56 = vrot.slane %v6194_v62, 1  ;;  %v1690_v13 = vmax.f32 %v6526_v36, %v6558_v33 }
 0x125   : > { %v1868_v46 = vrot.slane %v1808_v61, 7  ;;  %v2011_v41 = vrot.slane %v1808_v61, 6  ;;  %v2152_v8 = vrot.slane %v1808_v61, 2  ;;  %v2293_v51 = vrot.slane %v1808_v61, 1  ;;  %10016 = vst [vmem:[#allocation26_spill] sm:$0xff] %v6580_v11  ;;  %v6582_v45 = vpop.eup %5762 }
 0x126   : > { %v2213_v47 = vsel %vm2212_vm4, %v2172_v17, %v10017_v18  ;;  %v2354_v44 = vsel %vm2353_vm5, %v2313_v24, %v10018_v56  ;;  %v1459_v63 = vmax.f32 %v6538_v6, %v6578_v7  ;;  %v6598_v21 = vpop.eup %5764  ;;  %v10019_v43 = vrot.slane %v6194_v62, 7 }
 0x127   : > { %v1931_v18 = vsel %vm1930_vm6, %v1868_v46, %v1888_v31  ;;  %v2072_v36 = vsel %vm2071_vm7, %v2011_v41, %v2031_v10  ;;  %v6609_v29 = vmax.f32 %v1456_v53, %v6578_v7  ;;  %vm1171_vm12 = vcmp.lt.s32.totalorder %v6261_v58, 16  ;;  %v6621_v10 = vpop.f32.mrb[28].mxu0 }
 0x128   : > { %v1951_v56 = vsel %vm1930_vm6, %v10019_v43, %v1868_v46  ;;  %v1972_v0 = vmax.f32 %v1809_v34, %v1931_v18  ;;  %v2092_v31 = vsel %vm2071_vm7, %v10020_v28, %v2011_v41  ;;  %v2233_v46 = vsel %vm2212_vm4, %v2152_v8, %v2172_v17  ;;  %v6619_v43 = vld [vmem:[#allocation2 + $0x78] sm:$0xff]  ;;  %10021 = vst [vmem:[#allocation27_spill] sm:$0xff] %v6621_v10  ;;  %vm6706_vm14 = vmand %vm1151_vm11, %vm1171_vm12 }
 0x129   : > { %v1971_v6 = vmax.f32 %v1808_v61, %v1951_v56  ;;  %v2374_v53 = vsel %vm2353_vm5, %v2293_v51, %v2313_v24  ;;  %v1694_v25 = vmax.f32 %v6555_v23, %v6578_v7  ;;  %v1812_v34 = vmax.f32 %v1691_v37, %v6578_v7  ;;  %v6630_v61 = vpop.f32.mrb[29].mxu0  ;;  %v6632_v28 = vpop.eup %5766 }
 0x12a   : > { %10022 = vst [vmem:[#allocation28_spill] sm:$0xff] %v6630_v61  ;;  %v2113_v8 = vmax.f32 %v1972_v0, %v2072_v36  ;;  %v6635_v41 = vmax.f32 %v1455_v38, %v6619_v43  ;;  %v1811_v18 = vmax.f32 %v1690_v13, %v6619_v43  ;;  %v6638_v51 = vpop.eup %5768  ;;  %5770 = vrcp.f32 %v6532_v2 }
 0x12b   : > { %v2112_v17 = vmax.f32 %v1971_v6, %v2092_v31  ;;  %v1889_v24 = vrot.slane %v1812_v34, 7  ;;  %v2032_v23 = vrot.slane %v1812_v34, 6  ;;  %v2173_v56 = vrot.slane %v1812_v34, 2  ;;  %v6640_v61 = vpop.f32.mrb[30].mxu0  ;;  %v6648_v31 = vld [vmem:[#allocation2 + $0x98] sm:$0xff] }
 0x12c   : > { %10023 = vst [vmem:[#allocation29_spill] sm:$0xff] %v6635_v41  ;;  %v2314_v37 = vrot.slane %v1812_v34, 1  ;;  %v2254_v27 = vmax.f32 %v2113_v8, %v2213_v47  ;;  %v1869_v62 = vrot.slane %v1811_v18, 7  ;;  %v2012_v50 = vrot.slane %v1811_v18, 6  ;;  %10024 = vst [vmem:[#allocation30_spill] sm:$0xff] %v6640_v61  ;;  %v6650_v30 = vpop.f32.mrb[31].mxu0 }
 0x12d   : > { %v2253_v10 = vmax.f32 %v2112_v17, %v2233_v46  ;;  %v10025_v6 = vrot.slane %v6215_v12, 2  ;;  %v2153_v38 = vrot.slane %v1811_v18, 2  ;;  %v2294_v36 = vrot.slane %v1811_v18, 1  ;;  %10026 = vst [vmem:[#allocation31_spill] sm:$0xff] %v6650_v30 }
 0x12e   : > { %v2395_v47 = vmax.f32 %v2254_v27, %v2354_v44  ;;  %v1932_v17 = vsel %vm1930_vm6, %v1869_v62, %v1889_v24  ;;  %v10027_v8 = vrot.slane %v6215_v12, 7  ;;  %v2073_v30 = vsel %vm2071_vm7, %v2012_v50, %v2032_v23 }
 0x12f   : > { %v2214_v0 = vsel %vm2212_vm4, %v2173_v56, %v10025_v6  ;;  %v2394_v46 = vmax.f32 %v2253_v10, %v2374_v53  ;;  %v10028_v6 = vrot.slane %v6215_v12, 1  ;;  %v1974_v11 = vmax.f32 %v1812_v34, %v1932_v17 }
 0x130   : > { %v1952_v61 = vsel %vm1930_vm6, %v10027_v8, %v1869_v62  ;;  %2830 = vst.msk [vmem:[#allocation2 + $0x38] sm:$0xff] %vm1245_vm2, %v2395_v47  ;;  %v10029_v44 = vrot.slane %v6215_v12, 6  ;;  %v2234_v10 = vsel %vm2212_vm4, %v2153_v38, %v2173_v56  ;;  %v2375_v53 = vsel %vm2353_vm5, %v2294_v36, %v2314_v37  ;;  %v6676_v62 = vpop.f32.mrb[32].mxu0 }
 0x131   : > { %v2355_v13 = vsel %vm2353_vm5, %v2314_v37, %v10028_v6  ;;  %v1973_v41 = vmax.f32 %v1811_v18, %v1952_v61  ;;  %2829 = vst.msk [vmem:[#allocation2 + $0x30] sm:$0xff] %vm1245_vm2, %v2394_v46  ;;  %v1462_v34 = vmax.f32 %v6578_v7, %v6648_v31  ;;  %v2115_v18 = vmax.f32 %v1974_v11, %v2073_v30  ;;  %v6692_v23 = vpop.f32.mrb[33].mxu0 }
 0x132   : > { %v2093_v27 = vsel %vm2071_vm7, %v10029_v44, %v2012_v50  ;;  %v6679_v24 = vmax.f32 %v1459_v63, %v6648_v31  ;;  %v6682_v12 = vmax.f32 %v1694_v25, %v6648_v31  ;;  %v1094_v30 = vmul.f32 %v6550_v20, %v6324_v9 }
 0x133   : > { %v2114_v61 = vmax.f32 %v1973_v41, %v2093_v27  ;;  %v1091_v41 = vmul.f32 %v6536_v1, %v6312_v40  ;;  %v1093_v25 = vmul.f32 %v6576_v57, %v6328_v42  ;;  %v1096_v63 = vmul.f32 %v6582_v45, %v6346_v15  ;;  %v6719_v45 = vpop.f32.mrb[34].mxu0 }
 0x134   : > { %v2256_v56 = vmax.f32 %v2115_v18, %v2214_v0  ;;  %v1697_v40 = vmax.f32 %v6609_v29, %v6648_v31  ;;  %v1890_v9 = vrot.slane %v6682_v12, 7  ;;  %v2033_v42 = vrot.slane %v6682_v12, 6  ;;  %v6729_v22 = vpop.f32.mrb[35].mxu0 }
 0x135   : > { %v2255_v11 = vmax.f32 %v2114_v61, %v2234_v10  ;;  %v2174_v1 = vrot.slane %v6682_v12, 2  ;;  %v1213_v15 = vsel %vm6515_vm8, %v1091_v41, -inf  ;;  %v1216_v58 = vsel %vm6688_vm13, %v1094_v30, -inf }
 0x136   : > { %v2397_v57 = vmax.f32 %v2256_v56, %v2355_v13  ;;  %1293 = vst.msk [vmem:[#allocation2 + $0x90] sm:$0xff] %vm1245_vm2, %v1213_v15  ;;  %1296 = vst.msk [vmem:[#allocation2 + $0xb0] sm:$0xff] %vm1245_vm2, %v1216_v58  ;;  %v1215_v29 = vsel %vm6688_vm13, %v1093_v25, -inf  ;;  %v6727_v37 = vsel %vm6706_vm14, %v1096_v63, -inf  ;;  %v10035_v0 = vrot.slane %v6233_v26, 2  ;;  %v10040_v63 = vld [vmem:[#allocation26_spill] sm:$0xff] }
 0x137   : > { %v2396_v20 = vmax.f32 %v2255_v11, %v2375_v53  ;;  %10034 = vst [vmem:[#allocation32_spill] sm:$0xff] %v6727_v37  ;;  %v2315_v38 = vrot.slane %v6682_v12, 1  ;;  %1295 = vst.msk [vmem:[#allocation2 + $0xa8] sm:$0xff] %vm1245_vm2, %v1215_v29  ;;  %v1095_v36 = vmul.f32 %v6632_v28, %v6352_v48  ;;  %5772 = vrcp.f32 %v6543_v52  ;;  %v6762_v28 = vpop.f32.mrb[36].mxu0  ;;  %v5771_v29 = vpop.eup %5770 }
 0x138   : > { %v6737_v13 = vsel %vm2212_vm4, %v2174_v1, %v10035_v0  ;;  %1298 = vst.msk [vmem:[#allocation2 + $0xc8] sm:$0xff] %vm1245_vm2, %v6727_v37  ;;  %2832 = vst.msk [vmem:[#allocation2 + $0x50] sm:$0xff] %vm1245_vm2, %v2397_v57  ;;  %v980_v46 = vadd.f32 1.0, %v6572_v32  ;;  %v979_v47 = vadd.f32 1.0, %v6598_v21  ;;  %v982_v17 = vadd.f32 1.0, %v6638_v51  ;;  %v6772_v32 = vpop.f32.mrb[37].mxu0 }
 0x139   : > { %2831 = vst.msk [vmem:[#allocation2 + $0x48] sm:$0xff] %vm1245_vm2, %v2396_v20  ;;  %v6754_v8 = vsel %vm6706_vm14, %v1095_v36, -inf  ;;  %5774 = vpow2.f32 %v6546_v35  ;;  %v5224_v48 = vmul.f32 -1.442695, %v6562_v55  ;;  %v6760_v2 = vadd.f32 %v6202_v4, %v6520_v19 }
 0x13a   : > { %10036 = vst [vmem:[#allocation33_spill] sm:$0xff] %v6754_v8  ;;  %1297 = vst.msk [vmem:[#allocation2 + $0xc0] sm:$0xff] %vm1245_vm2, %v6754_v8  ;;  %5776 = vrcp.f32 %v980_v46  ;;  %v779_v21 = vmul.f32 %v6490_v5, %v6190_v60  ;;  %v778_v52 = vmul.f32 %v6190_v60, %v6500_v3  ;;  %v781_v35 = vmul.f32 %v6534_v39, %v6190_v60 }
 0x13b   : > { %v10037_v19 = vrot.slane %v6233_v26, 1  ;;  %5778 = vrcp.f32 %v979_v47  ;;  %v780_v5 = vmul.f32 %v6190_v60, %v6548_v49  ;;  %v783_v3 = vmul.f32 %v6574_v14, %v6190_v60  ;;  %v6802_v61 = vpop.f32.mrb[38].mxu0 }
 0x13c   : > { %5780 = vrcp.f32 %v982_v17  ;;  %v5223_v39 = vmul.f32 -1.442695, %v6760_v2  ;;  %v6788_v6 = vadd.f32 %v6202_v4, %v779_v21  ;;  %v6791_v44 = vadd.f32 %v6202_v4, %v778_v52  ;;  %v6815_v11 = vpop.f32.mrb[39].mxu0 }
 0x13d   : > { %v6780_v51 = vsel %vm2353_vm5, %v2315_v38, %v10037_v19  ;;  %v1401_v27 = vld [vmem:[#allocation2 + $0x90] sm:$0xff]  ;;  %5782 = vpow2.f32 %v5224_v48  ;;  %v6794_v53 = vadd.f32 %v6202_v4, %v781_v35  ;;  %v6797_v49 = vadd.f32 %v6202_v4, %v780_v5 }
 0x13e   : > { %v1522_v10 = vld [vmem:[#allocation2 + $0xb0] sm:$0xff]  ;;  %v6800_v14 = vadd.f32 %v6202_v4, %v783_v3  ;;  %v1461_v18 = vmax.f32 %v6619_v43, %v1401_v27  ;;  %v10038_v50 = vmax.f32 %v6558_v33, %v6619_v43  ;;  %v10039_v30 = vmax.f32 %v6569_v59, %v6619_v43  ;;  %v1521_v46 = vld [vmem:[#allocation2 + $0xa8] sm:$0xff] }
 0x13f   : > { %v6813_v54 = vmul.f32 %v6190_v60, %v10040_v63  ;;  %v10041_v4 = vld [vmem:[#allocation29_spill] sm:$0xff]  ;;  %v6821_v15 = vmax.f32 %v1462_v34, %v1522_v10  ;;  %v1700_v33 = vmax.f32 %v6679_v24, %v1522_v10  ;;  %v6824_v58 = vmax.f32 %v1697_v40, %v1522_v10  ;;  %v6855_v19 = vld [vmem:[#allocation2 + $0xc8] sm:$0xff] }
 0x140   : > { %v1578_v41 = vmax.f32 %v10038_v50, %v1401_v27  ;;  %v1814_v25 = vmax.f32 %v10039_v30, %v1401_v27  ;;  %v1696_v56 = vmax.f32 %v10041_v4, %v1401_v27  ;;  %5784 = vpow2.f32 %v5223_v39  ;;  %v10044_v5 = vld [vmem:[#allocation5_spill] sm:$0xff]  ;;  %v10045_v39 = vld [vmem:[#allocation3_spill] sm:$0xff] }
 0x141   : > { %v1891_v60 = vrot.slane %v6824_v58, 7  ;;  %v2175_v0 = vrot.slane %v6824_v58, 2  ;;  %v2316_v36 = vrot.slane %v6824_v58, 1  ;;  %v6829_v7 = vpop.eup %5772  ;;  %v10042_v34 = vrot.slane %v6233_v26, 7 }
 0x142   : > { %v1870_v20 = vrot.slane %v1814_v25, 7  ;;  %v2013_v59 = vrot.slane %v1814_v25, 6  ;;  %v2154_v43 = vrot.slane %v1814_v25, 2  ;;  %v2295_v57 = vrot.slane %v1814_v25, 1 }
 0x143   : > { %v2034_v47 = vrot.slane %v6824_v58, 6  ;;  %v6844_v17 = vpop.eup %5774  ;;  %v10043_v52 = vrot.slane %v6233_v26, 6  ;;  %vm1152_vm0 = vcmp.ge.s32.totalorder %v10044_v5, 0  ;;  %vm1172_vm3 = vcmp.lt.s32.totalorder %v10044_v5, 16 }
 0x144   : > { %v1933_v31 = vsel %vm1930_vm6, %v1870_v20, %v1890_v9  ;;  %v1953_v24 = vsel %vm1930_vm6, %v10042_v34, %v1870_v20  ;;  %v2074_v40 = vsel %vm2071_vm7, %v2013_v59, %v2033_v42  ;;  %v2235_v35 = vsel %vm2212_vm4, %v2154_v43, %v2174_v1  ;;  %v6857_v42 = vld [vmem:[#allocation2 + $0xc0] sm:$0xff]  ;;  %v6861_v3 = vpop.eup %5776  ;;  %vm6929_vm12 = vmand %vm1152_vm0, %vm1172_vm3 }
 0x145   : > { %v1975_v48 = vmax.f32 %v1814_v25, %v1953_v24  ;;  %v1976_v21 = vmax.f32 %v6682_v12, %v1933_v31  ;;  %v2094_v9 = vsel %vm2071_vm7, %v10043_v52, %v2013_v59  ;;  %v2376_v26 = vsel %vm2353_vm5, %v2295_v57, %v2315_v38  ;;  %v6875_v25 = vpop.eup %5778  ;;  %v10048_v59 = vld [vmem:[#allocation7_spill] sm:$0xff]  ;;  %v10049_v31 = vld [vmem:[#allocation16_spill] sm:$0xff] }
 0x146   : > { %v10046_v27 = vrot.slane %v10045_v39, 2  ;;  %v10047_v10 = vrot.slane %v10045_v39, 1  ;;  %v1699_v30 = vmax.f32 %v1578_v41, %v1521_v46  ;;  %v6877_v20 = vmax.f32 %v1461_v18, %v1521_v46  ;;  %v6881_v38 = vpop.eup %5780  ;;  %v10050_v24 = vld [vmem:[#allocation8_spill] sm:$0xff] }
 0x147   : > { %v2116_v63 = vmax.f32 %v1975_v48, %v2094_v9  ;;  %v2117_v4 = vmax.f32 %v1976_v21, %v2074_v40  ;;  %v1817_v12 = vmax.f32 %v1696_v56, %v1521_v46  ;;  %vm1153_vm8 = vcmp.ge.s32.totalorder %v10048_v59, 0  ;;  %v5783_v18 = vpop.eup %5782 }
 0x148   : > { %v2216_v1 = vsel %vm2212_vm4, %v2175_v0, %v10046_v27  ;;  %v2357_v50 = vsel %vm2353_vm5, %v2316_v36, %v10047_v10  ;;  %vm1173_vm9 = vcmp.lt.s32.totalorder %v10048_v59, 16  ;;  %v1703_v43 = vmax.f32 %v6821_v15, %v6855_v19  ;;  %v10066_v59 = vld [vmem:[#allocation20_spill] sm:$0xff] }
 0x149   : > { %v1821_v57 = vmax.f32 %v1700_v33, %v6855_v19  ;;  %v1820_v41 = vmax.f32 %v1699_v30, %v6857_v42  ;;  %v1098_v34 = vmul.f32 %v5771_v29, %v10049_v31  ;;  %vm1154_vm10 = vcmp.ge.s32.totalorder %v10050_v24, 0  ;;  %vm6947_vm13 = vmand %vm1153_vm8, %vm1173_vm9 }
 0x14a   : > { %vm1174_vm11 = vcmp.lt.s32.totalorder %v10050_v24, 16  ;;  %v2257_v56 = vmax.f32 %v2116_v63, %v2235_v35  ;;  %v2258_v46 = vmax.f32 %v2117_v4, %v6737_v13  ;;  %v1871_v40 = vrot.slane %v1817_v12, 7 }
 0x14b   : > { %v2014_v48 = vrot.slane %v1817_v12, 6  ;;  %v2155_v21 = vrot.slane %v1817_v12, 2  ;;  %v2296_v52 = vrot.slane %v1817_v12, 1  ;;  %v1892_v9 = vrot.slane %v1821_v57, 7  ;;  %vm6961_vm14 = vmand %vm1154_vm10, %vm1174_vm11 }
 0x14c   : > { %v2035_v27 = vrot.slane %v1821_v57, 6  ;;  %v2398_v10 = vmax.f32 %v2257_v56, %v2376_v26  ;;  %v2399_v33 = vmax.f32 %v2258_v46, %v6780_v51  ;;  %v1934_v29 = vsel %vm1930_vm6, %v1871_v40, %v1891_v60  ;;  %v5785_v51 = vpop.eup %5784 }
 0x14d   : > { %v10051_v30 = vrot.slane %v10045_v39, 7  ;;  %v1978_v13 = vmax.f32 %v6824_v58, %v1934_v29  ;;  %v2075_v63 = vsel %vm2071_vm7, %v2014_v48, %v2034_v47  ;;  %v10052_v4 = vrot.slane %v10045_v39, 6  ;;  %v10053_v29 = vld [vmem:[#allocation4_spill] sm:$0xff] }
 0x14e   : > { %2833 = vst.msk [vmem:[#allocation2 + $0x60] sm:$0xff] %vm1245_vm2, %v2398_v10  ;;  %2834 = vst.msk [vmem:[#allocation2 + $0x68] sm:$0xff] %vm1245_vm2, %v2399_v33  ;;  %v2236_v60 = vsel %vm2212_vm4, %v2155_v21, %v2175_v0  ;;  %v2176_v58 = vrot.slane %v1821_v57, 2  ;;  %v2317_v56 = vrot.slane %v1821_v57, 1  ;;  %v2015_v39 = vrot.slane %v1820_v41, 6 }
 0x14f   : > { %v1954_v31 = vsel %vm1930_vm6, %v10051_v30, %v1871_v40  ;;  %v2095_v26 = vsel %vm2071_vm7, %v10052_v4, %v2014_v48  ;;  %v2119_v47 = vmax.f32 %v1978_v13, %v2075_v63  ;;  %v1872_v40 = vrot.slane %v1820_v41, 7 }
 0x150   : > { %v1977_v35 = vmax.f32 %v1817_v12, %v1954_v31  ;;  %v2377_v12 = vsel %vm2353_vm5, %v2296_v52, %v2316_v36  ;;  %v10054_v30 = vrot.slane %v10053_v29, 2  ;;  %v10055_v10 = vrot.slane %v10053_v29, 1 }
 0x151   : > { %v2156_v0 = vrot.slane %v1820_v41, 2  ;;  %v2297_v21 = vrot.slane %v1820_v41, 1  ;;  %v2260_v36 = vmax.f32 %v2119_v47, %v2216_v1  ;;  %v1935_v52 = vsel %vm1930_vm6, %v1872_v40, %v1892_v9 }
 0x152   : > { %v2118_v46 = vmax.f32 %v1977_v35, %v2095_v26  ;;  %v2217_v48 = vsel %vm2212_vm4, %v2176_v58, %v10054_v30  ;;  %v2358_v33 = vsel %vm2353_vm5, %v2317_v56, %v10055_v10  ;;  %v10056_v35 = vrot.slane %v10053_v29, 7 }
 0x153   : > { %v1980_v26 = vmax.f32 %v1821_v57, %v1935_v52  ;;  %v2076_v1 = vsel %vm2071_vm7, %v2015_v39, %v2035_v27  ;;  %v10059_v9 = vrot.slane %v10053_v29, 6  ;;  %v2401_v47 = vmax.f32 %v2260_v36, %v2357_v50  ;;  %v10063_v50 = vld [vmem:[#allocation17_spill] sm:$0xff]  ;;  %v10068_v29 = vld [vmem:[#allocation24_spill] sm:$0xff] }
 0x154   : > { %v2259_v31 = vmax.f32 %v2118_v46, %v2236_v60  ;;  %v1955_v13 = vsel %vm1930_vm6, %v10056_v35, %v1872_v40  ;;  %v2237_v40 = vsel %vm2212_vm4, %v2156_v0, %v2176_v58  ;;  %v2378_v5 = vsel %vm2353_vm5, %v2297_v21, %v2317_v56  ;;  %v7002_v52 = vld [vmem:[#allocation2 + $0x90] sm:$0xff]  ;;  %v7004_v35 = vld [vmem:[#allocation2 + $0x98] sm:$0xff] }
 0x155   : > { %v1979_v4 = vmax.f32 %v1820_v41, %v1955_v13  ;;  %v2096_v60 = vsel %vm2071_vm7, %v10059_v9, %v2015_v39  ;;  %v2121_v27 = vmax.f32 %v1980_v26, %v2076_v1  ;;  %v1097_v58 = vmul.f32 %v6829_v7, %v10063_v50  ;;  %2836 = vst.msk [vmem:[#allocation2 + $0x80] sm:$0xff] %vm1245_vm2, %v2401_v47  ;;  %v10067_v39 = vld [vmem:[#allocation21_spill] sm:$0xff]  ;;  %v7023_v9 = vld [vmem:[%s9899_s2] ss:$0 sm:$0xff]  ;;  %v10075_v47 = vld [vmem:[#allocation28_spill] sm:$0xff] }
 0x156   : > { %v2400_v46 = vmax.f32 %v2259_v31, %v2377_v12  ;;  %v6953_v12 = vsel %vm6929_vm12, %v1098_v34, -inf  ;;  %v1100_v34 = vmul.f32 %v6861_v3, %v10066_v59  ;;  %v1099_v7 = vmul.f32 %v6875_v25, %v10067_v39  ;;  %v10077_v50 = vld [vmem:[#allocation31_spill] sm:$0xff] }
 0x157   : > { %v2120_v41 = vmax.f32 %v1979_v4, %v2096_v60  ;;  %10062 = vst [vmem:[#allocation26_spill] sm:$0xff] %v6953_v12  ;;  %1300 = vst.msk [vmem:[#allocation2 + $0xe0] sm:$0xff] %vm1245_vm2, %v6953_v12  ;;  %v1102_v24 = vmul.f32 %v6881_v38, %v10068_v29  ;;  %v981_v30 = vadd.f32 1.0, %v6844_v17  ;;  %v2262_v0 = vmax.f32 %v2121_v27, %v2217_v48  ;;  %v7012_v4 = vld [vmem:[%s9900_s3] ss:$0 sm:$0xff] }
 0x158   : > { %2835 = vst.msk [vmem:[#allocation2 + $0x78] sm:$0xff] %vm1245_vm2, %v2400_v46  ;;  %v6978_v21 = vsel %vm6929_vm12, %v1097_v58, -inf  ;;  %v984_v31 = vadd.f32 1.0, %v5783_v18  ;;  %v6984_v3 = vsel %vm6947_vm13, %v1100_v34, -inf  ;;  %v6988_v25 = vsel %vm6947_vm13, %v1099_v7, -inf  ;;  %v10073_v18 = vld [vmem:[#allocation9_spill] sm:$0xff] }
 0x159   : > { %v2261_v10 = vmax.f32 %v2120_v41, %v2237_v40  ;;  %10069 = vst [vmem:[#allocation29_spill] sm:$0xff] %v6978_v21  ;;  %1299 = vst.msk [vmem:[#allocation2 + $0xd8] sm:$0xff] %vm1245_vm2, %v6978_v21  ;;  %v6992_v17 = vsel %vm6961_vm14, %v1102_v24, -inf  ;;  %5786 = vrcp.f32 %v981_v30  ;;  %v2403_v48 = vmax.f32 %v2262_v0, %v2358_v33  ;;  %v10074_v60 = vld [vmem:[#allocation27_spill] sm:$0xff]  ;;  %v7588_v21 = vld [vmem:[#allocation2 + $0x228] sm:$0xff] }
 0x15a   : > { %10070 = vst [vmem:[#allocation5_spill] sm:$0xff] %v6984_v3  ;;  %10071 = vst [vmem:[#allocation3_spill] sm:$0xff] %v6988_v25  ;;  %5788 = vrcp.f32 %v984_v31  ;;  %vm1155_vm0 = vcmp.ge.s32.totalorder %v10073_v18, 0  ;;  %vm1175_vm3 = vcmp.lt.s32.totalorder %v10073_v18, 16  ;;  %v983_v36 = vadd.f32 1.0, %v5785_v51 }
 0x15b   : > { %10072 = vst [vmem:[#allocation7_spill] sm:$0xff] %v6992_v17  ;;  %v2402_v38 = vmax.f32 %v2261_v10, %v2378_v5  ;;  %1302 = vst.msk [vmem:[#allocation2 + $0xf8] sm:$0xff] %vm1245_vm2, %v6984_v3  ;;  %v5226_v33 = vmul.f32 -1.442695, %v6788_v6  ;;  %v5225_v13 = vmul.f32 -1.442695, %v6791_v44  ;;  %v7016_v26 = vadd.f32 %v7012_v4, %v6813_v54 }
 0x15c   : > { %1301 = vst.msk [vmem:[#allocation2 + $0xf0] sm:$0xff] %vm1245_vm2, %v6988_v25  ;;  %1304 = vst.msk [vmem:[#allocation2 + $0x110] sm:$0xff] %vm1245_vm2, %v6992_v17  ;;  %v5228_v63 = vmul.f32 -1.442695, %v6794_v53  ;;  %5790 = vrcp.f32 %v983_v36  ;;  %v5227_v51 = vmul.f32 -1.442695, %v6797_v49  ;;  %v785_v46 = vmul.f32 %v7023_v9, %v10074_v60 }
 0x15d   : > { %v5230_v1 = vmul.f32 -1.442695, %v6800_v14  ;;  %2837 = vst.msk [vmem:[#allocation2 + $0x90] sm:$0xff] %vm1245_vm2, %v2402_v38  ;;  %2838 = vst.msk [vmem:[#allocation2 + $0x98] sm:$0xff] %vm1245_vm2, %v2403_v48  ;;  %5792 = vpow2.f32 %v5226_v33  ;;  %v5229_v54 = vmul.f32 -1.442695, %v7016_v26  ;;  %v784_v40 = vmul.f32 %v7023_v9, %v10075_v47 }
 0x15e   : > { %v10076_v5 = vld [vmem:[#allocation30_spill] sm:$0xff]  ;;  %v1764_v41 = vld [vmem:[#allocation2 + $0xe0] sm:$0xff]  ;;  %5794 = vpow2.f32 %v5225_v13  ;;  %v7035_v27 = vadd.f32 %v7012_v4, %v785_v46  ;;  %v786_v58 = vmul.f32 %v7023_v9, %v10077_v50  ;;  %v789_v59 = vmul.f32 %v7023_v9, %v6676_v62  ;;  %vm7075_vm8 = vmand %vm1155_vm0, %vm1175_vm3 }
 0x15f   : > { %v787_v57 = vmul.f32 %v7023_v9, %v10076_v5  ;;  %v1824_v34 = vmax.f32 %v1703_v43, %v1764_v41  ;;  %5796 = vpow2.f32 %v5228_v63  ;;  %v7045_v39 = vadd.f32 %v7012_v4, %v784_v40  ;;  %v10081_v40 = vld [vmem:[#allocation25_spill] sm:$0xff] }
 0x160   : > { %v1702_v29 = vmax.f32 %v6877_v20, %v6857_v42  ;;  %v1763_v24 = vld [vmem:[#allocation2 + $0xd8] sm:$0xff]  ;;  %5798 = vpow2.f32 %v5227_v51  ;;  %v5232_v30 = vmul.f32 -1.442695, %v7035_v27  ;;  %v7054_v62 = vadd.f32 %v7012_v4, %v786_v58  ;;  %v7560_v3 = vld [vmem:[#allocation2 + $0x230] sm:$0xff] }
 0x161   : > { %v7048_v7 = vadd.f32 %v7012_v4, %v787_v57  ;;  %v1893_v10 = vrot.slane %v1824_v34, 7  ;;  %v2177_v15 = vrot.slane %v1824_v34, 2  ;;  %v2318_v19 = vrot.slane %v1824_v34, 1  ;;  %v10078_v42 = vld [vmem:[#allocation6_spill] sm:$0xff]  ;;  %v7576_v25 = vld [vmem:[#allocation2 + $0x210] sm:$0xff] }
 0x162   : > { %v7057_v43 = vadd.f32 %v7012_v4, %v789_v59  ;;  %v2036_v0 = vrot.slane %v1824_v34, 6  ;;  %v1823_v31 = vmax.f32 %v1702_v29, %v1763_v24  ;;  %5800 = vpow2.f32 %v5230_v1 }
 0x163   : > { %v5231_v38 = vmul.f32 -1.442695, %v7045_v39  ;;  %v5787_v48 = vpop.eup %5786  ;;  %v10079_v20 = vrot.slane %v10078_v42, 2  ;;  %v10080_v33 = vrot.slane %v10078_v42, 1  ;;  %5802 = vpow2.f32 %v5229_v54 }
 0x164   : > { %v5234_v63 = vmul.f32 -1.442695, %v7048_v7  ;;  %v5789_v51 = vpop.eup %5788  ;;  %v1873_v60 = vrot.slane %v1823_v31, 7  ;;  %v2016_v46 = vrot.slane %v1823_v31, 6  ;;  %v2157_v1 = vrot.slane %v1823_v31, 2 }
 0x165   : > { %v2218_v36 = vsel %vm2212_vm4, %v2177_v15, %v10079_v20  ;;  %v2359_v13 = vsel %vm2353_vm5, %v2318_v19, %v10080_v33  ;;  %v2298_v47 = vrot.slane %v1823_v31, 1  ;;  %v1101_v5 = vmul.f32 %v5787_v48, %v10081_v40 }
 0x166   : > { %v1104_v57 = vmul.f32 %v5789_v51, %v6562_v55  ;;  %5804 = vpow2.f32 %v5232_v30  ;;  %v7080_v54 = vmul.f32 -1.442695, %v7054_v62  ;;  %v5791_v50 = vpop.eup %5790  ;;  %v1936_v58 = vsel %vm1930_vm6, %v1873_v60, %v1893_v10 }
 0x167   : > { %v10084_v59 = vrot.slane %v10078_v42, 7  ;;  %v2077_v18 = vsel %vm2071_vm7, %v2016_v46, %v2036_v0  ;;  %v10085_v29 = vrot.slane %v10078_v42, 6  ;;  %v5793_v30 = vpop.eup %5792  ;;  %v1982_v20 = vmax.f32 %v1824_v34, %v1936_v58 }
 0x168   : > { %v2238_v33 = vsel %vm2212_vm4, %v2157_v1, %v2177_v15  ;;  %v2379_v10 = vsel %vm2353_vm5, %v2298_v47, %v2318_v19  ;;  %v5795_v51 = vpop.eup %5794  ;;  %v7104_v0 = vsel %vm7075_vm8, %v1104_v57, -inf  ;;  %v1103_v42 = vmul.f32 %v5791_v50, %v6760_v2  ;;  %v10088_v15 = vld [vmem:[#allocation10_spill] sm:$0xff]  ;;  %v10090_v50 = vld [vmem:[#allocation11_spill] sm:$0xff] }
 0x169   : > { %v1956_v55 = vsel %vm1930_vm6, %v10084_v59, %v1873_v60  ;;  %v2097_v24 = vsel %vm2071_vm7, %v10085_v29, %v2016_v46  ;;  %v7100_v60 = vsel %vm6961_vm14, %v1101_v5, -inf  ;;  %10087 = vst [vmem:[#allocation8_spill] sm:$0xff] %v7104_v0  ;;  %v986_v46 = vadd.f32 1.0, %v5793_v30  ;;  %1306 = vst.msk [vmem:[#allocation2 + $0x128] sm:$0xff] %vm1245_vm2, %v7104_v0  ;;  %v7551_v0 = vld [vmem:[#allocation2 + $0x218] sm:$0xff] }
 0x16a   : > { %v1981_v48 = vmax.f32 %v1823_v31, %v1956_v55  ;;  %10086 = vst [vmem:[#allocation16_spill] sm:$0xff] %v7100_v60  ;;  %v5797_v31 = vpop.eup %5796  ;;  %v2123_v40 = vmax.f32 %v1982_v20, %v2077_v18  ;;  %1303 = vst.msk [vmem:[#allocation2 + $0x108] sm:$0xff] %vm1245_vm2, %v7100_v60  ;;  %vm1156_vm9 = vcmp.ge.s32.totalorder %v10088_v15, 0  ;;  %vm1176_vm10 = vcmp.lt.s32.totalorder %v10088_v15, 16 }
 0x16b   : > { %v985_v56 = vadd.f32 1.0, %v5795_v51  ;;  %5806 = vpow2.f32 %v5231_v38  ;;  %v5799_v19 = vpop.eup %5798  ;;  %v7115_v2 = vsel %vm7075_vm8, %v1103_v42, -inf  ;;  %v988_v1 = vadd.f32 1.0, %v5797_v31  ;;  %v1375_v31 = vld [vmem:[#allocation2 + $0x190] sm:$0xff]  ;;  %vm7174_vm8 = vmand %vm1156_vm9, %vm1176_vm10 }
 0x16c   : > { %v2122_v34 = vmax.f32 %v1981_v48, %v2097_v24  ;;  %10089 = vst [vmem:[#allocation4_spill] sm:$0xff] %v7115_v2  ;;  %5808 = vrcp.f32 %v986_v46  ;;  %v788_v47 = vmul.f32 %v7023_v9, %v6692_v23  ;;  %v2264_v57 = vmax.f32 %v2123_v40, %v2218_v36  ;;  %1305 = vst.msk [vmem:[#allocation2 + $0x120] sm:$0xff] %vm1245_vm2, %v7115_v2  ;;  %v5801_v58 = vpop.eup %5800  ;;  %v10091_v24 = vld [vmem:[#allocation12_spill] sm:$0xff]  ;;  %v10092_v40 = vld [vmem:[#allocation13_spill] sm:$0xff] }
 0x16d   : > { %5810 = vrcp.f32 %v985_v56  ;;  %vm1157_vm11 = vcmp.ge.s32.totalorder %v10090_v50, 0  ;;  %vm1177_vm12 = vcmp.lt.s32.totalorder %v10090_v50, 16  ;;  %v987_v38 = vadd.f32 1.0, %v5799_v19  ;;  %v5803_v36 = vpop.eup %5802 }
 0x16e   : > { %v2263_v5 = vmax.f32 %v2122_v34, %v2238_v33  ;;  %5812 = vrcp.f32 %v988_v1  ;;  %v7124_v41 = vadd.f32 %v7012_v4, %v788_v47  ;;  %v791_v59 = vmul.f32 %v7023_v9, %v6719_v45  ;;  %v7136_v45 = vld [vmem:[#allocation2 + $0xa8] sm:$0xff]  ;;  %v7138_v33 = vld [vmem:[#allocation2 + $0xb0] sm:$0xff]  ;;  %vm7188_vm9 = vmand %vm1157_vm11, %vm1177_vm12 }
 0x16f   : > { %v790_v23 = vmul.f32 %v7023_v9, %v6729_v22  ;;  %v2405_v18 = vmax.f32 %v2264_v57, %v2359_v13  ;;  %5814 = vrcp.f32 %v987_v38  ;;  %v990_v29 = vadd.f32 1.0, %v5801_v58  ;;  %v1378_v34 = vld [vmem:[#allocation2 + $0x1a8] sm:$0xff]  ;;  %v10103_v58 = vld [vmem:[#allocation14_spill] sm:$0xff] }
 0x170   : > { %v2404_v55 = vmax.f32 %v2263_v5, %v2379_v10  ;;  %vm1158_vm13 = vcmp.ge.s32.totalorder %v10091_v24, 0  ;;  %vm1178_vm14 = vcmp.lt.s32.totalorder %v10091_v24, 16  ;;  %v989_v30 = vadd.f32 1.0, %v5803_v36  ;;  %v5805_v22 = vpop.eup %5804  ;;  %v1384_v36 = vld [vmem:[#allocation2 + $0x1d8] sm:$0xff] }
 0x171   : > { %5816 = vpow2.f32 %v5234_v63  ;;  %v5236_v48 = vmul.f32 -1.442695, %v7057_v43  ;;  %v7134_v20 = vadd.f32 %v7012_v4, %v791_v59  ;;  %v7141_v13 = vadd.f32 %v7012_v4, %v790_v23  ;;  %2840 = vst.msk [vmem:[#allocation2 + $0xb0] sm:$0xff] %vm1245_vm2, %v2405_v18  ;;  %v1381_v23 = vld [vmem:[#allocation2 + $0x1c0] sm:$0xff]  ;;  %vm7215_vm10 = vmand %vm1158_vm13, %vm1178_vm14 }
 0x172   : > { %5818 = vrcp.f32 %v990_v29  ;;  %v793_v10 = vmul.f32 %v7023_v9, %v6762_v28  ;;  %v792_v63 = vmul.f32 %v7023_v9, %v6772_v32  ;;  %2839 = vst.msk [vmem:[#allocation2 + $0xa8] sm:$0xff] %vm1245_vm2, %v2404_v55  ;;  %v992_v51 = vadd.f32 1.0, %v5805_v22  ;;  %v1445_v29 = vld [vmem:[#allocation2 + $0x1f0] sm:$0xff] }
 0x173   : > { %5820 = vrcp.f32 %v989_v30  ;;  %v5235_v42 = vmul.f32 -1.442695, %v7124_v41  ;;  %v795_v46 = vmul.f32 %v7023_v9, %v6802_v61  ;;  %vm1159_vm0 = vcmp.ge.s32.totalorder %v10092_v40, 0 }
 0x174   : > { %vm1179_vm3 = vcmp.lt.s32.totalorder %v10092_v40, 16  ;;  %5822 = vpow2.f32 %v7080_v54  ;;  %v5238_v28 = vmul.f32 -1.442695, %v7134_v20  ;;  %v7157_v32 = vadd.f32 %v7012_v4, %v793_v10 }
 0x175   : > { %v7160_v56 = vadd.f32 %v7012_v4, %v792_v63  ;;  %5824 = vrcp.f32 %v992_v51  ;;  %v5237_v19 = vmul.f32 -1.442695, %v7141_v13  ;;  %v7164_v61 = vadd.f32 %v7012_v4, %v795_v46  ;;  %v5807_v47 = vpop.eup %5806  ;;  %vm7239_vm13 = vmand %vm1159_vm0, %vm1179_vm3 }
 0x176   : > { %v794_v1 = vmul.f32 %v7023_v9, %v6815_v11  ;;  %5826 = vpow2.f32 %v5236_v48  ;;  %v5240_v54 = vmul.f32 -1.442695, %v7157_v32  ;;  %v1496_v57 = vmax.f32 %v1375_v31, %v1378_v34  ;;  %v5809_v38 = vpop.eup %5808 }
 0x177   : > { %v5239_v5 = vmul.f32 -1.442695, %v7160_v56  ;;  %v991_v59 = vadd.f32 1.0, %v5807_v47  ;;  %5828 = vpow2.f32 %v5235_v42  ;;  %v5242_v11 = vmul.f32 -1.442695, %v7164_v61  ;;  %v5811_v55 = vpop.eup %5810 }
 0x178   : > { %v7180_v9 = vadd.f32 %v7012_v4, %v794_v1  ;;  %v1106_v18 = vmul.f32 %v5809_v38, %v6788_v6  ;;  %5830 = vpow2.f32 %v5238_v28  ;;  %v1499_v30 = vmax.f32 %v1378_v34, %v1381_v23  ;;  %v5813_v48 = vpop.eup %5812 }
 0x179   : > { %v1502_v15 = vmax.f32 %v1381_v23, %v1384_v36  ;;  %v1105_v22 = vmul.f32 %v5811_v55, %v6791_v44  ;;  %5832 = vrcp.f32 %v991_v59  ;;  %v1505_v63 = vmax.f32 %v1384_v36, %v1445_v29  ;;  %v5815_v6 = vpop.eup %5814  ;;  %v1565_v44 = vld [vmem:[#allocation2 + $0x208] sm:$0xff]  ;;  %v1686_v59 = vld [vmem:[#allocation2 + $0x220] sm:$0xff] }
 0x17a   : > { %v5241_v4 = vmul.f32 -1.442695, %v7180_v9  ;;  %v7195_v51 = vsel %vm7174_vm8, %v1106_v18, -inf  ;;  %v1108_v42 = vmul.f32 %v5813_v48, %v6794_v53  ;;  %5834 = vpow2.f32 %v5237_v19 }
 0x17b   : > { %10097 = vst [vmem:[#allocation17_spill] sm:$0xff] %v7195_v51  ;;  %v1616_v46 = vmax.f32 %v1496_v57, %v1381_v23  ;;  %v5817_v31 = vpop.eup %5816  ;;  %1308 = vst.msk [vmem:[#allocation2 + $0x140] sm:$0xff] %vm1245_vm2, %v7195_v51  ;;  %v7202_v50 = vsel %vm7174_vm8, %v1105_v22, -inf  ;;  %v1107_v34 = vmul.f32 %v5815_v6, %v6797_v49  ;;  %5836 = vpow2.f32 %v5240_v54 }
 0x17c   : > { %10098 = vst [vmem:[#allocation20_spill] sm:$0xff] %v7202_v50  ;;  %v1619_v28 = vmax.f32 %v1499_v30, %v1384_v36  ;;  %v5819_v1 = vpop.eup %5818  ;;  %1307 = vst.msk [vmem:[#allocation2 + $0x138] sm:$0xff] %vm1245_vm2, %v7202_v50  ;;  %v7209_v53 = vsel %vm7188_vm9, %v1108_v42, -inf  ;;  %v994_v47 = vadd.f32 1.0, %v5817_v31  ;;  %5838 = vpow2.f32 %v5239_v5 }
 0x17d   : > { %10099 = vst [vmem:[#allocation21_spill] sm:$0xff] %v7209_v53  ;;  %v1622_v49 = vmax.f32 %v1502_v15, %v1445_v29  ;;  %v5821_v54 = vpop.eup %5820  ;;  %1310 = vst.msk [vmem:[#allocation2 + $0x158] sm:$0xff] %vm1245_vm2, %v7209_v53  ;;  %v7223_v57 = vsel %vm7188_vm9, %v1107_v34, -inf  ;;  %v1110_v38 = vmul.f32 %v5819_v1, %v6800_v14  ;;  %vm1160_vm11 = vcmp.ge.s32.totalorder %v10103_v58, 0 }
 0x17e   : > { %10102 = vst [vmem:[#allocation24_spill] sm:$0xff] %v7223_v57  ;;  %vm1180_vm12 = vcmp.lt.s32.totalorder %v10103_v58, 16  ;;  %5840 = vpow2.f32 %v5242_v11  ;;  %v1625_v24 = vmax.f32 %v1505_v63, %v1565_v44  ;;  %v5823_v23 = vpop.eup %5822  ;;  %1309 = vst.msk [vmem:[#allocation2 + $0x150] sm:$0xff] %vm1245_vm2, %v7223_v57  ;;  %v1109_v5 = vmul.f32 %v5821_v54, %v7016_v26  ;;  %v1807_v26 = vld [vmem:[#allocation2 + $0x238] sm:$0xff]  ;;  %v7301_v11 = vld [vmem:[#allocation2 + $0xe8] sm:$0xff] }
 0x17f   : > { %5842 = vrcp.f32 %v994_v47  ;;  %v1737_v55 = vmax.f32 %v1616_v46, %v1384_v36  ;;  %v1740_v18 = vmax.f32 %v1619_v28, %v1445_v29  ;;  %v5825_v30 = vpop.eup %5824  ;;  %v7233_v14 = vsel %vm7215_vm10, %v1110_v38, -inf  ;;  %v10108_v28 = vld [vmem:[#allocation15_spill] sm:$0xff] }
 0x180   : > { %10104 = vst [vmem:[#allocation9_spill] sm:$0xff] %v7233_v14  ;;  %v993_v15 = vadd.f32 1.0, %v5823_v23  ;;  %5844 = vpow2.f32 %v5241_v4  ;;  %v1743_v48 = vmax.f32 %v1622_v49, %v1565_v44  ;;  %v5827_v22 = vpop.eup %5826  ;;  %1312 = vst.msk [vmem:[#allocation2 + $0x170] sm:$0xff] %vm1245_vm2, %v7233_v14  ;;  %v7247_v36 = vsel %vm7215_vm10, %v1109_v5, -inf  ;;  %v10113_v58 = vld [vmem:[#allocation23_spill] sm:$0xff] }
 0x181   : > { %10107 = vst [vmem:[#allocation27_spill] sm:$0xff] %v7247_v36  ;;  %v1112_v10 = vmul.f32 %v5825_v30, %v7035_v27  ;;  %v1746_v63 = vmax.f32 %v1625_v24, %v1686_v59  ;;  %v7250_v40 = vmax.f32 %v1737_v55, %v1445_v29  ;;  %v5829_v6 = vpop.eup %5828  ;;  %1311 = vst.msk [vmem:[#allocation2 + $0x168] sm:$0xff] %vm1245_vm2, %v7247_v36  ;;  %v996_v4 = vadd.f32 1.0, %v5827_v22  ;;  %v10109_v24 = vld [vmem:[#allocation18_spill] sm:$0xff] }
 0x182   : > { %5846 = vrcp.f32 %v993_v15  ;;  %v7254_v42 = vmax.f32 %v1740_v18, %v1565_v44  ;;  %v7256_v46 = vmax.f32 %v1743_v48, %v1686_v59  ;;  %v5831_v31 = vpop.eup %5830  ;;  %vm1161_vm14 = vcmp.ge.s32.totalorder %v10108_v28, 0 }
 0x183   : > { %v1234_v34 = vsel %vm7239_vm13, %v1112_v10, -inf  ;;  %vm1181_vm0 = vcmp.lt.s32.totalorder %v10108_v28, 16  ;;  %v995_v27 = vadd.f32 1.0, %v5829_v6  ;;  %v7262_v29 = vmax.f32 %v1746_v63, %v1807_v26  ;;  %v5833_v19 = vpop.eup %5832  ;;  %v7349_v28 = vld [vmem:[#allocation2 + $0xd0] sm:$0xff] }
 0x184   : > { %1314 = vst.msk [vmem:[#allocation2 + $0x188] sm:$0xff] %vm1245_vm2, %v1234_v34  ;;  %5848 = vrcp.f32 %v996_v4  ;;  %v998_v44 = vadd.f32 1.0, %v5831_v31  ;;  %v5835_v54 = vpop.eup %5834  ;;  %v1111_v38 = vmul.f32 %v5833_v19, %v7045_v39  ;;  %vm1162_vm3 = vcmp.ge.s32.totalorder %v10109_v24, 0  ;;  %v1368_v63 = vld [vmem:[#allocation2 + $0x158] sm:$0xff]  ;;  %vm7333_vm1 = vmand %vm1161_vm14, %vm1181_vm0 }
 0x185   : > { %5850 = vrcp.f32 %v995_v27  ;;  %vm1182_vm8 = vcmp.lt.s32.totalorder %v10109_v24, 16  ;;  %v5837_v5 = vpop.eup %5836  ;;  %v997_v55 = vadd.f32 1.0, %v5835_v54  ;;  %v10110_v4 = vld [vmem:[#allocation22_spill] sm:$0xff]  ;;  %v1367_v19 = vld [vmem:[#allocation2 + $0x150] sm:$0xff]  ;;  %v1465_v26 = vmax.f32 %v7004_v35, %v7138_v33 }
 0x186   : > { %5852 = vrcp.f32 %v998_v44  ;;  %v5839_v15 = vpop.eup %5838  ;;  %v1233_v39 = vsel %vm7239_vm13, %v1111_v38, -inf  ;;  %v1000_v48 = vadd.f32 1.0, %v5837_v5  ;;  %vm1163_vm9 = vcmp.ge.s32.totalorder %v10110_v4, 0  ;;  %vm7293_vm13 = vmand %vm1160_vm11, %vm1180_vm12  ;;  %v7377_v38 = vld [vmem:[#allocation2 + $0xf8] sm:$0xff] }
 0x187   : > { %v7279_v6 = vld [vmem:[#allocation2 + $0x170] sm:$0xff]  ;;  %1313 = vst.msk [vmem:[#allocation2 + $0x180] sm:$0xff] %vm1245_vm2, %v1233_v39  ;;  %5854 = vrcp.f32 %v997_v55  ;;  %vm1183_vm10 = vcmp.lt.s32.totalorder %v10110_v4, 16  ;;  %v999_v31 = vadd.f32 1.0, %v5839_v15  ;;  %vm1164_vm11 = vcmp.ge.s32.totalorder %v10113_v58, 0  ;;  %vm7371_vm14 = vmand %vm1162_vm3, %vm1182_vm8 }
 0x188   : > { %v5841_v10 = vpop.eup %5840  ;;  %v1489_v44 = vmax.f32 %v1368_v63, %v7279_v6  ;;  %v7287_v54 = vld [vmem:[#allocation2 + $0x168] sm:$0xff]  ;;  %5856 = vrcp.f32 %v1000_v48  ;;  %vm1184_vm12 = vcmp.lt.s32.totalorder %v10113_v58, 16  ;;  %vm7401_vm0 = vmand %vm1163_vm9, %vm1183_vm10 }
 0x189   : > { %v5843_v27 = vpop.eup %5842  ;;  %v1002_v5 = vadd.f32 1.0, %v5841_v10  ;;  %v1488_v39 = vmax.f32 %v1367_v19, %v7287_v54  ;;  %5858 = vrcp.f32 %v999_v31  ;;  %v7309_v19 = vld [vmem:[#allocation2 + $0xc0] sm:$0xff]  ;;  %v1464_v10 = vmax.f32 %v7002_v52, %v7136_v45 }
 0x18a   : > { %v5845_v15 = vpop.eup %5844  ;;  %v1114_v34 = vmul.f32 %v5843_v27, %v7048_v7  ;;  %v7311_v7 = vld [vmem:[#allocation2 + $0xc8] sm:$0xff]  ;;  %v10116_v52 = vld [vmem:[#allocation19_spill] sm:$0xff]  ;;  %v1467_v35 = vmax.f32 %v7136_v45, %v7309_v19 }
 0x18b   : > { %v7303_v22 = vld [vmem:[#allocation2 + $0x188] sm:$0xff]  ;;  %5860 = vrcp.f32 %v1002_v5  ;;  %v1001_v48 = vadd.f32 1.0, %v5845_v15  ;;  %v7347_v15 = vld [vmem:[#allocation2 + $0xb8] sm:$0xff]  ;;  %v1584_v45 = vmax.f32 %v1464_v10, %v7309_v19  ;;  %v1585_v47 = vmax.f32 %v1465_v26, %v7311_v7  ;;  %v7375_v26 = vld [vmem:[#allocation2 + $0xf0] sm:$0xff] }
 0x18c   : > { %v5847_v31 = vpop.eup %5846  ;;  %v1492_v27 = vmax.f32 %v7279_v6, %v7303_v22  ;;  %v7316_v63 = vmax.f32 %v1489_v44, %v7303_v22  ;;  %v1236_v5 = vsel %vm7293_vm13, %v1114_v34, -inf  ;;  %v7327_v6 = vld [vmem:[#allocation2 + $0x100] sm:$0xff] }
 0x18d   : > { %1316 = vst.msk [vmem:[#allocation2 + $0x1a0] sm:$0xff] %vm1245_vm2, %v1236_v5  ;;  %v1113_v55 = vmul.f32 %v5847_v31, %v7054_v62  ;;  %5862 = vrcp.f32 %v1001_v48  ;;  %v7337_v5 = vld [vmem:[#allocation2 + $0xd8] sm:$0xff]  ;;  %v7339_v62 = vld [vmem:[#allocation2 + $0xe0] sm:$0xff]  ;;  %v1707_v48 = vmax.f32 %v10116_v52, %v7301_v11  ;;  %v1468_v31 = vmax.f32 %v7138_v33, %v7311_v7 }
 0x18e   : > { %v5849_v44 = vpop.eup %5848  ;;  %v7353_v59 = vld [vmem:[#allocation2 + $0x180] sm:$0xff]  ;;  %v1706_v24 = vmax.f32 %v1585_v47, %v7339_v62  ;;  %v7415_v4 = vmax.f32 %v1467_v35, %v7337_v5 }
 0x18f   : > { %v5851_v18 = vpop.eup %5850  ;;  %v1235_v49 = vsel %vm7293_vm13, %v1113_v55, -inf  ;;  %v1116_v52 = vmul.f32 %v5849_v44, %v7057_v43  ;;  %v1491_v23 = vmax.f32 %v7287_v54, %v7353_v59  ;;  %v7363_v1 = vmax.f32 %v1488_v39, %v7353_v59 }
 0x190   : > { %v5853_v33 = vpop.eup %5852  ;;  %1315 = vst.msk [vmem:[#allocation2 + $0x198] sm:$0xff] %vm1245_vm2, %v1235_v49  ;;  %v1115_v30 = vmul.f32 %v5851_v18, %v7124_v41  ;;  %v7380_v54 = vmax.f32 %v1707_v48, %v7327_v6  ;;  %v1705_v18 = vmax.f32 %v1584_v45, %v7337_v5 }
 0x191   : > { %v1238_v49 = vsel %vm7333_vm1, %v1116_v52, -inf  ;;  %v1118_v41 = vmul.f32 %v5853_v33, %v7134_v20  ;;  %v5855_v55 = vpop.eup %5854  ;;  %v7409_v52 = vmax.f32 %v1706_v24, %v7377_v38 }
 0x192   : > { %1318 = vst.msk [vmem:[#allocation2 + $0x1b8] sm:$0xff] %vm1245_vm2, %v1238_v49  ;;  %v1237_v39 = vsel %vm7333_vm1, %v1115_v30, -inf  ;;  %v1914_v10 = vrot.slane %v7380_v54, 7  ;;  %v5857_v14 = vpop.eup %5856  ;;  %v1117_v47 = vmul.f32 %v5855_v55, %v7141_v13  ;;  %v7406_v34 = vmax.f32 %v1705_v18, %v7375_v26  ;;  %vm7433_vm1 = vmand %vm1164_vm11, %vm1184_vm12 }
 0x193   : > { %1317 = vst.msk [vmem:[#allocation2 + $0x1b0] sm:$0xff] %vm1245_vm2, %v1237_v39  ;;  %v1240_v20 = vsel %vm7371_vm14, %v1118_v41, -inf  ;;  %v5859_v45 = vpop.eup %5858  ;;  %v1120_v13 = vmul.f32 %v5857_v14, %v7157_v32  ;;  %v7418_v41 = vmax.f32 %v1468_v31, %v7339_v62  ;;  %v1894_v43 = vrot.slane %v7409_v52, 7 }
 0x194   : > { %v1377_v33 = vld [vmem:[#allocation2 + $0x1a0] sm:$0xff]  ;;  %1320 = vst.msk [vmem:[#allocation2 + $0x1d0] sm:$0xff] %vm1245_vm2, %v1240_v20  ;;  %v1239_v48 = vsel %vm7371_vm14, %v1117_v47, -inf  ;;  %v1119_v14 = vmul.f32 %v5859_v45, %v7160_v56 }
 0x195   : > { %v5861_v55 = vpop.eup %5860  ;;  %v1495_v18 = vmax.f32 %v7303_v22, %v1377_v33  ;;  %v1612_v39 = vmax.f32 %v1492_v27, %v1377_v33  ;;  %v1730_v24 = vmax.f32 %v7316_v63, %v1377_v33  ;;  %1319 = vst.msk [vmem:[#allocation2 + $0x1c8] sm:$0xff] %vm1245_vm2, %v1239_v48  ;;  %v1242_v32 = vsel %vm7401_vm0, %v1120_v13, -inf  ;;  %v1283_v13 = vld [vmem:[%s9901_s4] sm:$0x3] }
 0x196   : > { %v1122_v35 = vmul.f32 %v5861_v55, %v7164_v61  ;;  %v1874_v63 = vrot.slane %v7406_v34, 7  ;;  %1322 = vst.msk [vmem:[#allocation2 + $0x1e8] sm:$0xff] %vm1245_vm2, %v1242_v32  ;;  %v1241_v45 = vsel %vm7401_vm0, %v1119_v14, -inf  ;;  %5533 = vmatprep.subr.msk.mxu1 %vm2484_vm15, %v1283_v13 }
 0x197   : > { %v5863_v27 = vpop.eup %5862  ;;  %v7438_v31 = vld [vmem:[#allocation2 + $0x198] sm:$0xff]  ;;  %1321 = vst.msk [vmem:[#allocation2 + $0x1e0] sm:$0xff] %vm1245_vm2, %v1241_v45 }
 0x198   : > { %v1494_v58 = vmax.f32 %v7353_v59, %v7438_v31  ;;  %v1611_v20 = vmax.f32 %v1491_v23, %v7438_v31  ;;  %v1729_v47 = vmax.f32 %v7363_v1, %v7438_v31  ;;  %v1244_v32 = vsel %vm7433_vm1, %v1122_v35, -inf }
 0x199   : > { %v1380_v55 = vld [vmem:[#allocation2 + $0x1b8] sm:$0xff]  ;;  %v1121_v59 = vmul.f32 %v5863_v27, %v7180_v9  ;;  %v7461_v23 = vsel %vm1930_vm6, %v1874_v63, %v1894_v43  ;;  %v7465_v1 = vsel %vm1930_vm6, %v1914_v10, %v1874_v63  ;;  %1324 = vst.msk [vmem:[#allocation2 + $0x200] sm:$0xff] %vm1245_vm2, %v1244_v32 }
 0x19a   : > { %v1498_v30 = vmax.f32 %v1377_v33, %v1380_v55  ;;  %v1615_v14 = vmax.f32 %v1495_v18, %v1380_v55  ;;  %v1733_v49 = vmax.f32 %v1612_v39, %v1380_v55  ;;  %v7468_v48 = vmax.f32 %v1730_v24, %v1380_v55  ;;  %v7470_v45 = vld [vmem:[#allocation2 + $0x1b0] sm:$0xff] }
 0x19b   : > { %v1614_v9 = vmax.f32 %v1494_v58, %v7470_v45  ;;  %v1732_v35 = vmax.f32 %v1611_v20, %v7470_v45  ;;  %v7476_v27 = vmax.f32 %v1729_v47, %v7470_v45  ;;  %v1383_v10 = vld [vmem:[#allocation2 + $0x1d0] sm:$0xff]  ;;  %v1243_v63 = vsel %vm7433_vm1, %v1121_v59, -inf }
 0x19c   : > { %10123 = vst [vmem:[#allocation28_spill] sm:$0xff] %v7468_v48  ;;  %v1902_v33 = vrot.slane %v7468_v48, 7  ;;  %v2045_v18 = vrot.slane %v7468_v48, 6  ;;  %v9934_v39 = vrot.slane %v7468_v48, 2  ;;  %v9937_v24 = vrot.slane %v7468_v48, 1  ;;  %1323 = vst.msk [vmem:[#allocation2 + $0x1f8] sm:$0xff] %vm1245_vm2, %v1243_v63 }
 0x19d   : > { %10124 = vst [vmem:[#allocation30_spill] sm:$0xff] %v7476_v27  ;;  %v9932_v43 = vrot.slane %v7476_v27, 7  ;;  %v9933_v58 = vrot.slane %v7476_v27, 6  ;;  %v2166_v20 = vrot.slane %v7476_v27, 2  ;;  %v2307_v47 = vrot.slane %v7476_v27, 1  ;;  %v1675_v44 = vld [vmem:[#allocation2 + $0x1c8] sm:$0xff] }
 0x19e   : > { %v1501_v22 = vmax.f32 %v1380_v55, %v1383_v10  ;;  %v1618_v13 = vmax.f32 %v1498_v30, %v1383_v10  ;;  %v1736_v32 = vmax.f32 %v1615_v14, %v1383_v10  ;;  %v7489_v59 = vmax.f32 %v1733_v49, %v1383_v10  ;;  %v1444_v30 = vld [vmem:[#allocation2 + $0x1e8] sm:$0xff]  ;;  %v1796_v50 = vld [vmem:[#allocation2 + $0x1e0] sm:$0xff] }
 0x19f   : > { %v1945_v56 = vsel %vm1930_vm6, %v9932_v43, %v1902_v33  ;;  %v2086_v63 = vsel %vm2071_vm7, %v9933_v58, %v2045_v18  ;;  %v7503_v55 = vsel %vm2212_vm4, %v2166_v20, %v9934_v39  ;;  %v7509_v49 = vsel %vm2353_vm5, %v2307_v47, %v9937_v24 }
 0x1a0   : > { %10125 = vst [vmem:[#allocation31_spill] sm:$0xff] %v7489_v59  ;;  %10126 = vst [vmem:[#allocation6_spill] sm:$0xff] %v7503_v55  ;;  %v2000_v14 = vmax.f32 %v7468_v48, %v1945_v56  ;;  %v1903_v33 = vrot.slane %v7489_v59, 7  ;;  %v2046_v43 = vrot.slane %v7489_v59, 6  ;;  %v1735_v61 = vmax.f32 %v1614_v9, %v1675_v44  ;;  %v1564_v58 = vld [vmem:[#allocation2 + $0x200] sm:$0xff] }
 0x1a1   : > { %10127 = vst [vmem:[#allocation25_spill] sm:$0xff] %v7509_v49  ;;  %v7516_v20 = vmax.f32 %v1732_v35, %v1675_v44  ;;  %v1504_v39 = vmax.f32 %v1383_v10, %v1444_v30  ;;  %v1621_v53 = vmax.f32 %v1501_v22, %v1444_v30  ;;  %v1739_v47 = vmax.f32 %v1618_v13, %v1444_v30 }
 0x1a2   : > { %v7518_v36 = vmax.f32 %v2000_v14, %v2086_v63  ;;  %v7520_v24 = vmax.f32 %v1736_v32, %v1444_v30  ;;  %v10130_v63 = vrot.slane %v7489_v59, 2  ;;  %v10132_v14 = vrot.slane %v7489_v59, 1 }
 0x1a3   : > { %10128 = vst [vmem:[#allocation10_spill] sm:$0xff] %v7516_v20  ;;  %v9941_v56 = vrot.slane %v7516_v20, 7  ;;  %v9944_v57 = vrot.slane %v7516_v20, 6  ;;  %v2167_v51 = vrot.slane %v7516_v20, 2  ;;  %v2308_v18 = vrot.slane %v7516_v20, 1 }
 0x1a4   : > { %10129 = vst [vmem:[#allocation11_spill] sm:$0xff] %v7518_v36  ;;  %v1904_v9 = vrot.slane %v7520_v24, 7  ;;  %v2047_v35 = vrot.slane %v7520_v24, 6  ;;  %v1742_v2 = vmax.f32 %v1621_v53, %v1564_v58 }
 0x1a5   : > { %v1946_v13 = vsel %vm1930_vm6, %v9941_v56, %v1903_v33  ;;  %v2087_v32 = vsel %vm2071_vm7, %v9944_v57, %v2046_v43  ;;  %v7542_v30 = vsel %vm2212_vm4, %v2167_v51, %v10130_v63  ;;  %v7548_v22 = vsel %vm2353_vm5, %v2308_v18, %v10132_v14 }
 0x1a6   : > { %10131 = vst [vmem:[#allocation12_spill] sm:$0xff] %v7542_v30  ;;  %10133 = vst [vmem:[#allocation13_spill] sm:$0xff] %v7548_v22  ;;  %v2002_v10 = vmax.f32 %v7489_v59, %v1946_v13  ;;  %v1856_v33 = vmax.f32 %v1735_v61, %v1796_v50  ;;  %v1624_v56 = vmax.f32 %v1504_v39, %v1564_v58  ;;  %v1563_v61 = vld [vmem:[#allocation2 + $0x1f8] sm:$0xff]  ;;  %v10140_v30 = vrot.slane %v7256_v46, 7 }
 0x1a7   : > { %v7553_v43 = vmax.f32 %v1739_v47, %v1564_v58  ;;  %v1497_v57 = vmax.f32 %v7438_v31, %v7470_v45  ;;  %v1500_v51 = vmax.f32 %v7470_v45, %v1675_v44  ;;  %v1503_v63 = vmax.f32 %v1675_v44, %v1796_v50 }
 0x1a8   : > { %v7558_v17 = vmax.f32 %v2002_v10, %v2087_v32  ;;  %v1884_v60 = vrot.slane %v1856_v33, 7  ;;  %v2027_v18 = vrot.slane %v1856_v33, 6  ;;  %v2168_v14 = vrot.slane %v1856_v33, 2 }
 0x1a9   : > { %v2309_v39 = vrot.slane %v1856_v33, 1  ;;  %v1745_v13 = vmax.f32 %v1624_v56, %v7551_v0  ;;  %v7564_v53 = vmax.f32 %v1742_v2, %v7551_v0  ;;  %v1617_v58 = vmax.f32 %v1497_v57, %v1675_v44 }
 0x1aa   : > { %10134 = vst [vmem:[#allocation14_spill] sm:$0xff] %v7558_v17  ;;  %v1947_v31 = vsel %vm1930_vm6, %v1884_v60, %v1904_v9  ;;  %v2088_v45 = vsel %vm2071_vm7, %v2027_v18, %v2047_v35  ;;  %v10135_v47 = vrot.slane %v7520_v24, 2  ;;  %v1620_v32 = vmax.f32 %v1500_v51, %v1796_v50 }
 0x1ab   : > { %v2004_v56 = vmax.f32 %v7520_v24, %v1947_v31  ;;  %v10136_v2 = vrot.slane %v7520_v24, 1  ;;  %v7586_v44 = vmax.f32 %v1745_v13, %v7560_v3  ;;  %v1623_v9 = vmax.f32 %v1503_v63, %v1563_v61 }
 0x1ac   : > { %v7574_v10 = vsel %vm2212_vm4, %v2168_v14, %v10135_v47  ;;  %v1738_v35 = vmax.f32 %v1617_v58, %v1796_v50  ;;  %v1741_v12 = vmax.f32 %v1620_v32, %v1563_v61  ;;  %v1905_v51 = vrot.slane %v7553_v43, 7 }
 0x1ad   : > { %v7583_v57 = vsel %vm2353_vm5, %v2309_v39, %v10136_v2  ;;  %v1906_v14 = vrot.slane %v7564_v53, 7  ;;  %v7592_v47 = vmax.f32 %v2004_v56, %v2088_v45  ;;  %v1744_v31 = vmax.f32 %v1623_v9, %v7576_v25 }
 0x1ae   : > { %v1907_v37 = vrot.slane %v7586_v44, 7  ;;  %v10137_v39 = vrot.slane %v7250_v40, 7  ;;  %v7600_v63 = vmax.f32 %v1738_v35, %v1563_v61  ;;  %v7603_v50 = vmax.f32 %v1741_v12, %v7576_v25 }
 0x1af   : > { %v2048_v32 = vrot.slane %v7553_v43, 6  ;;  %v7607_v45 = vmax.f32 %v1744_v31, %v7588_v21  ;;  %v2049_v56 = vrot.slane %v7564_v53, 6  ;;  %v2050_v2 = vrot.slane %v7586_v44, 6 }
 0x1b0   : > { %v1967_v13 = vsel %vm1930_vm6, %v10137_v39, %v1884_v60  ;;  %v10138_v9 = vrot.slane %v7250_v40, 6  ;;  %v1885_v61 = vrot.slane %v7600_v63, 7  ;;  %v1886_v12 = vrot.slane %v7603_v50, 7 }
 0x1b1   : > { %v2003_v58 = vmax.f32 %v1856_v33, %v1967_v13  ;;  %v2028_v33 = vrot.slane %v7600_v63, 6  ;;  %v2029_v35 = vrot.slane %v7603_v50, 6  ;;  %v1887_v31 = vrot.slane %v7607_v45, 7 }
 0x1b2   : > { %v2108_v60 = vsel %vm2071_vm7, %v10138_v9, %v2027_v18  ;;  %v2030_v39 = vrot.slane %v7607_v45, 6  ;;  %v2169_v8 = vrot.slane %v7600_v63, 2  ;;  %v1948_v22 = vsel %vm1930_vm6, %v1885_v61, %v1905_v51 }
 0x1b3   : > { %v2144_v13 = vmax.f32 %v2003_v58, %v2108_v60  ;;  %v1949_v18 = vsel %vm1930_vm6, %v1886_v12, %v1906_v14  ;;  %v10139_v9 = vrot.slane %v7254_v42, 7  ;;  %v1969_v17 = vsel %vm1930_vm6, %v10140_v30, %v1886_v12 }
 0x1b4   : > { %v1950_v58 = vsel %vm1930_vm6, %v1887_v31, %v1907_v37  ;;  %v10141_v60 = vrot.slane %v7262_v29, 7  ;;  %v2006_v36 = vmax.f32 %v7553_v43, %v1948_v22  ;;  %v2007_v55 = vmax.f32 %v7603_v50, %v1969_v17 }
 0x1b5   : > { %v1968_v49 = vsel %vm1930_vm6, %v10139_v9, %v1885_v61  ;;  %v2008_v61 = vmax.f32 %v7564_v53, %v1949_v18  ;;  %v2010_v30 = vmax.f32 %v7586_v44, %v1950_v58  ;;  %v2089_v37 = vsel %vm2071_vm7, %v2028_v33, %v2048_v32 }
 0x1b6   : > { %v1970_v51 = vsel %vm1930_vm6, %v10141_v60, %v1887_v31  ;;  %v2005_v14 = vmax.f32 %v7600_v63, %v1968_v49  ;;  %v2090_v12 = vsel %vm2071_vm7, %v2029_v35, %v2049_v56  ;;  %v2091_v31 = vsel %vm2071_vm7, %v2030_v39, %v2050_v2 }
 0x1b7   : > { %v2009_v9 = vmax.f32 %v7607_v45, %v1970_v51  ;;  %v10142_v49 = vrot.slane %v7254_v42, 6  ;;  %v10143_v22 = vrot.slane %v7256_v46, 6  ;;  %v10144_v58 = vrot.slane %v7262_v29, 6 }
 0x1b8   : > { %v2147_v56 = vmax.f32 %v2006_v36, %v2089_v37  ;;  %v2149_v59 = vmax.f32 %v2008_v61, %v2090_v12  ;;  %v2151_v48 = vmax.f32 %v2010_v30, %v2091_v31  ;;  %v2170_v20 = vrot.slane %v7603_v50, 2 }
 0x1b9   : > { %v2109_v17 = vsel %vm2071_vm7, %v10142_v49, %v2028_v33  ;;  %v2110_v18 = vsel %vm2071_vm7, %v10143_v22, %v2029_v35  ;;  %v2111_v32 = vsel %vm2071_vm7, %v10144_v58, %v2030_v39  ;;  %v2171_v33 = vrot.slane %v7607_v45, 2 }
 0x1ba   : > { %v2146_v60 = vmax.f32 %v2005_v14, %v2109_v17  ;;  %v2148_v51 = vmax.f32 %v2007_v55, %v2110_v18  ;;  %v2150_v2 = vmax.f32 %v2009_v9, %v2111_v32  ;;  %v2189_v49 = vrot.slane %v7553_v43, 2 }
 0x1bb   : > { %v2190_v27 = vrot.slane %v7564_v53, 2  ;;  %v2191_v35 = vrot.slane %v7586_v44, 2  ;;  %v10145_v22 = vrot.slane %v7250_v40, 2  ;;  %v10146_v39 = vrot.slane %v7520_v24, 2 }
 0x1bc   : > { %v2285_v55 = vmax.f32 %v2144_v13, %v7574_v10  ;;  %v2310_v14 = vrot.slane %v7600_v63, 1  ;;  %v10147_v61 = vrot.slane %v7254_v42, 2  ;;  %v10148_v30 = vrot.slane %v7256_v46, 2 }
 0x1bd   : > { %v2229_v36 = vsel %vm2212_vm4, %v10146_v39, %v10145_v22  ;;  %v2250_v12 = vsel %vm2212_vm4, %v2169_v8, %v2189_v49  ;;  %v2251_v31 = vsel %vm2212_vm4, %v2170_v20, %v2190_v27  ;;  %v10149_v10 = vrot.slane %v7262_v29, 2 }
 0x1be   : > { %v2230_v9 = vsel %vm2212_vm4, %v2189_v49, %v10147_v61  ;;  %v2231_v37 = vsel %vm2212_vm4, %v2190_v27, %v10148_v30  ;;  %v2252_v13 = vsel %vm2212_vm4, %v2171_v33, %v2191_v35  ;;  %v2286_v17 = vmax.f32 %v7592_v47, %v2229_v36 }
 0x1bf   : > { %v2232_v63 = vsel %vm2212_vm4, %v2191_v35, %v10149_v10  ;;  %v2287_v18 = vmax.f32 %v2146_v60, %v2250_v12  ;;  %v2288_v58 = vmax.f32 %v2147_v56, %v2230_v9  ;;  %v2289_v32 = vmax.f32 %v2148_v51, %v2251_v31 }
 0x1c0   : > { %v2290_v22 = vmax.f32 %v2149_v59, %v2231_v37  ;;  %v2291_v39 = vmax.f32 %v2150_v2, %v2252_v13  ;;  %v2292_v61 = vmax.f32 %v2151_v48, %v2232_v63  ;;  %v2311_v8 = vrot.slane %v7603_v50, 1 }
 0x1c1   : > { %v2312_v27 = vrot.slane %v7607_v45, 1  ;;  %v2330_v20 = vrot.slane %v7553_v43, 1  ;;  %v2331_v49 = vrot.slane %v7564_v53, 1  ;;  %v2332_v30 = vrot.slane %v7586_v44, 1 }
 0x1c2   : > { %v10150_v33 = vrot.slane %v7250_v40, 1  ;;  %v10151_v47 = vrot.slane %v7520_v24, 1  ;;  %v2426_v59 = vmax.f32 %v2285_v55, %v7583_v57  ;;  %v10152_v48 = vrot.slane %v7254_v42, 1 }
 0x1c3   : > { %v2391_v43 = vsel %vm2353_vm5, %v2310_v14, %v2330_v20  ;;  %v1983_v44 = vmax.f32 %v7406_v34, %v7465_v1  ;;  %v10153_v40 = vrot.slane %v7256_v46, 1  ;;  %v10154_v45 = vrot.slane %v7262_v29, 1 }
 0x1c4   : > { %v2370_v60 = vsel %vm2353_vm5, %v10151_v47, %v10150_v33  ;;  %v2371_v50 = vsel %vm2353_vm5, %v2330_v20, %v10152_v48  ;;  %v2392_v57 = vsel %vm2353_vm5, %v2311_v8, %v2331_v49  ;;  %v2393_v56 = vsel %vm2353_vm5, %v2312_v27, %v2332_v30  ;;  %2861 = vst.msk [vmem:[#allocation2 + $0x1b0] sm:$0xff] %vm1245_vm2, %v2426_v59  ;;  %v7763_v27 = vld [vmem:[#allocation2 + $0x110] sm:$0xff] }
 0x1c5   : > { %v2427_v53 = vmax.f32 %v2286_v17, %v2370_v60  ;;  %v2372_v24 = vsel %vm2353_vm5, %v2331_v49, %v10153_v40  ;;  %v2373_v42 = vsel %vm2353_vm5, %v2332_v30, %v10154_v45  ;;  %v2428_v51 = vmax.f32 %v2287_v18, %v2391_v43  ;;  %v7779_v30 = vld [vmem:[#allocation2 + $0x118] sm:$0xff] }
 0x1c6   : > { %v2429_v1 = vmax.f32 %v2288_v58, %v2371_v50  ;;  %v2430_v2 = vmax.f32 %v2289_v32, %v2392_v57  ;;  %v2431_v35 = vmax.f32 %v2290_v22, %v2372_v24  ;;  %v2432_v36 = vmax.f32 %v2291_v39, %v2393_v56  ;;  %v7749_v58 = vld [vmem:[#allocation2 + $0x108] sm:$0xff] }
 0x1c7   : > { %2862 = vst.msk [vmem:[#allocation2 + $0x1b8] sm:$0xff] %vm1245_vm2, %v2427_v53  ;;  %v2433_v55 = vmax.f32 %v2292_v61, %v2373_v42  ;;  %v10155_v14 = vrot.slane %v7409_v52, 6  ;;  %v10156_v9 = vrot.slane %v7406_v34, 6  ;;  %v10158_v31 = vrot.slane %v7380_v54, 6  ;;  %2863 = vst.msk [vmem:[#allocation2 + $0x1c8] sm:$0xff] %vm1245_vm2, %v2428_v51 }
 0x1c8   : > { %2864 = vst.msk [vmem:[#allocation2 + $0x1d0] sm:$0xff] %vm1245_vm2, %v2429_v1  ;;  %2865 = vst.msk [vmem:[#allocation2 + $0x1e0] sm:$0xff] %vm1245_vm2, %v2430_v2  ;;  %v2178_v13 = vrot.slane %v7409_v52, 2  ;;  %v2299_v17 = vrot.slane %v7406_v34, 1  ;;  %v2319_v18 = vrot.slane %v7409_v52, 1  ;;  %v1984_v32 = vmax.f32 %v7409_v52, %v7461_v23 }
 0x1c9   : > { %v2078_v37 = vsel %vm2071_vm7, %v10156_v9, %v10155_v14  ;;  %v10157_v12 = vmov %v10156_v9  ;;  %2866 = vst.msk [vmem:[#allocation2 + $0x1e8] sm:$0xff] %vm1245_vm2, %v2431_v35  ;;  %2867 = vst.msk [vmem:[#allocation2 + $0x1f8] sm:$0xff] %vm1245_vm2, %v2432_v36  ;;  %v10159_v22 = vmax.f32 %v7347_v15, %v7349_v28  ;;  %v1708_v61 = vmax.f32 %v7415_v4, %v7375_v26 }
 0x1ca   : > { %v2098_v10 = vsel %vm2071_vm7, %v10158_v31, %v10157_v12  ;;  %2868 = vst.msk [vmem:[#allocation2 + $0x200] sm:$0xff] %vm1245_vm2, %v2433_v55  ;;  %v1709_v8 = vmax.f32 %v7418_v41, %v7377_v38  ;;  %v10160_v20 = vrot.slane %v7380_v54, 2  ;;  %v10161_v52 = vrot.slane %v7406_v34, 2 }
 0x1cb   : > { %v2124_v63 = vmax.f32 %v1983_v44, %v2098_v10  ;;  %v1589_v39 = vmax.f32 %v10159_v22, %v7301_v11  ;;  %v10162_v15 = vrot.slane %v7380_v54, 1  ;;  %v2380_v41 = vsel %vm2353_vm5, %v2299_v17, %v2319_v18  ;;  %v2923_v24 = vld [vmem:[#allocation2 + $0x1b0] sm:$0xff] }
 0x1cc   : > { %v2219_v49 = vsel %vm2212_vm4, %v2178_v13, %v10160_v20  ;;  %v2239_v23 = vsel %vm2212_vm4, %v10161_v52, %v2178_v13  ;;  %v2125_v47 = vmax.f32 %v1984_v32, %v2078_v37  ;;  %v1829_v59 = vmax.f32 %v1708_v61, %v7749_v58 }
 0x1cd   : > { %v2360_v4 = vsel %vm2353_vm5, %v2319_v18, %v10162_v15  ;;  %v2265_v33 = vmax.f32 %v2124_v63, %v2239_v23  ;;  %v1710_v60 = vmax.f32 %v1589_v39, %v7327_v6  ;;  %v7784_v34 = vmax.f32 %v1709_v8, %v7763_v27 }
 0x1ce   : > { %v1470_v54 = vmax.f32 %v7309_v19, %v7337_v5  ;;  %v1471_v48 = vmax.f32 %v7311_v7, %v7339_v62  ;;  %v1472_v50 = vmax.f32 %v7349_v28, %v7301_v11  ;;  %v2266_v53 = vmax.f32 %v2125_v47, %v2219_v49  ;;  %v2924_v45 = vld [vmem:[#allocation2 + $0x1b8] sm:$0xff]  ;;  %v7796_v19 = vld [vmem:[#allocation2 + $0x1c8] sm:$0xff] }
 0x1cf   : > { %v2406_v43 = vmax.f32 %v2265_v33, %v2380_v41  ;;  %v7793_v44 = vmax.f32 %v1710_v60, %v7779_v30  ;;  %v1875_v40 = vrot.slane %v1829_v59, 7  ;;  %v2018_v42 = vrot.slane %v1829_v59, 6  ;;  %v2927_v1 = vld [vmem:[#allocation2 + $0x1d0] sm:$0xff]  ;;  %v7798_v2 = vld [vmem:[#allocation2 + $0x1e0] sm:$0xff] }
 0x1d0   : > { %v2159_v57 = vrot.slane %v1829_v59, 2  ;;  %v2179_v56 = vrot.slane %v7784_v34, 2  ;;  %v2300_v51 = vrot.slane %v1829_v59, 1  ;;  %10163 = vst [vmem:[#allocation15_spill] sm:$0xff] %v7798_v2  ;;  %v2407_v35 = vmax.f32 %v2266_v53, %v2360_v4  ;;  %v2987_v9 = vld [vmem:[#allocation2 + $0x1e8] sm:$0xff]  ;;  %v7808_v10 = vld [vmem:[#allocation2 + $0x1f8] sm:$0xff] }
 0x1d1   : > { %5509 = vmatprep.mubr.msk.f32.mxu0 %vm1245_vm2, %v2406_v43  ;;  %v1915_v36 = vrot.slane %v7793_v44, 7  ;;  %v2058_v55 = vrot.slane %v7793_v44, 6  ;;  %v2320_v14 = vrot.slane %v7784_v34, 1  ;;  %2841 = vst.msk [vmem:[#allocation2 + $0xc0] sm:$0xff] %vm1245_vm2, %v2406_v43  ;;  %v3043_v37 = vmax.f32 %v2923_v24, %v7796_v19  ;;  %v3107_v63 = vld [vmem:[#allocation2 + $0x200] sm:$0xff] }
 0x1d2   : > { %v3044_v12 = vmax.f32 %v2924_v45, %v2927_v1  ;;  %v3046_v31 = vmax.f32 %v7796_v19, %v7798_v2  ;;  %v7812_v13 = vsel %vm2212_vm4, %v2159_v57, %v2179_v56  ;;  %v3047_v17 = vmax.f32 %v2927_v1, %v2987_v9  ;;  %5510 = vmatmul.mubr.msk.f32.vlgmr.msra.gmra.mrb[40].mxu0 %vm1245_vm2, %v2407_v35 }
 0x1d3   : > { %v1958_v18 = vsel %vm1930_vm6, %v1915_v36, %v1875_v40  ;;  %v2099_v32 = vsel %vm2071_vm7, %v2058_v55, %v2018_v42  ;;  %v7823_v22 = vsel %vm2353_vm5, %v2300_v51, %v2320_v14  ;;  %2842 = vst.msk [vmem:[#allocation2 + $0xc8] sm:$0xff] %vm1245_vm2, %v2407_v35  ;;  %v3163_v39 = vmax.f32 %v3043_v37, %v7798_v2 }
 0x1d4   : > { %v3164_v61 = vmax.f32 %v3044_v12, %v2987_v9  ;;  %v3166_v8 = vmax.f32 %v3046_v31, %v7808_v10  ;;  %v1985_v20 = vmax.f32 %v1829_v59, %v1958_v18  ;;  %v3167_v49 = vmax.f32 %v3047_v17, %v3107_v63 }
 0x1d5   : > { %v1895_v52 = vrot.slane %v7784_v34, 7  ;;  %v2038_v23 = vrot.slane %v7784_v34, 6  ;;  %v2199_v15 = vrot.slane %v7793_v44, 2  ;;  %v3283_v4 = vmax.f32 %v3163_v39, %v7808_v10 }
 0x1d6   : > { %v3284_v41 = vmax.f32 %v3164_v61, %v3107_v63  ;;  %v3286_v33 = vmax.f32 %v3166_v8, %v7576_v25  ;;  %v2126_v47 = vmax.f32 %v1985_v20, %v2099_v32  ;;  %v3287_v60 = vmax.f32 %v3167_v49, %v7551_v0 }
 0x1d7   : > { %v1938_v43 = vsel %vm1930_vm6, %v1875_v40, %v1895_v52  ;;  %v2079_v59 = vsel %vm2071_vm7, %v2018_v42, %v2038_v23  ;;  %v7840_v53 = vsel %vm2212_vm4, %v2179_v56, %v2199_v15  ;;  %v3403_v24 = vmax.f32 %v3283_v4, %v7576_v25 }
 0x1d8   : > { %v3404_v45 = vmax.f32 %v3284_v41, %v7551_v0  ;;  %v3406_v57 = vmax.f32 %v3286_v33, %v7588_v21  ;;  %v2267_v51 = vmax.f32 %v2126_v47, %v7812_v13  ;;  %v3407_v1 = vmax.f32 %v3287_v60, %v7560_v3 }
 0x1d9   : > { %v1986_v35 = vmax.f32 %v7784_v34, %v1938_v43  ;;  %v2340_v40 = vrot.slane %v7793_v44, 1  ;;  %v7850_v42 = vmax.f32 %v1470_v54, %v7375_v26  ;;  %v3427_v36 = vrot.slane %v3403_v24, 7 }
 0x1da   : > { %v3428_v56 = vrot.slane %v3406_v57, 7  ;;  %v3447_v55 = vrot.slane %v3404_v45, 7  ;;  %v3567_v9 = vrot.slane %v3403_v24, 6  ;;  %v3448_v25 = vrot.slane %v3407_v1, 7 }
 0x1db   : > { %v3568_v37 = vrot.slane %v3406_v57, 6  ;;  %v3587_v0 = vrot.slane %v3404_v45, 6  ;;  %v3588_v12 = vrot.slane %v3407_v1, 6  ;;  %v10164_v3 = vrot.slane %v7256_v46, 7 }
 0x1dc   : > { %v3487_v21 = vsel %vm1930_vm6, %v3427_v36, %v3447_v55  ;;  %v10165_v44 = vrot.slane %v7262_v29, 7  ;;  %v10166_v63 = vrot.slane %v7256_v46, 6  ;;  %v3488_v17 = vsel %vm1930_vm6, %v3428_v56, %v3448_v25 }
 0x1dd   : > { %v3507_v31 = vsel %vm1930_vm6, %v10164_v3, %v3427_v36  ;;  %v3546_v32 = vmax.f32 %v3404_v45, %v3487_v21  ;;  %v3548_v61 = vmax.f32 %v3407_v1, %v3488_v17  ;;  %v3627_v8 = vsel %vm2071_vm7, %v3567_v9, %v3587_v0 }
 0x1de   : > { %v3508_v54 = vsel %vm1930_vm6, %v10165_v44, %v3428_v56  ;;  %v3647_v13 = vsel %vm2071_vm7, %v10166_v63, %v3567_v9  ;;  %v3545_v18 = vmax.f32 %v3403_v24, %v3507_v31  ;;  %v3628_v20 = vsel %vm2071_vm7, %v3568_v37, %v3588_v12 }
 0x1df   : > { %v3547_v39 = vmax.f32 %v3406_v57, %v3508_v54  ;;  %v10167_v49 = vrot.slane %v7262_v29, 6  ;;  %v3686_v15 = vmax.f32 %v3546_v32, %v3627_v8  ;;  %v3707_v41 = vrot.slane %v3403_v24, 2 }
 0x1e0   : > { %v3685_v23 = vmax.f32 %v3545_v18, %v3647_v13  ;;  %v3688_v33 = vmax.f32 %v3548_v61, %v3628_v20  ;;  %v3708_v47 = vrot.slane %v3406_v57, 2  ;;  %v3727_v60 = vrot.slane %v3404_v45, 2 }
 0x1e1   : > { %v3648_v52 = vsel %vm2071_vm7, %v10167_v49, %v3568_v37  ;;  %v3728_v43 = vrot.slane %v3407_v1, 2  ;;  %v3847_v36 = vrot.slane %v3403_v24, 1  ;;  %v3848_v56 = vrot.slane %v3406_v57, 1  ;;  %v7913_v49 = vld [vmem:[#allocation2 + $0x120] sm:$0xff] }
 0x1e2   : > { %v3687_v4 = vmax.f32 %v3547_v39, %v3648_v52  ;;  %v3867_v55 = vrot.slane %v3404_v45, 1  ;;  %v3868_v9 = vrot.slane %v3407_v1, 1  ;;  %v10168_v25 = vrot.slane %v7256_v46, 2 }
 0x1e3   : > { %v10169_v12 = vrot.slane %v7262_v29, 2  ;;  %v3787_v21 = vsel %vm2212_vm4, %v3707_v41, %v3727_v60  ;;  %v3788_v3 = vsel %vm2212_vm4, %v3708_v47, %v3728_v43  ;;  %v10170_v31 = vrot.slane %v7256_v46, 1 }
 0x1e4   : > { %v3767_v0 = vsel %vm2212_vm4, %v3727_v60, %v10168_v25  ;;  %v3825_v24 = vmax.f32 %v3685_v23, %v3787_v21  ;;  %v3827_v45 = vmax.f32 %v3687_v4, %v3788_v3  ;;  %v10171_v54 = vrot.slane %v7262_v29, 1 }
 0x1e5   : > { %v3768_v37 = vsel %vm2212_vm4, %v3728_v43, %v10169_v12  ;;  %v3826_v57 = vmax.f32 %v3686_v15, %v3767_v0  ;;  %v3907_v44 = vsel %vm2353_vm5, %v3867_v55, %v10170_v31  ;;  %v3927_v13 = vsel %vm2353_vm5, %v3847_v36, %v3867_v55 }
 0x1e6   : > { %v3828_v1 = vmax.f32 %v3688_v33, %v3768_v37  ;;  %v3908_v63 = vsel %vm2353_vm5, %v3868_v9, %v10171_v54  ;;  %v3928_v17 = vsel %vm2353_vm5, %v3848_v56, %v3868_v9  ;;  %v3965_v18 = vmax.f32 %v3825_v24, %v3927_v13  ;;  %v7969_v54 = vld [vmem:[#allocation2 + $0x140] sm:$0xff] }
 0x1e7   : > { %v7900_v32 = vmax.f32 %v3826_v57, %v3907_v44  ;;  %v3967_v39 = vmax.f32 %v3827_v45, %v3928_v17  ;;  %v2408_v46 = vmax.f32 %v2267_v51, %v7823_v22  ;;  %v2127_v8 = vmax.f32 %v1986_v35, %v2079_v59  ;;  %v7932_v35 = vld [vmem:[#allocation2 + $0x130] sm:$0xff]  ;;  %v7962_v57 = vld [vmem:[#allocation2 + $0x138] sm:$0xff] }
 0x1e8   : > { %v7902_v61 = vmax.f32 %v3828_v1, %v3908_v63  ;;  %v2361_v29 = vsel %vm2353_vm5, %v2320_v14, %v2340_v40  ;;  %v1591_v20 = vmax.f32 %v1471_v48, %v7377_v38  ;;  %4219 = vst.msk [vmem:[#allocation2 + $0x1e0] sm:$0xff] %vm1245_vm2, %v3965_v18  ;;  %v1592_v22 = vmax.f32 %v1472_v50, %v7327_v6  ;;  %v7923_v14 = vld [vmem:[#allocation2 + $0x128] sm:$0xff] }
 0x1e9   : > { %4221 = vst.msk [vmem:[#allocation2 + $0x1f8] sm:$0xff] %vm1245_vm2, %v3967_v39  ;;  %v1711_v34 = vmax.f32 %v7850_v42, %v7749_v58  ;;  %v1473_v7 = vmax.f32 %v7337_v5, %v7375_v26  ;;  %v1474_v48 = vmax.f32 %v7339_v62, %v7377_v38  ;;  %5512 = vmatprep.mubr.msk.f32.mxu0 %vm1245_vm2, %v2408_v46  ;;  %2843 = vst.msk [vmem:[#allocation2 + $0xd8] sm:$0xff] %vm1245_vm2, %v2408_v46  ;;  %v7971_v63 = vld [vmem:[#allocation2 + $0x148] sm:$0xff] }
 0x1ea   : > { %v2268_v59 = vmax.f32 %v2127_v8, %v7840_v53  ;;  %v1712_v51 = vmax.f32 %v1591_v20, %v7763_v27  ;;  %v1475_v28 = vmax.f32 %v7301_v11, %v7327_v6  ;;  %v1476_v50 = vmax.f32 %v7375_v26, %v7749_v58 }
 0x1eb   : > { %v1713_v5 = vmax.f32 %v1592_v22, %v7779_v30  ;;  %v1832_v62 = vmax.f32 %v1711_v34, %v7913_v49  ;;  %v1593_v40 = vmax.f32 %v1473_v7, %v7749_v58  ;;  %v1594_v53 = vmax.f32 %v1474_v48, %v7763_v27 }
 0x1ec   : > { %v2409_v42 = vmax.f32 %v2268_v59, %v2361_v29  ;;  %v1833_v52 = vmax.f32 %v1712_v51, %v7923_v14  ;;  %v1595_v23 = vmax.f32 %v1475_v28, %v7779_v30  ;;  %v1477_v11 = vmax.f32 %v7377_v38, %v7763_v27 }
 0x1ed   : > { %v1834_v15 = vmax.f32 %v1713_v5, %v7932_v35  ;;  %v1876_v4 = vrot.slane %v1832_v62, 7  ;;  %v2019_v26 = vrot.slane %v1832_v62, 6  ;;  %v2160_v41 = vrot.slane %v1832_v62, 2 }
 0x1ee   : > { %5513 = vmatmul.mubr.msk.f32.gmra.mrb[42].mxu0 %vm1245_vm2, %v2409_v42  ;;  %v2180_v33 = vrot.slane %v1833_v52, 2  ;;  %v2301_v47 = vrot.slane %v1832_v62, 1  ;;  %v2321_v60 = vrot.slane %v1833_v52, 1  ;;  %v1896_v43 = vrot.slane %v1833_v52, 7  ;;  %2844 = vst.msk [vmem:[#allocation2 + $0xe0] sm:$0xff] %vm1245_vm2, %v2409_v42 }
 0x1ef   : > { %v1916_v36 = vrot.slane %v1834_v15, 7  ;;  %v2059_v56 = vrot.slane %v1834_v15, 6  ;;  %v2039_v55 = vrot.slane %v1833_v52, 6  ;;  %v2200_v9 = vrot.slane %v1834_v15, 2 }
 0x1f0   : > { %v2241_v38 = vsel %vm2212_vm4, %v2160_v41, %v2180_v33  ;;  %v2382_v25 = vsel %vm2353_vm5, %v2301_v47, %v2321_v60  ;;  %v1939_v0 = vsel %vm1930_vm6, %v1876_v4, %v1896_v43  ;;  %v2341_v12 = vrot.slane %v1834_v15, 1  ;;  %v7995_v43 = vld [vmem:[#allocation2 + $0x150] sm:$0xff] }
 0x1f1   : > { %v1959_v37 = vsel %vm1930_vm6, %v1916_v36, %v1876_v4  ;;  %v2100_v21 = vsel %vm2071_vm7, %v2059_v56, %v2019_v26  ;;  %v1988_v3 = vmax.f32 %v1833_v52, %v1939_v0  ;;  %v2080_v24 = vsel %vm2071_vm7, %v2019_v26, %v2039_v55 }
 0x1f2   : > { %v1987_v45 = vmax.f32 %v1832_v62, %v1959_v37  ;;  %v2221_v1 = vsel %vm2212_vm4, %v2180_v33, %v2200_v9  ;;  %v2362_v31 = vsel %vm2353_vm5, %v2321_v60, %v2341_v12  ;;  %v1714_v44 = vmax.f32 %v1593_v40, %v7913_v49  ;;  %v8001_v9 = vld [vmem:[#allocation2 + $0x160] sm:$0xff] }
 0x1f3   : > { %v2129_v13 = vmax.f32 %v1988_v3, %v2080_v24  ;;  %v1715_v17 = vmax.f32 %v1594_v53, %v7923_v14  ;;  %v1716_v18 = vmax.f32 %v1595_v23, %v7932_v35  ;;  %v1478_v39 = vmax.f32 %v7327_v6, %v7779_v30 }
 0x1f4   : > { %v2128_v46 = vmax.f32 %v1987_v45, %v2100_v21  ;;  %v1835_v8 = vmax.f32 %v1714_v44, %v7962_v57  ;;  %v1596_v29 = vmax.f32 %v1476_v50, %v7913_v49  ;;  %v1597_v20 = vmax.f32 %v1477_v11, %v7923_v14 }
 0x1f5   : > { %v2270_v22 = vmax.f32 %v2129_v13, %v2221_v1  ;;  %v1836_v34 = vmax.f32 %v1715_v17, %v7969_v54  ;;  %v1837_v7 = vmax.f32 %v1716_v18, %v7971_v63  ;;  %v1598_v48 = vmax.f32 %v1478_v39, %v7932_v35 }
 0x1f6   : > { %v2269_v59 = vmax.f32 %v2128_v46, %v2241_v38  ;;  %v1877_v51 = vrot.slane %v1835_v8, 7  ;;  %v2020_v28 = vrot.slane %v1835_v8, 6  ;;  %v2161_v5 = vrot.slane %v1835_v8, 2 }
 0x1f7   : > { %v2411_v62 = vmax.f32 %v2270_v22, %v2362_v31  ;;  %v1917_v6 = vrot.slane %v1837_v7, 7  ;;  %v2060_v40 = vrot.slane %v1837_v7, 6  ;;  %v2181_v53 = vrot.slane %v1836_v34, 2 }
 0x1f8   : > { %v2410_v42 = vmax.f32 %v2269_v59, %v2382_v25  ;;  %v2302_v52 = vrot.slane %v1835_v8, 1  ;;  %v2322_v50 = vrot.slane %v1836_v34, 1  ;;  %v1897_v23 = vrot.slane %v1836_v34, 7  ;;  %v8004_v25 = vld [vmem:[#allocation2 + $0x158] sm:$0xff] }
 0x1f9   : > { %v1960_v11 = vsel %vm1930_vm6, %v1917_v6, %v1877_v51  ;;  %v2101_v15 = vsel %vm2071_vm7, %v2060_v40, %v2020_v28  ;;  %v2242_v4 = vsel %vm2212_vm4, %v2161_v5, %v2181_v53  ;;  %v2040_v26 = vrot.slane %v1836_v34, 6  ;;  %2846 = vst.msk [vmem:[#allocation2 + $0xf8] sm:$0xff] %vm1245_vm2, %v2411_v62 }
 0x1fa   : > { %5515 = vmatprep.mubr.msk.f32.mxu0 %vm1245_vm2, %v2410_v42  ;;  %v1989_v41 = vmax.f32 %v1835_v8, %v1960_v11  ;;  %v2383_v33 = vsel %vm2353_vm5, %v2302_v52, %v2322_v50  ;;  %v1940_v47 = vsel %vm1930_vm6, %v1877_v51, %v1897_v23  ;;  %v2201_v60 = vrot.slane %v1837_v7, 2  ;;  %2845 = vst.msk [vmem:[#allocation2 + $0xf0] sm:$0xff] %vm1245_vm2, %v2410_v42  ;;  %v8035_v23 = vld [vmem:[#allocation2 + $0x178] sm:$0xff]  ;;  %v8037_v11 = vld [vmem:[#allocation2 + $0x190] sm:$0xff] }
 0x1fb   : > { %5516 = vmatmul.mubr.msk.f32.gmra.mrb[44].mxu0 %vm1245_vm2, %v2411_v62  ;;  %v1990_v36 = vmax.f32 %v1836_v34, %v1940_v47  ;;  %v2081_v56 = vsel %vm2071_vm7, %v2020_v28, %v2040_v26  ;;  %v2342_v55 = vrot.slane %v1837_v7, 1  ;;  %v1717_v38 = vmax.f32 %v1596_v29, %v7962_v57 }
 0x1fc   : > { %v2130_v0 = vmax.f32 %v1989_v41, %v2101_v15  ;;  %v2222_v12 = vsel %vm2212_vm4, %v2181_v53, %v2201_v60  ;;  %v1718_v37 = vmax.f32 %v1597_v20, %v7969_v54  ;;  %v1719_v21 = vmax.f32 %v1598_v48, %v7971_v63 }
 0x1fd   : > { %v2131_v3 = vmax.f32 %v1990_v36, %v2081_v56  ;;  %v2363_v24 = vsel %vm2353_vm5, %v2322_v50, %v2342_v55  ;;  %v1838_v45 = vmax.f32 %v1717_v38, %v7995_v43  ;;  %v1479_v1 = vmax.f32 %v7749_v58, %v7913_v49 }
 0x1fe   : > { %v2271_v31 = vmax.f32 %v2130_v0, %v2242_v4  ;;  %v1839_v44 = vmax.f32 %v1718_v37, %v8004_v25  ;;  %v1840_v13 = vmax.f32 %v1719_v21, %v8001_v9  ;;  %v1480_v17 = vmax.f32 %v7763_v27, %v7923_v14  ;;  %v1781_v0 = vld [vmem:[#allocation2 + $0x168] sm:$0xff] }
 0x1ff   : > { %v2272_v18 = vmax.f32 %v2131_v3, %v2222_v12  ;;  %v1878_v39 = vrot.slane %v1838_v45, 7  ;;  %v2021_v46 = vrot.slane %v1838_v45, 6  ;;  %v2162_v8 = vrot.slane %v1838_v45, 2  ;;  %v8058_v12 = vld [vmem:[#allocation2 + $0x170] sm:$0xff] }
 0x200   : > { %v2412_v29 = vmax.f32 %v2271_v31, %v2383_v33  ;;  %v1918_v20 = vrot.slane %v1840_v13, 7  ;;  %v2061_v22 = vrot.slane %v1840_v13, 6  ;;  %v2182_v34 = vrot.slane %v1839_v44, 2 }
 0x201   : > { %v2413_v7 = vmax.f32 %v2272_v18, %v2363_v24  ;;  %v2303_v48 = vrot.slane %v1838_v45, 1  ;;  %v2323_v59 = vrot.slane %v1839_v44, 1  ;;  %v1898_v58 = vrot.slane %v1839_v44, 7 }
 0x202   : > { %5518 = vmatprep.mubr.msk.f32.mxu0 %vm1245_vm2, %v2412_v29  ;;  %v1961_v51 = vsel %vm1930_vm6, %v1918_v20, %v1878_v39  ;;  %v2102_v27 = vsel %vm2071_vm7, %v2061_v22, %v2021_v46  ;;  %v2243_v28 = vsel %vm2212_vm4, %v2162_v8, %v2182_v34  ;;  %v2041_v5 = vrot.slane %v1839_v44, 6  ;;  %2847 = vst.msk [vmem:[#allocation2 + $0x108] sm:$0xff] %vm1245_vm2, %v2412_v29 }
 0x203   : > { %5519 = vmatmul.mubr.msk.f32.gmra.mrb[46].mxu0 %vm1245_vm2, %v2413_v7  ;;  %v1991_v62 = vmax.f32 %v1838_v45, %v1961_v51  ;;  %v2384_v6 = vsel %vm2353_vm5, %v2303_v48, %v2323_v59  ;;  %v1941_v40 = vsel %vm1930_vm6, %v1878_v39, %v1898_v58  ;;  %v2202_v53 = vrot.slane %v1840_v13, 2  ;;  %2848 = vst.msk [vmem:[#allocation2 + $0x110] sm:$0xff] %vm1245_vm2, %v2413_v7 }
 0x204   : > { %v1992_v42 = vmax.f32 %v1839_v44, %v1941_v40  ;;  %v2082_v52 = vsel %vm2071_vm7, %v2021_v46, %v2041_v5  ;;  %v2343_v50 = vrot.slane %v1840_v13, 1  ;;  %v1481_v15 = vmax.f32 %v7779_v30, %v7932_v35  ;;  %v8088_v40 = vld [vmem:[#allocation2 + $0x180] sm:$0xff] }
 0x205   : > { %v2132_v4 = vmax.f32 %v1991_v62, %v2102_v27  ;;  %v2223_v26 = vsel %vm2212_vm4, %v2182_v34, %v2202_v53  ;;  %v8045_v41 = vmax.f32 %v8001_v9, %v8035_v23  ;;  %v8049_v33 = vmax.f32 %v8035_v23, %v8037_v11 }
 0x206   : > { %v2133_v47 = vmax.f32 %v1992_v42, %v2082_v52  ;;  %v2364_v60 = vsel %vm2353_vm5, %v2323_v59, %v2343_v50  ;;  %v1599_v36 = vmax.f32 %v1479_v1, %v7962_v57  ;;  %v1600_v30 = vmax.f32 %v1480_v17, %v7969_v54 }
 0x207   : > { %10172 = vst [vmem:[#allocation18_spill] sm:$0xff] %v8045_v41  ;;  %10173 = vst [vmem:[#allocation22_spill] sm:$0xff] %v8049_v33  ;;  %v2273_v56 = vmax.f32 %v2132_v4, %v2243_v28  ;;  %v1601_v55 = vmax.f32 %v1481_v15, %v7971_v63  ;;  %v1610_v38 = vmax.f32 %v8045_v41, %v8037_v11  ;;  %v8096_v15 = vld [vmem:[#allocation2 + $0x188] sm:$0xff] }
 0x208   : > { %v1482_v37 = vmax.f32 %v7913_v49, %v7962_v57  ;;  %v2274_v21 = vmax.f32 %v2133_v47, %v2223_v26  ;;  %v1720_v3 = vmax.f32 %v1599_v36, %v7995_v43  ;;  %v1721_v24 = vmax.f32 %v1600_v30, %v8004_v25 }
 0x209   : > { %v1483_v45 = vmax.f32 %v7923_v14, %v7969_v54  ;;  %v2414_v1 = vmax.f32 %v2273_v56, %v2384_v6  ;;  %v1722_v31 = vmax.f32 %v1601_v55, %v8001_v9  ;;  %v1484_v44 = vmax.f32 %v7932_v35, %v7971_v63 }
 0x20a   : > { %v1602_v13 = vmax.f32 %v1482_v37, %v7995_v43  ;;  %v2415_v17 = vmax.f32 %v2274_v21, %v2364_v60  ;;  %v1841_v18 = vmax.f32 %v1720_v3, %v1781_v0  ;;  %v1842_v49 = vmax.f32 %v1721_v24, %v8058_v12 }
 0x20b   : > { %v1603_v39 = vmax.f32 %v1483_v45, %v8004_v25  ;;  %5521 = vmatprep.mubr.msk.f32.mxu0 %vm1245_vm2, %v2414_v1  ;;  %v1843_v46 = vmax.f32 %v1722_v31, %v8035_v23  ;;  %v1604_v14 = vmax.f32 %v1484_v44, %v8001_v9  ;;  %2849 = vst.msk [vmem:[#allocation2 + $0x120] sm:$0xff] %vm1245_vm2, %v2414_v1 }
 0x20c   : > { %v1723_v8 = vmax.f32 %v1602_v13, %v1781_v0  ;;  %v1485_v35 = vmax.f32 %v7962_v57, %v7995_v43  ;;  %5522 = vmatmul.mubr.msk.f32.gmra.mrb[48].mxu0 %vm1245_vm2, %v2415_v17  ;;  %v1879_v29 = vrot.slane %v1841_v18, 7  ;;  %v2022_v20 = vrot.slane %v1841_v18, 6  ;;  %2850 = vst.msk [vmem:[#allocation2 + $0x128] sm:$0xff] %vm1245_vm2, %v2415_v17 }
 0x20d   : > { %v2163_v22 = vrot.slane %v1841_v18, 2  ;;  %v2183_v34 = vrot.slane %v1842_v49, 2  ;;  %v1919_v7 = vrot.slane %v1843_v46, 7  ;;  %v2062_v48 = vrot.slane %v1843_v46, 6 }
 0x20e   : > { %v2304_v59 = vrot.slane %v1841_v18, 1  ;;  %v2324_v58 = vrot.slane %v1842_v49, 1  ;;  %v1899_v27 = vrot.slane %v1842_v49, 7  ;;  %v2042_v28 = vrot.slane %v1842_v49, 6 }
 0x20f   : > { %v2244_v51 = vsel %vm2212_vm4, %v2163_v22, %v2183_v34  ;;  %v2203_v5 = vrot.slane %v1843_v46, 2  ;;  %v1962_v57 = vsel %vm1930_vm6, %v1919_v7, %v1879_v29  ;;  %v2103_v43 = vsel %vm2071_vm7, %v2062_v48, %v2022_v20  ;;  %v8122_v48 = vld [vmem:[#allocation2 + $0x1a8] sm:$0xff] }
 0x210   : > { %v2385_v62 = vsel %vm2353_vm5, %v2304_v59, %v2324_v58  ;;  %v2344_v6 = vrot.slane %v1843_v46, 1  ;;  %v1993_v53 = vmax.f32 %v1841_v18, %v1962_v57  ;;  %v1942_v42 = vsel %vm1930_vm6, %v1879_v29, %v1899_v27 }
 0x211   : > { %v2083_v52 = vsel %vm2071_vm7, %v2022_v20, %v2042_v28  ;;  %v2224_v50 = vsel %vm2212_vm4, %v2183_v34, %v2203_v5  ;;  %v1994_v4 = vmax.f32 %v1842_v49, %v1942_v42  ;;  %v1724_v47 = vmax.f32 %v1603_v39, %v8058_v12  ;;  %v1787_v5 = vld [vmem:[#allocation2 + $0x198] sm:$0xff] }
 0x212   : > { %v2365_v26 = vsel %vm2353_vm5, %v2324_v58, %v2344_v6  ;;  %v1725_v60 = vmax.f32 %v1604_v14, %v8035_v23  ;;  %v2134_v36 = vmax.f32 %v1993_v53, %v2103_v43  ;;  %v1844_v30 = vmax.f32 %v1723_v8, %v8088_v40  ;;  %v1788_v53 = vld [vmem:[#allocation2 + $0x1a0] sm:$0xff] }
 0x213   : > { %v1486_v56 = vmax.f32 %v7969_v54, %v8004_v25  ;;  %v1487_v55 = vmax.f32 %v7971_v63, %v8001_v9  ;;  %v2135_v37 = vmax.f32 %v1994_v4, %v2083_v52  ;;  %v1845_v21 = vmax.f32 %v1724_v47, %v8096_v15  ;;  %v1795_v4 = vld [vmem:[#allocation2 + $0x1d8] sm:$0xff] }
 0x214   : > { %v1846_v3 = vmax.f32 %v1725_v60, %v8037_v11  ;;  %v1605_v24 = vmax.f32 %v1485_v35, %v1781_v0  ;;  %v2275_v45 = vmax.f32 %v2134_v36, %v2244_v51  ;;  %v1880_v1 = vrot.slane %v1844_v30, 7 }
 0x215   : > { %v2023_v31 = vrot.slane %v1844_v30, 6  ;;  %v2164_v44 = vrot.slane %v1844_v30, 2  ;;  %v2276_v13 = vmax.f32 %v2135_v37, %v2224_v50  ;;  %v2184_v49 = vrot.slane %v1845_v21, 2 }
 0x216   : > { %v1920_v17 = vrot.slane %v1846_v3, 7  ;;  %v2063_v18 = vrot.slane %v1846_v3, 6  ;;  %v2416_v39 = vmax.f32 %v2275_v45, %v2385_v62  ;;  %v2305_v46 = vrot.slane %v1844_v30, 1 }
 0x217   : > { %v2325_v54 = vrot.slane %v1845_v21, 1  ;;  %v1900_v25 = vrot.slane %v1845_v21, 7  ;;  %v2417_v14 = vmax.f32 %v2276_v13, %v2365_v26  ;;  %v2245_v0 = vsel %vm2212_vm4, %v2164_v44, %v2184_v49 }
 0x218   : > { %v1963_v63 = vsel %vm1930_vm6, %v1920_v17, %v1880_v1  ;;  %v2104_v9 = vsel %vm2071_vm7, %v2063_v18, %v2023_v31  ;;  %5524 = vmatprep.mubr.msk.f32.mxu0 %vm1245_vm2, %v2416_v39  ;;  %v2043_v20 = vrot.slane %v1845_v21, 6  ;;  %2851 = vst.msk [vmem:[#allocation2 + $0x138] sm:$0xff] %vm1245_vm2, %v2416_v39  ;;  %v2204_v34 = vrot.slane %v1846_v3, 2  ;;  %v5932_v18 = vld [vmem:[%s9901_s4] sm:$0x3]  ;;  %v10174_v39 = vld [vmem:[#allocation30_spill] sm:$0xff] }
 0x219   : > { %v1995_v8 = vmax.f32 %v1844_v30, %v1963_v63  ;;  %v2386_v35 = vsel %vm2353_vm5, %v2305_v46, %v2325_v54  ;;  %v1943_v29 = vsel %vm1930_vm6, %v1880_v1, %v1900_v25  ;;  %5525 = vmatmul.mubr.msk.f32.gmra.mrb[50].mxu0 %vm1245_vm2, %v2417_v14  ;;  %v2345_v7 = vrot.slane %v1846_v3, 1  ;;  %2852 = vst.msk [vmem:[#allocation2 + $0x140] sm:$0xff] %vm1245_vm2, %v2417_v14  ;;  %v8164_v1 = vld [vmem:[%s9901_s4 + $0x4] sm:$0x3] }
 0x21a   : > { %v1996_v22 = vmax.f32 %v1845_v21, %v1943_v29  ;;  %v1606_v59 = vmax.f32 %v1486_v56, %v8058_v12  ;;  %v2084_v51 = vsel %vm2071_vm7, %v2023_v31, %v2043_v20  ;;  %v1607_v27 = vmax.f32 %v1487_v55, %v8035_v23  ;;  %v8135_v12 = vld [vmem:[#allocation2 + $0x1c0] sm:$0xff] }
 0x21b   : > { %v2136_v58 = vmax.f32 %v1995_v8, %v2104_v9  ;;  %v1613_v28 = vmax.f32 %v8049_v33, %v8122_v48  ;;  %v2225_v43 = vsel %vm2212_vm4, %v2184_v49, %v2204_v34  ;;  %v2366_v62 = vsel %vm2353_vm5, %v2325_v54, %v2345_v7  ;;  %v10177_v9 = vld [vmem:[#allocation10_spill] sm:$0xff] }
 0x21c   : > { %v2137_v57 = vmax.f32 %v1996_v22, %v2084_v51  ;;  %v1726_v6 = vmax.f32 %v1605_v24, %v8088_v40  ;;  %v1727_v52 = vmax.f32 %v1606_v59, %v8096_v15  ;;  %v1728_v23 = vmax.f32 %v1607_v27, %v8037_v11 }
 0x21d   : > { %v2277_v42 = vmax.f32 %v2136_v58, %v2245_v0  ;;  %v1731_v50 = vmax.f32 %v1610_v38, %v8122_v48  ;;  %v1734_v47 = vmax.f32 %v1613_v28, %v8135_v12  ;;  %v3042_v40 = vmax.f32 %v8122_v48, %v8135_v12 }
 0x21e   : > { %v2278_v26 = vmax.f32 %v2137_v57, %v2225_v43  ;;  %v8145_v60 = vmax.f32 %v1726_v6, %v1787_v5  ;;  %v8149_v30 = vmax.f32 %v1727_v52, %v1788_v53  ;;  %v8152_v15 = vmax.f32 %v1728_v23, %v8122_v48  ;;  %v10180_v57 = vld [vmem:[#allocation28_spill] sm:$0xff]  ;;  %v10184_v23 = vld [vmem:[#allocation6_spill] sm:$0xff] }
 0x21f   : > { %v2418_v36 = vmax.f32 %v2277_v42, %v2386_v35  ;;  %v1852_v56 = vmax.f32 %v1731_v50, %v8135_v12  ;;  %v1855_v11 = vmax.f32 %v1734_v47, %v1795_v4  ;;  %v10175_v46 = vrot.slane %v10174_v39, 7  ;;  %v10182_v12 = vld [vmem:[#allocation31_spill] sm:$0xff] }
 0x220   : > { %v2419_v55 = vmax.f32 %v2278_v26, %v2366_v62  ;;  %v1881_v38 = vrot.slane %v8145_v60, 7  ;;  %v2024_v37 = vrot.slane %v8145_v60, 6  ;;  %v1921_v21 = vrot.slane %v8152_v15, 7  ;;  %v10185_v26 = vld [vmem:[#allocation11_spill] sm:$0xff] }
 0x221   : > { %5527 = vmatprep.mubr.msk.f32.mxu1 %vm1245_vm2, %v2418_v36  ;;  %v1922_v3 = vrot.slane %v1852_v56, 7  ;;  %v2064_v24 = vrot.slane %v8152_v15, 6  ;;  %v2065_v45 = vrot.slane %v1852_v56, 6  ;;  %2853 = vst.msk [vmem:[#allocation2 + $0x150] sm:$0xff] %vm1245_vm2, %v2418_v36  ;;  %v1923_v31 = vrot.slane %v1855_v11, 7  ;;  %v10186_v36 = vld [vmem:[#allocation14_spill] sm:$0xff] }
 0x222   : > { %5528 = vmatmul.mubr.msk.f32.vlgmr.msra.gmra.mrb[0].mxu1 %vm1245_vm2, %v2419_v55  ;;  %v2066_v44 = vrot.slane %v1855_v11, 6  ;;  %v2165_v13 = vrot.slane %v8145_v60, 2  ;;  %v2185_v17 = vrot.slane %v8149_v30, 2  ;;  %2854 = vst.msk [vmem:[#allocation2 + $0x158] sm:$0xff] %vm1245_vm2, %v2419_v55  ;;  %v1964_v49 = vsel %vm1930_vm6, %v1921_v21, %v1881_v38  ;;  %v10187_v21 = vld [vmem:[#allocation12_spill] sm:$0xff] }
 0x223   : > { %5534 = vmatpush3.msk.msra.mxu1 %vm2484_vm15, %v5932_v18  ;;  %v1965_v54 = vsel %vm1930_vm6, %v1922_v3, %v10175_v46  ;;  %v2105_v25 = vsel %vm2071_vm7, %v2064_v24, %v2024_v37  ;;  %v10176_v14 = vrot.slane %v10174_v39, 6  ;;  %v10178_v0 = vrot.slane %v10177_v9, 7  ;;  %v10189_v18 = vld [vmem:[#allocation25_spill] sm:$0xff] }
 0x224   : > { %v1997_v35 = vmax.f32 %v8145_v60, %v1964_v49  ;;  %v1999_v29 = vmax.f32 %v10174_v39, %v1965_v54  ;;  %v10179_v20 = vrot.slane %v10177_v9, 6  ;;  %5559 = vmatprep.subr.msk.mxu1 %vm2484_vm15, %v8164_v1  ;;  %v2206_v7 = vrot.slane %v1852_v56, 2  ;;  %v8228_v54 = vld [vmem:[#allocation2] sm:$0xff] }
 0x225   : > { %v2106_v63 = vsel %vm2071_vm7, %v2065_v45, %v10176_v14  ;;  %v1966_v8 = vsel %vm1930_vm6, %v1923_v31, %v10178_v0  ;;  %v2207_v48 = vrot.slane %v1855_v11, 2  ;;  %v2246_v59 = vsel %vm2212_vm4, %v2165_v13, %v2185_v17  ;;  %v3222_v13 = vld [vmem:[#allocation2 + $0x1f0] sm:$0xff]  ;;  %v8232_v14 = vld [vmem:[#allocation2 + $0x18] sm:$0xff] }
 0x226   : > { %v2107_v22 = vsel %vm2071_vm7, %v2066_v44, %v10179_v20  ;;  %v2001_v34 = vmax.f32 %v10177_v9, %v1966_v8  ;;  %v2138_v58 = vmax.f32 %v1997_v35, %v2105_v25  ;;  %v2140_v51 = vmax.f32 %v1999_v29, %v2106_v63  ;;  %v8230_v25 = vld [vmem:[#allocation2 + $0x8] sm:$0xff]  ;;  %v10191_v9 = vld [vmem:[#allocation13_spill] sm:$0xff]  ;;  %v8241_v20 = vld [vmem:[#allocation2 + $0x20] sm:$0xff] }
 0x227   : > { %v2306_v27 = vrot.slane %v8145_v60, 1  ;;  %v2326_v28 = vrot.slane %v8149_v30, 1  ;;  %v10181_v43 = vrot.slane %v10180_v57, 2  ;;  %v10183_v6 = vrot.slane %v10182_v12, 2  ;;  %v3342_v8 = vld [vmem:[#allocation2 + $0x208] sm:$0xff] }
 0x228   : > { %v2142_v5 = vmax.f32 %v2001_v34, %v2107_v22  ;;  %v2347_v42 = vrot.slane %v1852_v56, 1  ;;  %v2279_v52 = vmax.f32 %v2138_v58, %v2246_v59  ;;  %v2281_v50 = vmax.f32 %v2140_v51, %v10184_v23  ;;  %v2874_v59 = vld [vmem:[#allocation2 + $0x28] sm:$0xff]  ;;  %v8251_v58 = vld [vmem:[#allocation2 + $0x38] sm:$0xff]  ;;  %v8288_v23 = vld [vmem:[#allocation2 + $0x80] sm:$0xff] }
 0x229   : > { %v2227_v62 = vsel %vm2212_vm4, %v10181_v43, %v2206_v7  ;;  %v2228_v53 = vsel %vm2212_vm4, %v10183_v6, %v2207_v48  ;;  %v2348_v24 = vrot.slane %v1855_v11, 1  ;;  %v10188_v45 = vrot.slane %v10180_v57, 1  ;;  %v2871_v48 = vld [vmem:[#allocation2 + $0x10] sm:$0xff]  ;;  %v8262_v57 = vld [vmem:[#allocation2 + $0x48] sm:$0xff]  ;;  %v8280_v6 = vld [vmem:[#allocation2 + $0x58] sm:$0xff] }
 0x22a   : > { %v2282_v47 = vmax.f32 %v10185_v26, %v2227_v62  ;;  %v2284_v55 = vmax.f32 %v10186_v36, %v2228_v53  ;;  %v2283_v3 = vmax.f32 %v2142_v5, %v10187_v21  ;;  %v2387_v44 = vsel %vm2353_vm5, %v2306_v27, %v2326_v28  ;;  %v2877_v5 = vld [vmem:[#allocation2 + $0x40] sm:$0xff]  ;;  %v8299_v21 = vld [vmem:[#allocation2 + $0xa8] sm:$0xff] }
 0x22b   : > { %v2368_v31 = vsel %vm2353_vm5, %v10188_v45, %v2347_v42  ;;  %v2420_v56 = vmax.f32 %v2279_v52, %v2387_v44  ;;  %v2422_v49 = vmax.f32 %v2281_v50, %v10189_v18  ;;  %v3162_v46 = vmax.f32 %v3042_v40, %v1795_v4  ;;  %v8243_v4 = vld [vmem:[#allocation2 + $0x30] sm:$0xff]  ;;  %v8286_v52 = vld [vmem:[#allocation2 + $0x78] sm:$0xff] }
 0x22c   : > { %v2423_v39 = vmax.f32 %v2282_v47, %v2368_v31  ;;  %v10190_v11 = vrot.slane %v10182_v12, 1  ;;  %v2424_v0 = vmax.f32 %v2283_v3, %v10191_v9  ;;  %v1901_v35 = vrot.slane %v8149_v30, 7  ;;  %v8305_v45 = vld [vmem:[#allocation2 + $0x70] sm:$0xff]  ;;  %v8307_v31 = vld [vmem:[#allocation2 + $0x88] sm:$0xff] }
 0x22d   : > { %v2044_v29 = vrot.slane %v8149_v30, 6  ;;  %5530 = vmatprep.mubr.msk.f32.mxu1 %vm1245_vm2, %v2420_v56  ;;  %2855 = vst.msk [vmem:[#allocation2 + $0x168] sm:$0xff] %vm1245_vm2, %v2420_v56  ;;  %2857 = vst.msk [vmem:[#allocation2 + $0x180] sm:$0xff] %vm1245_vm2, %v2422_v49  ;;  %v3282_v22 = vmax.f32 %v3162_v46, %v3222_v13  ;;  %v2205_v34 = vrot.slane %v8152_v15, 2  ;;  %v2346_v7 = vrot.slane %v8152_v15, 1  ;;  %v8264_v15 = vld [vmem:[#allocation2 + $0x50] sm:$0xff] }
 0x22e   : > { %v2369_v63 = vsel %vm2353_vm5, %v10190_v11, %v2348_v24  ;;  %2858 = vst.msk [vmem:[#allocation2 + $0x188] sm:$0xff] %vm1245_vm2, %v2423_v39  ;;  %2859 = vst.msk [vmem:[#allocation2 + $0x198] sm:$0xff] %vm1245_vm2, %v2424_v0  ;;  %v1944_v51 = vsel %vm1930_vm6, %v1881_v38, %v1901_v35  ;;  %v2989_v43 = vmax.f32 %v8228_v54, %v8232_v14  ;;  %v8276_v38 = vld [vmem:[#allocation2 + $0x60] sm:$0xff]  ;;  %v2980_v49 = vld [vmem:[#allocation2 + $0x1b0] sm:$0xff] }
 0x22f   : > { %v2425_v40 = vmax.f32 %v2284_v55, %v2369_v63  ;;  %v2085_v27 = vsel %vm2071_vm7, %v2024_v37, %v2044_v29  ;;  %v8269_v62 = vmax.f32 %v3282_v22, %v3342_v8  ;;  %v1998_v12 = vmax.f32 %v8149_v30, %v1944_v51  ;;  %v8278_v37 = vld [vmem:[#allocation2 + $0x68] sm:$0xff]  ;;  %v8290_v30 = vld [vmem:[#allocation2 + $0x90] sm:$0xff]  ;;  %v8297_v55 = vld [vmem:[#allocation2 + $0x98] sm:$0xff] }
 0x230   : > { %v2226_v60 = vsel %vm2212_vm4, %v2185_v17, %v2205_v34  ;;  %v2990_v53 = vmax.f32 %v8230_v25, %v8241_v20  ;;  %v2367_v42 = vsel %vm2353_vm5, %v2326_v28, %v2346_v7  ;;  %v2991_v50 = vmax.f32 %v2871_v48, %v2874_v59  ;;  %v8301_v28 = vld [vmem:[#allocation2 + $0xb0] sm:$0xff]  ;;  %v8324_v11 = vld [vmem:[#allocation2 + $0xb8] sm:$0xff]  ;;  %v8342_v34 = vld [vmem:[#allocation2 + $0xc0] sm:$0xff] }
 0x231   : > { %2860 = vst.msk [vmem:[#allocation2 + $0x1a0] sm:$0xff] %vm1245_vm2, %v2425_v40  ;;  %10192 = vst [vmem:[#allocation23_spill] sm:$0xff] %v8269_v62  ;;  %v2992_v17 = vmax.f32 %v8232_v14, %v8243_v4  ;;  %v2993_v26 = vmax.f32 %v8241_v20, %v8251_v58  ;;  %v3466_v47 = vrot.slane %v8269_v62, 7  ;;  %v2139_v36 = vmax.f32 %v1998_v12, %v2085_v27  ;;  %v8322_v14 = vld [vmem:[#allocation2 + $0xa0] sm:$0xff]  ;;  %v8344_v48 = vld [vmem:[#allocation2 + $0xc8] sm:$0xff] }
 0x232   : > { %v2994_v3 = vmax.f32 %v2874_v59, %v2877_v5  ;;  %v2995_v24 = vmax.f32 %v8243_v4, %v8262_v57  ;;  %v2996_v44 = vmax.f32 %v8251_v58, %v8264_v15  ;;  %v2997_v13 = vmax.f32 %v2877_v5, %v8280_v6 }
 0x233   : > { %v2998_v56 = vmax.f32 %v8262_v57, %v8276_v38  ;;  %v2999_v18 = vmax.f32 %v8264_v15, %v8278_v37  ;;  %v2280_v39 = vmax.f32 %v2139_v36, %v2226_v60  ;;  %v3001_v46 = vmax.f32 %v8276_v38, %v8286_v52  ;;  %v10193_v60 = vld [vmem:[#allocation33_spill] sm:$0xff] }
 0x234   : > { %v3002_v54 = vmax.f32 %v8278_v37, %v8288_v23  ;;  %v3003_v25 = vmax.f32 %v8305_v45, %v8307_v31  ;;  %v3007_v0 = vmax.f32 %v8290_v30, %v8299_v21  ;;  %v3008_v8 = vmax.f32 %v8297_v55, %v8301_v28 }
 0x235   : > { %v2920_v35 = vld [vmem:[#allocation2 + $0x198] sm:$0xff]  ;;  %v2421_v29 = vmax.f32 %v2280_v39, %v2367_v42  ;;  %v3009_v20 = vmax.f32 %v8322_v14, %v8324_v11  ;;  %v8337_v40 = vmax.f32 %v2989_v43, %v8243_v4  ;;  %v8340_v22 = vmax.f32 %v2990_v53, %v8251_v58  ;;  %v10197_v39 = vld [vmem:[#allocation32_spill] sm:$0xff] }
 0x236   : > { %v3040_v7 = vmax.f32 %v2920_v35, %v2980_v49  ;;  %v8346_v59 = vmax.f32 %v2991_v50, %v2877_v5  ;;  %v8349_v51 = vmax.f32 %v2992_v17, %v8262_v57  ;;  %v8352_v27 = vmax.f32 %v2993_v26, %v8264_v15  ;;  %v8380_v17 = vld [vmem:[#allocation2 + $0xd0] sm:$0xff]  ;;  %v8405_v49 = vld [vmem:[%s9901_s4 + $0x6] sm:$0x3] }
 0x237   : > { %5531 = vmatmul.mubr.msk.f32.gmra.mrb[2].mxu1 %vm1245_vm2, %v2421_v29  ;;  %2856 = vst.msk [vmem:[#allocation2 + $0x170] sm:$0xff] %vm1245_vm2, %v2421_v29  ;;  %v8357_v4 = vmax.f32 %v2994_v3, %v8280_v6  ;;  %v8360_v58 = vmax.f32 %v2995_v24, %v8276_v38  ;;  %v8363_v43 = vmax.f32 %v2996_v44, %v8278_v37  ;;  %v3181_v24 = vld [vmem:[#allocation2 + $0xa8] sm:$0xff]  ;;  %10196 = vst [vmem:[#allocation10_spill] sm:$0xff] %v8405_v49 }
 0x238   : > { %v8366_v5 = vmax.f32 %v2997_v13, %v8305_v45  ;;  %v3160_v12 = vmax.f32 %v3040_v7, %v7796_v19  ;;  %5535 = vmatprep.mubr.msk.f32.mxu1 %vm1245_vm2, %v10193_v60  ;;  %v8372_v53 = vmax.f32 %v2998_v56, %v8286_v52  ;;  %v8375_v42 = vmax.f32 %v2999_v18, %v8288_v23 }
 0x239   : > { %v8378_v50 = vmax.f32 %v3001_v46, %v8290_v30  ;;  %v8383_v26 = vmax.f32 %v3002_v54, %v8297_v55  ;;  %v8386_v36 = vmax.f32 %v3003_v25, %v8322_v14  ;;  %v8389_v19 = vmax.f32 %v3007_v0, %v8342_v34  ;;  %v3182_v25 = vld [vmem:[#allocation2 + $0xb0] sm:$0xff]  ;;  %v8417_v0 = vld [vmem:[#allocation2 + $0xd8] sm:$0xff] }
 0x23a   : > { %10194 = vst [vmem:[#allocation19_spill] sm:$0xff] %v8372_v53  ;;  %10195 = vst [vmem:[#allocation30_spill] sm:$0xff] %v8375_v42  ;;  %v8392_v3 = vmax.f32 %v3008_v8, %v8344_v48  ;;  %v3280_v44 = vmax.f32 %v3160_v12, %v7798_v2  ;;  %v8396_v13 = vmax.f32 %v3009_v20, %v8380_v17  ;;  %v8419_v8 = vld [vmem:[#allocation2 + $0xe0] sm:$0xff]  ;;  %v3606_v29 = vrot.slane %v8269_v62, 6  ;;  %v10201_v20 = vld [vmem:[#allocation29_spill] sm:$0xff] }
 0x23b   : > { %v3229_v56 = vmax.f32 %v8337_v40, %v8262_v57  ;;  %v3230_v18 = vmax.f32 %v8340_v22, %v8264_v15  ;;  %5536 = vmatmul.mubr.msk.f32.vlgmr.msra.gmra.mrb[4].mxu1 %vm1245_vm2, %v10197_v39  ;;  %v3231_v46 = vmax.f32 %v8346_v59, %v8280_v6  ;;  %v3232_v54 = vmax.f32 %v8349_v51, %v8276_v38  ;;  %v8442_v51 = vld [vmem:[#allocation2 + $0x1e8] sm:$0xff]  ;;  %v8461_v39 = vld [vmem:[#allocation2 + $0x200] sm:$0xff] }
 0x23c   : > { %v3233_v57 = vmax.f32 %v8352_v27, %v8278_v37  ;;  %v3234_v15 = vmax.f32 %v8357_v4, %v8305_v45  ;;  %10198 = vst [vmem:[#allocation28_spill] sm:$0xff] %v8417_v0  ;;  %10199 = vst [vmem:[#allocation31_spill] sm:$0xff] %v8419_v8  ;;  %v8422_v35 = vmax.f32 %v3280_v44, %v7808_v10  ;;  %5560 = vmatpush3.msk.msra.mxu1 %vm2484_vm15, %v8164_v1  ;;  %v8452_v12 = vld [vmem:[#allocation2 + $0xe8] sm:$0xff] }
 0x23d   : > { %5538 = vmatprep.mubr.msk.f32.mxu1 %vm1245_vm2, %v10201_v20  ;;  %v3235_v40 = vmax.f32 %v8360_v58, %v8286_v52  ;;  %v3236_v22 = vmax.f32 %v8363_v43, %v8288_v23  ;;  %v3237_v7 = vmax.f32 %v8366_v5, %v8307_v31  ;;  %v3241_v1 = vmax.f32 %v8378_v50, %v3181_v24  ;;  %v10203_v5 = vld [vmem:[#allocation26_spill] sm:$0xff]  ;;  %v10212_v43 = vld [vmem:[#allocation7_spill] sm:$0xff]  ;;  %v10213_v59 = vld [vmem:[#allocation4_spill] sm:$0xff] }
 0x23e   : > { %10200 = vst [vmem:[#allocation6_spill] sm:$0xff] %v8422_v35  ;;  %5585 = vmatprep.subr.msk.mxu1 %vm2484_vm15, %v8405_v49  ;;  %10202 = vst [vmem:[#allocation11_spill] sm:$0xff] %v8442_v51  ;;  %v9962_v27 = vrot.slane %v8422_v35, 7  ;;  %v9961_v4 = vrot.slane %v8422_v35, 6  ;;  %v3242_v60 = vmax.f32 %v8383_v26, %v3182_v25  ;;  %v3243_v50 = vmax.f32 %v8386_v36, %v8324_v11  ;;  %v10205_v36 = vld [vmem:[#allocation3_spill] sm:$0xff]  ;;  %v8485_v20 = vld [vmem:[#allocation2 + $0xf8] sm:$0xff] }
 0x23f   : > { %4220 = vst.msk [vmem:[#allocation2 + $0x1e8] sm:$0xff] %vm1245_vm2, %v7900_v32  ;;  %5539 = vmatmul.mubr.msk.f32.gmra.mrb[6].mxu1 %vm1245_vm2, %v10203_v5  ;;  %v3247_v24 = vmax.f32 %v8389_v19, %v8417_v0  ;;  %v3248_v44 = vmax.f32 %v8392_v3, %v8419_v8  ;;  %10204 = vst [vmem:[#allocation14_spill] sm:$0xff] %v8461_v39  ;;  %v3249_v19 = vmax.f32 %v8396_v13, %v8452_v12  ;;  %v8487_v5 = vld [vmem:[#allocation2 + $0x100] sm:$0xff] }
 0x240   : > { %v3506_v32 = vsel %vm1930_vm6, %v3466_v47, %v9962_v27  ;;  %v3646_v26 = vsel %vm2071_vm7, %v3606_v29, %v9961_v4  ;;  %5541 = vmatprep.mubr.msk.f32.mxu1 %vm1245_vm2, %v10205_v36  ;;  %v8478_v3 = vmax.f32 %v3229_v56, %v8276_v38  ;;  %4222 = vst.msk [vmem:[#allocation2 + $0x200] sm:$0xff] %vm1245_vm2, %v7902_v61  ;;  %v8483_v47 = vld [vmem:[#allocation2 + $0xf0] sm:$0xff]  ;;  %10207 = vst [vmem:[#allocation25_spill] sm:$0xff] %v8485_v20 }
 0x241   : > { %v3543_v25 = vmax.f32 %v8422_v35, %v3506_v32  ;;  %10206 = vst [vmem:[#allocation12_spill] sm:$0xff] %v8483_v47  ;;  %10208 = vst [vmem:[#allocation13_spill] sm:$0xff] %v8487_v5  ;;  %v8490_v29 = vmax.f32 %v3230_v18, %v8278_v37  ;;  %v8493_v36 = vmax.f32 %v3231_v46, %v8305_v45  ;;  %v10210_v18 = vld [vmem:[#allocation5_spill] sm:$0xff] }
 0x242   : > { %v8496_v38 = vmax.f32 %v3232_v54, %v8286_v52  ;;  %v8499_v13 = vmax.f32 %v3233_v57, %v8288_v23  ;;  %v8502_v61 = vmax.f32 %v3234_v15, %v8307_v31  ;;  %v8505_v56 = vmax.f32 %v3235_v40, %v8290_v30  ;;  %v10211_v15 = vld [vmem:[#allocation16_spill] sm:$0xff] }
 0x243   : > { %v8508_v32 = vmax.f32 %v3236_v22, %v8297_v55  ;;  %v8510_v37 = vmax.f32 %v3543_v25, %v3646_v26  ;;  %5542 = vmatmul.mubr.msk.f32.gmra.mrb[8].mxu1 %vm1245_vm2, %v10210_v18  ;;  %v8515_v46 = vmax.f32 %v3237_v7, %v8322_v14  ;;  %v8518_v54 = vmax.f32 %v3241_v1, %v8342_v34 }
 0x244   : > { %v8521_v57 = vmax.f32 %v3242_v60, %v8344_v48  ;;  %5544 = vmatprep.mubr.msk.f32.mxu1 %vm1245_vm2, %v10211_v15  ;;  %v8526_v40 = vmax.f32 %v3243_v50, %v8380_v17  ;;  %v8529_v22 = vmax.f32 %v3247_v24, %v8483_v47  ;;  %v8532_v26 = vmax.f32 %v3248_v44, %v8485_v20  ;;  %v10219_v47 = vld [vmem:[#allocation27_spill] sm:$0xff] }
 0x245   : > { %10209 = vst [vmem:[#allocation33_spill] sm:$0xff] %v8510_v37  ;;  %v8535_v7 = vmax.f32 %v3249_v19, %v8487_v5  ;;  %v3409_v1 = vrot.slane %v8478_v3, 7  ;;  %v3410_v60 = vrot.slane %v8496_v38, 7  ;;  %v3411_v25 = vrot.slane %v8505_v56, 7 }
 0x246   : > { %v3413_v18 = vrot.slane %v8518_v54, 7  ;;  %v3415_v50 = vrot.slane %v8529_v22, 7  ;;  %v3429_v15 = vrot.slane %v8490_v29, 7  ;;  %v3430_v24 = vrot.slane %v8499_v13, 7 }
 0x247   : > { %v3431_v44 = vrot.slane %v8508_v32, 7  ;;  %5545 = vmatmul.mubr.msk.f32.gmra.mrb[10].mxu1 %vm1245_vm2, %v10212_v43  ;;  %v3433_v19 = vrot.slane %v8521_v57, 7  ;;  %v3435_v58 = vrot.slane %v8532_v26, 7  ;;  %v3449_v4 = vrot.slane %v8493_v36, 7 }
 0x248   : > { %v3450_v27 = vrot.slane %v8502_v61, 7  ;;  %5547 = vmatprep.mubr.msk.f32.mxu1 %vm1245_vm2, %v10213_v59  ;;  %v3451_v10 = vrot.slane %v8515_v46, 7  ;;  %v3453_v9 = vrot.slane %v8526_v40, 7  ;;  %v3455_v63 = vrot.slane %v8535_v7, 7 }
 0x249   : > { %v3469_v43 = vsel %vm1930_vm6, %v3409_v1, %v3429_v15  ;;  %v3470_v37 = vsel %vm1930_vm6, %v3410_v60, %v3430_v24  ;;  %v3471_v62 = vsel %vm1930_vm6, %v3411_v25, %v3431_v44  ;;  %v3473_v35 = vsel %vm1930_vm6, %v3413_v18, %v3433_v19  ;;  %v10214_v44 = vld [vmem:[#allocation8_spill] sm:$0xff] }
 0x24a   : > { %v8566_v59 = vsel %vm1930_vm6, %v3415_v50, %v3435_v58  ;;  %v3489_v39 = vsel %vm1930_vm6, %v3449_v4, %v3409_v1  ;;  %v3490_v2 = vsel %vm1930_vm6, %v3450_v27, %v3410_v60  ;;  %v3491_v15 = vsel %vm1930_vm6, %v3451_v10, %v3411_v25  ;;  %v10215_v1 = vld [vmem:[#allocation20_spill] sm:$0xff] }
 0x24b   : > { %v3493_v24 = vsel %vm1930_vm6, %v3453_v9, %v3413_v18  ;;  %5548 = vmatmul.mubr.msk.f32.gmra.mrb[12].mxu1 %vm1245_vm2, %v10214_v44  ;;  %v3495_v19 = vsel %vm1930_vm6, %v3455_v63, %v3415_v50  ;;  %v3509_v58 = vmax.f32 %v8478_v3, %v3489_v39  ;;  %v3510_v51 = vmax.f32 %v8490_v29, %v3469_v43 }
 0x24c   : > { %v3511_v4 = vmax.f32 %v8496_v38, %v3490_v2  ;;  %5550 = vmatprep.mubr.msk.f32.mxu1 %vm1245_vm2, %v10215_v1  ;;  %v3512_v10 = vmax.f32 %v8499_v13, %v3470_v37  ;;  %v3513_v27 = vmax.f32 %v8505_v56, %v3491_v15  ;;  %v3514_v9 = vmax.f32 %v8508_v32, %v3471_v62  ;;  %v10216_v15 = vld [vmem:[#allocation17_spill] sm:$0xff] }
 0x24d   : > { %v3517_v60 = vmax.f32 %v8518_v54, %v3493_v24  ;;  %v3518_v25 = vmax.f32 %v8521_v57, %v3473_v35  ;;  %v3521_v63 = vmax.f32 %v8529_v22, %v3495_v19  ;;  %v3549_v39 = vrot.slane %v8478_v3, 6  ;;  %v10217_v19 = vld [vmem:[#allocation24_spill] sm:$0xff] }
 0x24e   : > { %v3550_v18 = vrot.slane %v8496_v38, 6  ;;  %v3551_v2 = vrot.slane %v8505_v56, 6  ;;  %v3553_v50 = vrot.slane %v8518_v54, 6  ;;  %v3555_v37 = vrot.slane %v8529_v22, 6 }
 0x24f   : > { %v3569_v43 = vrot.slane %v8490_v29, 6  ;;  %5551 = vmatmul.mubr.msk.f32.gmra.mrb[14].mxu1 %vm1245_vm2, %v10216_v15  ;;  %v3570_v62 = vrot.slane %v8499_v13, 6  ;;  %v3571_v35 = vrot.slane %v8508_v32, 6  ;;  %v3573_v24 = vrot.slane %v8521_v57, 6 }
 0x250   : > { %v3575_v44 = vrot.slane %v8532_v26, 6  ;;  %5553 = vmatprep.mubr.msk.f32.mxu1 %vm1245_vm2, %v10217_v19  ;;  %v3589_v1 = vrot.slane %v8493_v36, 6  ;;  %v3590_v33 = vrot.slane %v8502_v61, 6  ;;  %v3591_v41 = vrot.slane %v8515_v46, 6 }
 0x251   : > { %v3593_v49 = vrot.slane %v8526_v40, 6  ;;  %v3595_v15 = vrot.slane %v8535_v7, 6  ;;  %v3609_v8 = vsel %vm2071_vm7, %v3549_v39, %v3569_v43  ;;  %v3610_v0 = vsel %vm2071_vm7, %v3550_v18, %v3570_v62  ;;  %v10218_v43 = vld [vmem:[#allocation21_spill] sm:$0xff] }
 0x252   : > { %v3611_v42 = vsel %vm2071_vm7, %v3551_v2, %v3571_v35  ;;  %v3613_v19 = vsel %vm2071_vm7, %v3553_v50, %v3573_v24  ;;  %v8620_v53 = vsel %vm2071_vm7, %v3555_v37, %v3575_v44  ;;  %v3629_v5 = vsel %vm2071_vm7, %v3589_v1, %v3549_v39 }
 0x253   : > { %v3630_v20 = vsel %vm2071_vm7, %v3590_v33, %v3550_v18  ;;  %5554 = vmatmul.mubr.msk.f32.gmra.mrb[0].mxu1 %vm1245_vm2, %v10218_v43  ;;  %v3631_v62 = vsel %vm2071_vm7, %v3591_v41, %v3551_v2  ;;  %v3633_v35 = vsel %vm2071_vm7, %v3593_v49, %v3553_v50  ;;  %v3635_v24 = vsel %vm2071_vm7, %v3595_v15, %v3555_v37 }
 0x254   : > { %v8634_v44 = vmax.f32 %v3509_v58, %v3629_v5  ;;  %5556 = vmatprep.mubr.msk.f32.mxu1 %vm1245_vm2, %v10219_v47  ;;  %v8638_v39 = vmax.f32 %v3510_v51, %v3609_v8  ;;  %v8640_v33 = vmax.f32 %v3511_v4, %v3630_v20  ;;  %v8642_v18 = vmax.f32 %v3512_v10, %v3610_v0  ;;  %v10220_v0 = vld [vmem:[#allocation9_spill] sm:$0xff] }
 0x255   : > { %v8644_v1 = vmax.f32 %v3513_v27, %v3631_v62  ;;  %v8646_v41 = vmax.f32 %v3514_v9, %v3611_v42  ;;  %v8648_v2 = vmax.f32 %v3517_v60, %v3633_v35  ;;  %v8650_v49 = vmax.f32 %v3518_v25, %v3613_v19 }
 0x256   : > { %v8652_v50 = vmax.f32 %v3521_v63, %v3635_v24  ;;  %v3689_v5 = vrot.slane %v8478_v3, 2  ;;  %v3690_v47 = vrot.slane %v8496_v38, 2  ;;  %v3691_v8 = vrot.slane %v8505_v56, 2 }
 0x257   : > { %v3693_v51 = vrot.slane %v8518_v54, 2  ;;  %5557 = vmatmul.mubr.msk.f32.gmra.mrb[2].mxu1 %vm1245_vm2, %v10220_v0  ;;  %v3695_v42 = vrot.slane %v8529_v22, 2  ;;  %v3709_v20 = vrot.slane %v8490_v29, 2  ;;  %v3710_v58 = vrot.slane %v8499_v13, 2 }
 0x258   : > { %v3711_v4 = vrot.slane %v8508_v32, 2  ;;  %v3713_v10 = vrot.slane %v8521_v57, 2  ;;  %v3715_v27 = vrot.slane %v8532_v26, 2  ;;  %v3729_v9 = vrot.slane %v8493_v36, 2 }
 0x259   : > { %v3730_v60 = vrot.slane %v8502_v61, 2  ;;  %v3731_v25 = vrot.slane %v8515_v46, 2  ;;  %v3733_v63 = vrot.slane %v8526_v40, 2  ;;  %v3735_v37 = vrot.slane %v8535_v7, 2 }
 0x25a   : > { %v3769_v15 = vsel %vm2212_vm4, %v3689_v5, %v3709_v20  ;;  %v3749_v19 = vsel %vm2212_vm4, %v3709_v20, %v3729_v9  ;;  %v3770_v62 = vsel %vm2212_vm4, %v3690_v47, %v3710_v58  ;;  %v3771_v35 = vsel %vm2212_vm4, %v3691_v8, %v3711_v4 }
 0x25b   : > { %v3750_v43 = vsel %vm2212_vm4, %v3710_v58, %v3730_v60  ;;  %v3751_v24 = vsel %vm2212_vm4, %v3711_v4, %v3731_v25  ;;  %v3753_v0 = vsel %vm2212_vm4, %v3713_v10, %v3733_v63  ;;  %v8687_v5 = vsel %vm2212_vm4, %v3715_v27, %v3735_v37 }
 0x25c   : > { %v3773_v20 = vsel %vm2212_vm4, %v3693_v51, %v3713_v10  ;;  %v3775_v9 = vsel %vm2212_vm4, %v3695_v42, %v3715_v27  ;;  %v3789_v47 = vmax.f32 %v8634_v44, %v3769_v15  ;;  %v3790_v8 = vmax.f32 %v8638_v39, %v3749_v19  ;;  %v8737_v15 = vld [vmem:[#allocation2 + $0xc0] sm:$0xff] }
 0x25d   : > { %v3791_v58 = vmax.f32 %v8640_v33, %v3770_v62  ;;  %v3792_v4 = vmax.f32 %v8642_v18, %v3750_v43  ;;  %v3793_v60 = vmax.f32 %v8644_v1, %v3771_v35  ;;  %v3794_v25 = vmax.f32 %v8646_v41, %v3751_v24 }
 0x25e   : > { %v3797_v63 = vmax.f32 %v8648_v2, %v3773_v20  ;;  %v3798_v37 = vmax.f32 %v8650_v49, %v3753_v0  ;;  %v3801_v51 = vmax.f32 %v8652_v50, %v3775_v9  ;;  %v3829_v42 = vrot.slane %v8478_v3, 1 }
 0x25f   : > { %v3830_v44 = vrot.slane %v8496_v38, 1  ;;  %v3831_v39 = vrot.slane %v8505_v56, 1  ;;  %v3833_v33 = vrot.slane %v8518_v54, 1  ;;  %v3835_v18 = vrot.slane %v8529_v22, 1 }
 0x260   : > { %v3849_v1 = vrot.slane %v8490_v29, 1  ;;  %v3850_v41 = vrot.slane %v8499_v13, 1  ;;  %v3851_v2 = vrot.slane %v8508_v32, 1  ;;  %v3853_v49 = vrot.slane %v8521_v57, 1 }
 0x261   : > { %v3855_v50 = vrot.slane %v8532_v26, 1  ;;  %v3869_v3 = vrot.slane %v8493_v36, 1  ;;  %v3870_v38 = vrot.slane %v8502_v61, 1  ;;  %v3871_v56 = vrot.slane %v8515_v46, 1 }
 0x262   : > { %v3873_v54 = vrot.slane %v8526_v40, 1  ;;  %v3875_v22 = vrot.slane %v8535_v7, 1  ;;  %v3909_v29 = vsel %vm2353_vm5, %v3829_v42, %v3849_v1  ;;  %v3910_v13 = vsel %vm2353_vm5, %v3830_v44, %v3850_v41  ;;  %v8740_v42 = vld [vmem:[#allocation2 + $0xd8] sm:$0xff] }
 0x263   : > { %v3911_v32 = vsel %vm2353_vm5, %v3831_v39, %v3851_v2  ;;  %v3889_v36 = vsel %vm2353_vm5, %v3849_v1, %v3869_v3  ;;  %v3890_v61 = vsel %vm2353_vm5, %v3850_v41, %v3870_v38  ;;  %v3891_v46 = vsel %vm2353_vm5, %v3851_v2, %v3871_v56  ;;  %v10223_v2 = vld [vmem:[#allocation12_spill] sm:$0xff]  ;;  %v8789_v3 = vld [vmem:[#allocation2 + $0x118] sm:$0xff]  ;;  %v10224_v38 = vld [vmem:[#allocation25_spill] sm:$0xff] }
 0x264   : > { %v3893_v57 = vsel %vm2353_vm5, %v3853_v49, %v3873_v54  ;;  %v3895_v40 = vsel %vm2353_vm5, %v3855_v50, %v3875_v22  ;;  %v3913_v7 = vsel %vm2353_vm5, %v3833_v33, %v3853_v49  ;;  %v3915_v10 = vsel %vm2353_vm5, %v3835_v18, %v3855_v50  ;;  %v8785_v49 = vld [vmem:[#allocation2 + $0x108] sm:$0xff]  ;;  %v8787_v50 = vld [vmem:[#allocation2 + $0x110] sm:$0xff]  ;;  %v10226_v22 = vld [vmem:[#allocation19_spill] sm:$0xff] }
 0x265   : > { %v3929_v27 = vmax.f32 %v3789_v47, %v3909_v29  ;;  %v3930_v19 = vmax.f32 %v3790_v8, %v3889_v36  ;;  %v3931_v43 = vmax.f32 %v3791_v58, %v3910_v13  ;;  %v3932_v62 = vmax.f32 %v3792_v4, %v3890_v61  ;;  %v10225_v54 = vld [vmem:[#allocation13_spill] sm:$0xff] }
 0x266   : > { %v3933_v35 = vmax.f32 %v3793_v60, %v3911_v32  ;;  %v3934_v24 = vmax.f32 %v3794_v25, %v3891_v46  ;;  %v3937_v0 = vmax.f32 %v3797_v63, %v3913_v7  ;;  %v3938_v20 = vmax.f32 %v3798_v37, %v3893_v57  ;;  %v8754_v60 = vld [vmem:[#allocation2 + $0xe0] sm:$0xff]  ;;  %v10230_v46 = vld [vmem:[#allocation28_spill] sm:$0xff] }
 0x267   : > { %v3941_v9 = vmax.f32 %v3801_v51, %v3915_v10  ;;  %4183 = vst.msk [vmem:[#allocation2 + $0x30] sm:$0xff] %vm1245_vm2, %v3929_v27  ;;  %4184 = vst.msk [vmem:[#allocation2 + $0x38] sm:$0xff] %vm1245_vm2, %v3930_v19  ;;  %v3522_v47 = vmax.f32 %v8532_v26, %v8566_v59  ;;  %v3000_v8 = vmax.f32 %v8280_v6, %v8305_v45  ;;  %v10231_v7 = vld [vmem:[#allocation31_spill] sm:$0xff] }
 0x268   : > { %4185 = vst.msk [vmem:[#allocation2 + $0x48] sm:$0xff] %vm1245_vm2, %v3931_v43  ;;  %4186 = vst.msk [vmem:[#allocation2 + $0x50] sm:$0xff] %vm1245_vm2, %v3932_v62  ;;  %v3006_v58 = vmax.f32 %v8307_v31, %v8322_v14  ;;  %v3010_v4 = vmax.f32 %v8299_v21, %v8737_v15  ;;  %v3011_v26 = vmax.f32 %v8301_v28, %v8344_v48  ;;  %v10232_v43 = vld [vmem:[#allocation10_spill] sm:$0xff] }
 0x269   : > { %4187 = vst.msk [vmem:[#allocation2 + $0x60] sm:$0xff] %vm1245_vm2, %v3933_v35  ;;  %5561 = vmatprep.mubr.msk.f32.mxu1 %vm1245_vm2, %v3941_v9  ;;  %4188 = vst.msk [vmem:[#allocation2 + $0x68] sm:$0xff] %vm1245_vm2, %v3934_v24  ;;  %v3012_v6 = vmax.f32 %v8324_v11, %v8380_v17  ;;  %v10221_v45 = vmax.f32 %v8286_v52, %v8290_v30  ;;  %v10222_v25 = vmax.f32 %v8288_v23, %v8297_v55 }
 0x26a   : > { %4191 = vst.msk [vmem:[#allocation2 + $0x90] sm:$0xff] %vm1245_vm2, %v3937_v0  ;;  %4192 = vst.msk [vmem:[#allocation2 + $0x98] sm:$0xff] %vm1245_vm2, %v3938_v20  ;;  %v3662_v37 = vmax.f32 %v3522_v47, %v8620_v53  ;;  %v3120_v51 = vmax.f32 %v3000_v8, %v8307_v31  ;;  %v3126_v44 = vmax.f32 %v3006_v58, %v8324_v11 }
 0x26b   : > { %v3124_v59 = vmax.f32 %v10221_v45, %v8299_v21  ;;  %v3125_v63 = vmax.f32 %v10222_v25, %v8301_v28  ;;  %4195 = vst.msk [vmem:[#allocation2 + $0xc0] sm:$0xff] %vm1245_vm2, %v3941_v9  ;;  %v3130_v39 = vmax.f32 %v3010_v4, %v8740_v42  ;;  %v3131_v33 = vmax.f32 %v3011_v26, %v8754_v60 }
 0x26c   : > { %v3132_v52 = vmax.f32 %v3012_v6, %v8452_v12  ;;  %v3802_v23 = vmax.f32 %v3662_v37, %v8687_v5  ;;  %v3240_v41 = vmax.f32 %v3120_v51, %v8322_v14  ;;  %v3246_v53 = vmax.f32 %v3126_v44, %v8380_v17  ;;  %v10228_v14 = vld [vmem:[#allocation30_spill] sm:$0xff] }
 0x26d   : > { %v3244_v18 = vmax.f32 %v3124_v59, %v8342_v34  ;;  %v3245_v1 = vmax.f32 %v3125_v63, %v8344_v48  ;;  %v3250_v31 = vmax.f32 %v3130_v39, %v10223_v2  ;;  %v3251_v56 = vmax.f32 %v3131_v33, %v10224_v38 }
 0x26e   : > { %v3252_v34 = vmax.f32 %v3132_v52, %v10225_v54  ;;  %v10227_v5 = vmax.f32 %v10226_v22, %v8290_v30  ;;  %v10229_v13 = vmax.f32 %v10228_v14, %v8297_v55  ;;  %v3942_v36 = vmax.f32 %v3802_v23, %v3895_v40 }
 0x26f   : > { %v8806_v61 = vmax.f32 %v3240_v41, %v8324_v11  ;;  %v8809_v57 = vmax.f32 %v3244_v18, %v10230_v46  ;;  %v8812_v10 = vmax.f32 %v3245_v1, %v10231_v7  ;;  %v8815_v30 = vmax.f32 %v3246_v53, %v8452_v12 }
 0x270   : > { %v8797_v29 = vmax.f32 %v10227_v5, %v8299_v21  ;;  %v8803_v32 = vmax.f32 %v10229_v13, %v8301_v28  ;;  %v8818_v21 = vmax.f32 %v3250_v31, %v8785_v49  ;;  %v8821_v55 = vmax.f32 %v3251_v56, %v8787_v50  ;;  %5562 = vmatmul.mubr.msk.f32.vlgmr.msra.gmra.mrb[4].mxu1 %vm1245_vm2, %v3942_v36 }
 0x271   : > { %v8824_v28 = vmax.f32 %v3252_v34, %v8789_v3  ;;  %v3414_v40 = vrot.slane %v8809_v57, 7  ;;  %v3434_v19 = vrot.slane %v8812_v10, 7  ;;  %4196 = vst.msk [vmem:[#allocation2 + $0xc8] sm:$0xff] %vm1245_vm2, %v3942_v36  ;;  %5586 = vmatpush3.msk.msra.mxu1 %vm2484_vm15, %v10232_v43  ;;  %v3452_v35 = vrot.slane %v8806_v61, 7 }
 0x272   : > { %v3412_v11 = vrot.slane %v8797_v29, 7  ;;  %v3432_v27 = vrot.slane %v8803_v32, 7  ;;  %v3416_v62 = vrot.slane %v8818_v21, 7  ;;  %v3454_v24 = vrot.slane %v8815_v30, 7 }
 0x273   : > { %v3456_v0 = vrot.slane %v8824_v28, 7  ;;  %v3474_v9 = vsel %vm1930_vm6, %v3414_v40, %v3434_v19  ;;  %v3552_v47 = vrot.slane %v8797_v29, 6  ;;  %v3554_v8 = vrot.slane %v8809_v57, 6 }
 0x274   : > { %v3472_v20 = vsel %vm1930_vm6, %v3412_v11, %v3432_v27  ;;  %v3492_v58 = vsel %vm1930_vm6, %v3452_v35, %v3412_v11  ;;  %v3494_v4 = vsel %vm1930_vm6, %v3454_v24, %v3414_v40  ;;  %v3520_v25 = vmax.f32 %v8812_v10, %v3474_v9 }
 0x275   : > { %v3496_v26 = vsel %vm1930_vm6, %v3456_v0, %v3416_v62  ;;  %v3516_v6 = vmax.f32 %v8803_v32, %v3472_v20  ;;  %v3515_v45 = vmax.f32 %v8797_v29, %v3492_v58  ;;  %v3519_v59 = vmax.f32 %v8809_v57, %v3494_v4 }
 0x276   : > { %v3523_v63 = vmax.f32 %v8818_v21, %v3496_v26  ;;  %v3556_v37 = vrot.slane %v8818_v21, 6  ;;  %v3572_v51 = vrot.slane %v8803_v32, 6  ;;  %v3574_v44 = vrot.slane %v8812_v10, 6 }
 0x277   : > { %v3592_v39 = vrot.slane %v8806_v61, 6  ;;  %v3594_v33 = vrot.slane %v8815_v30, 6  ;;  %v3596_v52 = vrot.slane %v8824_v28, 6  ;;  %v3692_v18 = vrot.slane %v8797_v29, 2 }
 0x278   : > { %v3694_v1 = vrot.slane %v8809_v57, 2  ;;  %v3612_v23 = vsel %vm2071_vm7, %v3552_v47, %v3572_v51  ;;  %v3614_v41 = vsel %vm2071_vm7, %v3554_v8, %v3574_v44  ;;  %v3696_v31 = vrot.slane %v8818_v21, 2 }
 0x279   : > { %v3632_v53 = vsel %vm2071_vm7, %v3592_v39, %v3552_v47  ;;  %v3634_v56 = vsel %vm2071_vm7, %v3594_v33, %v3554_v8  ;;  %v3636_v34 = vsel %vm2071_vm7, %v3596_v52, %v3556_v37  ;;  %v3656_v5 = vmax.f32 %v3516_v6, %v3612_v23 }
 0x27a   : > { %v3655_v22 = vmax.f32 %v3515_v45, %v3632_v53  ;;  %v3659_v14 = vmax.f32 %v3519_v59, %v3634_v56  ;;  %v3660_v13 = vmax.f32 %v3520_v25, %v3614_v41  ;;  %v3663_v36 = vmax.f32 %v3523_v63, %v3636_v34 }
 0x27b   : > { %v3712_v46 = vrot.slane %v8803_v32, 2  ;;  %v3714_v7 = vrot.slane %v8812_v10, 2  ;;  %v3716_v11 = vrot.slane %v8821_v55, 2  ;;  %v3732_v40 = vrot.slane %v8806_v61, 2 }
 0x27c   : > { %v3734_v27 = vrot.slane %v8815_v30, 2  ;;  %v3832_v43 = vrot.slane %v8797_v29, 1  ;;  %v3834_v35 = vrot.slane %v8809_v57, 1  ;;  %v3836_v24 = vrot.slane %v8818_v21, 1 }
 0x27d   : > { %v3772_v19 = vsel %vm2212_vm4, %v3692_v18, %v3712_v46  ;;  %v3752_v0 = vsel %vm2212_vm4, %v3712_v46, %v3732_v40  ;;  %v3774_v9 = vsel %vm2212_vm4, %v3694_v1, %v3714_v7  ;;  %v3776_v47 = vsel %vm2212_vm4, %v3696_v31, %v3716_v11  ;;  %v8954_v40 = vld [vmem:[#allocation2 + $0x138] sm:$0xff] }
 0x27e   : > { %v3754_v20 = vsel %vm2212_vm4, %v3714_v7, %v3734_v27  ;;  %v3795_v8 = vmax.f32 %v3655_v22, %v3772_v19  ;;  %v3796_v58 = vmax.f32 %v3656_v5, %v3752_v0  ;;  %v3799_v4 = vmax.f32 %v3659_v14, %v3774_v9  ;;  %v8938_v5 = vld [vmem:[#allocation2 + $0x120] sm:$0xff]  ;;  %v8950_v7 = vld [vmem:[#allocation2 + $0x130] sm:$0xff]  ;;  %v8964_v0 = vld [vmem:[#allocation2 + $0x148] sm:$0xff] }
 0x27f   : > { %v3800_v29 = vmax.f32 %v3660_v13, %v3754_v20  ;;  %v3803_v26 = vmax.f32 %v3663_v36, %v3776_v47  ;;  %v3852_v57 = vrot.slane %v8803_v32, 1  ;;  %v3854_v6 = vrot.slane %v8812_v10, 1  ;;  %v8947_v13 = vld [vmem:[#allocation2 + $0x128] sm:$0xff] }
 0x280   : > { %v3856_v45 = vrot.slane %v8821_v55, 1  ;;  %v3872_v59 = vrot.slane %v8806_v61, 1  ;;  %v3874_v25 = vrot.slane %v8815_v30, 1  ;;  %v3436_v63 = vrot.slane %v8821_v55, 7 }
 0x281   : > { %v3576_v51 = vrot.slane %v8821_v55, 6  ;;  %v3912_v44 = vsel %vm2353_vm5, %v3832_v43, %v3852_v57  ;;  %v3914_v39 = vsel %vm2353_vm5, %v3834_v35, %v3854_v6  ;;  %v3736_v10 = vrot.slane %v8824_v28, 2 }
 0x282   : > { %v3916_v32 = vsel %vm2353_vm5, %v3836_v24, %v3856_v45  ;;  %v3892_v61 = vsel %vm2353_vm5, %v3852_v57, %v3872_v59  ;;  %v3894_v30 = vsel %vm2353_vm5, %v3854_v6, %v3874_v25  ;;  %v3935_v33 = vmax.f32 %v3795_v8, %v3912_v44  ;;  %v8962_v24 = vld [vmem:[#allocation2 + $0x140] sm:$0xff] }
 0x283   : > { %v3939_v52 = vmax.f32 %v3799_v4, %v3914_v39  ;;  %v3936_v18 = vmax.f32 %v3796_v58, %v3892_v61  ;;  %v3940_v1 = vmax.f32 %v3800_v29, %v3894_v30  ;;  %v3943_v23 = vmax.f32 %v3803_v26, %v3916_v32 }
 0x284   : > { %v3476_v41 = vsel %vm1930_vm6, %v3416_v62, %v3436_v63  ;;  %4189 = vst.msk [vmem:[#allocation2 + $0x78] sm:$0xff] %vm1245_vm2, %v3935_v33  ;;  %v3616_v31 = vsel %vm2071_vm7, %v3556_v37, %v3576_v51  ;;  %v3756_v56 = vsel %vm2212_vm4, %v3716_v11, %v3736_v10  ;;  %v3876_v34 = vrot.slane %v8824_v28, 1 }
 0x285   : > { %4193 = vst.msk [vmem:[#allocation2 + $0xa8] sm:$0xff] %vm1245_vm2, %v3939_v52  ;;  %v3524_v53 = vmax.f32 %v8821_v55, %v3476_v41  ;;  %5564 = vmatprep.mubr.msk.f32.mxu1 %vm1245_vm2, %v3943_v23  ;;  %4190 = vst.msk [vmem:[#allocation2 + $0x80] sm:$0xff] %vm1245_vm2, %v3936_v18  ;;  %v3013_v21 = vmax.f32 %v8737_v15, %v8740_v42  ;;  %v3014_v55 = vmax.f32 %v8344_v48, %v8754_v60 }
 0x286   : > { %4194 = vst.msk [vmem:[#allocation2 + $0xb0] sm:$0xff] %vm1245_vm2, %v3940_v1  ;;  %v3015_v62 = vmax.f32 %v8380_v17, %v8452_v12  ;;  %v3016_v37 = vmax.f32 %v8740_v42, %v10223_v2  ;;  %4197 = vst.msk [vmem:[#allocation2 + $0xd8] sm:$0xff] %vm1245_vm2, %v3943_v23  ;;  %v3896_v22 = vsel %vm2353_vm5, %v3856_v45, %v3876_v34 }
 0x287   : > { %v3664_v28 = vmax.f32 %v3524_v53, %v3616_v31  ;;  %v3017_v15 = vmax.f32 %v8754_v60, %v10224_v38  ;;  %v3018_v48 = vmax.f32 %v8452_v12, %v10225_v54  ;;  %v3133_v14 = vmax.f32 %v3013_v21, %v10223_v2 }
 0x288   : > { %v3134_v17 = vmax.f32 %v3014_v55, %v10224_v38  ;;  %v3135_v42 = vmax.f32 %v3015_v62, %v10225_v54  ;;  %v3136_v36 = vmax.f32 %v3016_v37, %v8785_v49  ;;  %v3019_v12 = vmax.f32 %v10223_v2, %v8785_v49 }
 0x289   : > { %v3804_v46 = vmax.f32 %v3664_v28, %v3756_v56  ;;  %v3137_v11 = vmax.f32 %v3017_v15, %v8787_v50  ;;  %v3138_v60 = vmax.f32 %v3018_v48, %v8789_v3  ;;  %v3253_v27 = vmax.f32 %v3133_v14, %v8785_v49 }
 0x28a   : > { %v3254_v19 = vmax.f32 %v3134_v17, %v8787_v50  ;;  %v3255_v43 = vmax.f32 %v3135_v42, %v8789_v3  ;;  %v3256_v35 = vmax.f32 %v3136_v36, %v8938_v5  ;;  %v3020_v2 = vmax.f32 %v10224_v38, %v8787_v50 }
 0x28b   : > { %v3944_v20 = vmax.f32 %v3804_v46, %v3896_v22  ;;  %v3257_v9 = vmax.f32 %v3137_v11, %v8947_v13  ;;  %v3258_v47 = vmax.f32 %v3138_v60, %v8950_v7  ;;  %v3373_v8 = vmax.f32 %v3253_v27, %v8938_v5 }
 0x28c   : > { %v3374_v58 = vmax.f32 %v3254_v19, %v8947_v13  ;;  %v3375_v4 = vmax.f32 %v3255_v43, %v8950_v7  ;;  %v3376_v29 = vmax.f32 %v3256_v35, %v8954_v40  ;;  %v3021_v38 = vmax.f32 %v10225_v54, %v8789_v3 }
 0x28d   : > { %5565 = vmatmul.mubr.msk.f32.gmra.mrb[6].mxu1 %vm1245_vm2, %v3944_v20  ;;  %v8976_v26 = vmax.f32 %v3257_v9, %v8962_v24  ;;  %v8979_v57 = vmax.f32 %v3258_v47, %v8964_v0  ;;  %4198 = vst.msk [vmem:[#allocation2 + $0xe0] sm:$0xff] %vm1245_vm2, %v3944_v20  ;;  %v8985_v6 = vmax.f32 %v3019_v12, %v8938_v5  ;;  %v3417_v45 = vrot.slane %v3373_v8, 7 }
 0x28e   : > { %v3457_v59 = vrot.slane %v3375_v4, 7  ;;  %v3557_v25 = vrot.slane %v3373_v8, 6  ;;  %v3597_v63 = vrot.slane %v3375_v4, 6  ;;  %v3697_v51 = vrot.slane %v3373_v8, 2 }
 0x28f   : > { %v3717_v44 = vrot.slane %v3374_v58, 2  ;;  %v3837_v39 = vrot.slane %v3373_v8, 1  ;;  %v3857_v32 = vrot.slane %v3374_v58, 1  ;;  %v3437_v30 = vrot.slane %v3374_v58, 7 }
 0x290   : > { %v3497_v10 = vsel %vm1930_vm6, %v3457_v59, %v3417_v45  ;;  %v3637_v61 = vsel %vm2071_vm7, %v3597_v63, %v3557_v25  ;;  %v3577_v33 = vrot.slane %v3374_v58, 6  ;;  %v3737_v1 = vrot.slane %v3375_v4, 2  ;;  %v9029_v63 = vld [vmem:[#allocation2 + $0x150] sm:$0xff] }
 0x291   : > { %v3525_v54 = vmax.f32 %v3373_v8, %v3497_v10  ;;  %v3777_v52 = vsel %vm2212_vm4, %v3697_v51, %v3717_v44  ;;  %v3917_v18 = vsel %vm2353_vm5, %v3837_v39, %v3857_v32  ;;  %v3477_v23 = vsel %vm1930_vm6, %v3417_v45, %v3437_v30  ;;  %v9031_v51 = vld [vmem:[#allocation2 + $0x158] sm:$0xff]  ;;  %v9041_v10 = vld [vmem:[#allocation2 + $0x160] sm:$0xff] }
 0x292   : > { %v3617_v41 = vsel %vm2071_vm7, %v3557_v25, %v3577_v33  ;;  %v3877_v53 = vrot.slane %v3375_v4, 1  ;;  %v3418_v31 = vrot.slane %v3376_v29, 7  ;;  %v3526_v34 = vmax.f32 %v3374_v58, %v3477_v23 }
 0x293   : > { %v3665_v56 = vmax.f32 %v3525_v54, %v3637_v61  ;;  %v3757_v21 = vsel %vm2212_vm4, %v3717_v44, %v3737_v1  ;;  %v3458_v55 = vrot.slane %v8979_v57, 7  ;;  %v3558_v37 = vrot.slane %v3376_v29, 6 }
 0x294   : > { %v3897_v62 = vsel %vm2353_vm5, %v3857_v32, %v3877_v53  ;;  %v3598_v28 = vrot.slane %v8979_v57, 6  ;;  %v3698_v22 = vrot.slane %v3376_v29, 2  ;;  %v3666_v48 = vmax.f32 %v3526_v34, %v3617_v41 }
 0x295   : > { %v3805_v15 = vmax.f32 %v3665_v56, %v3777_v52  ;;  %v3498_v14 = vsel %vm1930_vm6, %v3458_v55, %v3418_v31  ;;  %v3718_v17 = vrot.slane %v8976_v26, 2  ;;  %v3838_v46 = vrot.slane %v3376_v29, 1 }
 0x296   : > { %v3527_v42 = vmax.f32 %v3376_v29, %v3498_v14  ;;  %v3638_v36 = vsel %vm2071_vm7, %v3598_v28, %v3558_v37  ;;  %v3858_v11 = vrot.slane %v8976_v26, 1  ;;  %v3806_v12 = vmax.f32 %v3666_v48, %v3757_v21 }
 0x297   : > { %v3945_v60 = vmax.f32 %v3805_v15, %v3917_v18  ;;  %v3778_v27 = vsel %vm2212_vm4, %v3698_v22, %v3718_v17  ;;  %v3438_v19 = vrot.slane %v8976_v26, 7  ;;  %v3578_v20 = vrot.slane %v8976_v26, 6 }
 0x298   : > { %v3667_v43 = vmax.f32 %v3527_v42, %v3638_v36  ;;  %v3918_v35 = vsel %vm2353_vm5, %v3838_v46, %v3858_v11  ;;  %v3738_v9 = vrot.slane %v8979_v57, 2  ;;  %v3946_v47 = vmax.f32 %v3806_v12, %v3897_v62  ;;  %v9077_v12 = vld [vmem:[#allocation2 + $0x168] sm:$0xff] }
 0x299   : > { %5567 = vmatprep.mubr.msk.f32.mxu1 %vm1245_vm2, %v3945_v60  ;;  %v3478_v8 = vsel %vm1930_vm6, %v3418_v31, %v3438_v19  ;;  %v3878_v58 = vrot.slane %v8979_v57, 1  ;;  %v3140_v4 = vmax.f32 %v3020_v2, %v8947_v13  ;;  %4199 = vst.msk [vmem:[#allocation2 + $0xf0] sm:$0xff] %vm1245_vm2, %v3945_v60  ;;  %v3618_v59 = vsel %vm2071_vm7, %v3558_v37, %v3578_v20 }
 0x29a   : > { %v3807_v29 = vmax.f32 %v3667_v43, %v3778_v27  ;;  %v3528_v45 = vmax.f32 %v8976_v26, %v3478_v8  ;;  %v3758_v25 = vsel %vm2212_vm4, %v3718_v17, %v3738_v9  ;;  %5568 = vmatmul.mubr.msk.f32.gmra.mrb[8].mxu1 %vm1245_vm2, %v3946_v47  ;;  %v3141_v57 = vmax.f32 %v3021_v38, %v8950_v7  ;;  %v9079_v27 = vld [vmem:[#allocation2 + $0x170] sm:$0xff]  ;;  %v9086_v8 = vld [vmem:[#allocation2 + $0x178] sm:$0xff] }
 0x29b   : > { %v3898_v2 = vsel %vm2353_vm5, %v3858_v11, %v3878_v58  ;;  %v3259_v26 = vmax.f32 %v8985_v6, %v8954_v40  ;;  %v3260_v44 = vmax.f32 %v3140_v4, %v8962_v24  ;;  %4200 = vst.msk [vmem:[#allocation2 + $0xf8] sm:$0xff] %vm1245_vm2, %v3946_v47  ;;  %v3022_v61 = vmax.f32 %v8785_v49, %v8938_v5 }
 0x29c   : > { %v3947_v39 = vmax.f32 %v3807_v29, %v3918_v35  ;;  %v3668_v32 = vmax.f32 %v3528_v45, %v3618_v59  ;;  %v3023_v30 = vmax.f32 %v8787_v50, %v8947_v13  ;;  %v3261_v33 = vmax.f32 %v3141_v57, %v8964_v0 }
 0x29d   : > { %v3379_v38 = vmax.f32 %v3259_v26, %v9029_v63  ;;  %v3380_v6 = vmax.f32 %v3260_v44, %v9031_v51  ;;  %v3024_v54 = vmax.f32 %v8789_v3, %v8950_v7  ;;  %v3142_v18 = vmax.f32 %v3022_v61, %v8954_v40 }
 0x29e   : > { %5570 = vmatprep.mubr.msk.f32.mxu1 %vm1245_vm2, %v3947_v39  ;;  %v3808_v52 = vmax.f32 %v3668_v32, %v3758_v25  ;;  %v3143_v1 = vmax.f32 %v3023_v30, %v8962_v24  ;;  %4201 = vst.msk [vmem:[#allocation2 + $0x108] sm:$0xff] %vm1245_vm2, %v3947_v39  ;;  %v3025_v49 = vmax.f32 %v8938_v5, %v8954_v40 }
 0x29f   : > { %v3381_v50 = vmax.f32 %v3261_v33, %v9041_v10  ;;  %v3419_v23 = vrot.slane %v3379_v38, 7  ;;  %v3559_v41 = vrot.slane %v3379_v38, 6  ;;  %v3699_v53 = vrot.slane %v3379_v38, 2 }
 0x2a0   : > { %v3948_v31 = vmax.f32 %v3808_v52, %v3898_v2  ;;  %v3719_v56 = vrot.slane %v3380_v6, 2  ;;  %v3839_v3 = vrot.slane %v3379_v38, 1  ;;  %v3859_v34 = vrot.slane %v3380_v6, 1 }
 0x2a1   : > { %v3459_v21 = vrot.slane %v3381_v50, 7  ;;  %v3599_v55 = vrot.slane %v3381_v50, 6  ;;  %v3439_v62 = vrot.slane %v3380_v6, 7  ;;  %v3579_v37 = vrot.slane %v3380_v6, 6 }
 0x2a2   : > { %5571 = vmatmul.mubr.msk.f32.gmra.mrb[10].mxu1 %vm1245_vm2, %v3948_v31  ;;  %v3779_v28 = vsel %vm2212_vm4, %v3699_v53, %v3719_v56  ;;  %v3919_v5 = vsel %vm2353_vm5, %v3839_v3, %v3859_v34  ;;  %v3739_v22 = vrot.slane %v3381_v50, 2  ;;  %v3879_v15 = vrot.slane %v3381_v50, 1  ;;  %4202 = vst.msk [vmem:[#allocation2 + $0x110] sm:$0xff] %vm1245_vm2, %v3948_v31 }
 0x2a3   : > { %v3499_v48 = vsel %vm1930_vm6, %v3459_v21, %v3419_v23  ;;  %v3639_v14 = vsel %vm2071_vm7, %v3599_v55, %v3559_v41  ;;  %v3479_v17 = vsel %vm1930_vm6, %v3419_v23, %v3439_v62  ;;  %v3619_v42 = vsel %vm2071_vm7, %v3559_v41, %v3579_v37  ;;  %v9101_v41 = vld [vmem:[#allocation2 + $0x180] sm:$0xff]  ;;  %v9118_v37 = vld [vmem:[#allocation2 + $0x188] sm:$0xff] }
 0x2a4   : > { %v3529_v36 = vmax.f32 %v3379_v38, %v3499_v48  ;;  %v3530_v46 = vmax.f32 %v3380_v6, %v3479_v17  ;;  %v3759_v11 = vsel %vm2212_vm4, %v3719_v56, %v3739_v22  ;;  %v3899_v60 = vsel %vm2353_vm5, %v3859_v34, %v3879_v15 }
 0x2a5   : > { %v3144_v19 = vmax.f32 %v3024_v54, %v8964_v0  ;;  %v3262_v43 = vmax.f32 %v3142_v18, %v9029_v63  ;;  %v3263_v35 = vmax.f32 %v3143_v1, %v9031_v51  ;;  %v3026_v20 = vmax.f32 %v8947_v13, %v8962_v24 }
 0x2a6   : > { %v3669_v9 = vmax.f32 %v3529_v36, %v3639_v14  ;;  %v3670_v47 = vmax.f32 %v3530_v46, %v3619_v42  ;;  %v3027_v58 = vmax.f32 %v8950_v7, %v8964_v0  ;;  %v3145_v4 = vmax.f32 %v3025_v49, %v9029_v63 }
 0x2a7   : > { %v3264_v29 = vmax.f32 %v3144_v19, %v9041_v10  ;;  %v3382_v45 = vmax.f32 %v3262_v43, %v9077_v12  ;;  %v3383_v59 = vmax.f32 %v3263_v35, %v9079_v27  ;;  %v3146_v25 = vmax.f32 %v3026_v20, %v9031_v51 }
 0x2a8   : > { %v3809_v2 = vmax.f32 %v3669_v9, %v3779_v28  ;;  %v3810_v57 = vmax.f32 %v3670_v47, %v3759_v11  ;;  %v3147_v13 = vmax.f32 %v3027_v58, %v9041_v10  ;;  %v3265_v26 = vmax.f32 %v3145_v4, %v9077_v12  ;;  %v9120_v28 = vld [vmem:[#allocation2 + $0x190] sm:$0xff] }
 0x2a9   : > { %v3384_v44 = vmax.f32 %v3264_v29, %v9086_v8  ;;  %v3420_v39 = vrot.slane %v3382_v45, 7  ;;  %v3560_v7 = vrot.slane %v3382_v45, 6  ;;  %v3700_v32 = vrot.slane %v3382_v45, 2 }
 0x2aa   : > { %v3949_v61 = vmax.f32 %v3809_v2, %v3919_v5  ;;  %v3950_v30 = vmax.f32 %v3810_v57, %v3899_v60  ;;  %v3720_v33 = vrot.slane %v3383_v59, 2  ;;  %v3840_v38 = vrot.slane %v3382_v45, 1  ;;  %v2915_v2 = vld [vmem:[#allocation2 + $0x170] sm:$0xff] }
 0x2ab   : > { %v3460_v6 = vrot.slane %v3384_v44, 7  ;;  %v3600_v54 = vrot.slane %v3384_v44, 6  ;;  %v3860_v52 = vrot.slane %v3383_v59, 1  ;;  %v3440_v18 = vrot.slane %v3383_v59, 7 }
 0x2ac   : > { %5573 = vmatprep.mubr.msk.f32.mxu1 %vm1245_vm2, %v3949_v61  ;;  %v3780_v1 = vsel %vm2212_vm4, %v3700_v32, %v3720_v33  ;;  %v3580_v49 = vrot.slane %v3383_v59, 6  ;;  %v3740_v50 = vrot.slane %v3384_v44, 2  ;;  %v3880_v23 = vrot.slane %v3384_v44, 1  ;;  %4203 = vst.msk [vmem:[#allocation2 + $0x120] sm:$0xff] %vm1245_vm2, %v3949_v61  ;;  %4204 = vst.msk [vmem:[#allocation2 + $0x128] sm:$0xff] %vm1245_vm2, %v3950_v30  ;;  %v9146_v61 = vld [vmem:[#allocation2 + $0x198] sm:$0xff] }
 0x2ad   : > { %5574 = vmatmul.mubr.msk.f32.gmra.mrb[12].mxu1 %vm1245_vm2, %v3950_v30  ;;  %v3500_v53 = vsel %vm1930_vm6, %v3460_v6, %v3420_v39  ;;  %v3640_v31 = vsel %vm2071_vm7, %v3600_v54, %v3560_v7  ;;  %v3920_v56 = vsel %vm2353_vm5, %v3840_v38, %v3860_v52  ;;  %v3480_v3 = vsel %vm1930_vm6, %v3420_v39, %v3440_v18  ;;  %v9151_v38 = vld [vmem:[#allocation2 + $0x1a0] sm:$0xff]  ;;  %v9153_v6 = vld [vmem:[#allocation2 + $0x1b8] sm:$0xff] }
 0x2ae   : > { %v3531_v34 = vmax.f32 %v3382_v45, %v3500_v53  ;;  %v3532_v21 = vmax.f32 %v3383_v59, %v3480_v3  ;;  %v3620_v55 = vsel %vm2071_vm7, %v3560_v7, %v3580_v49  ;;  %v3760_v62 = vsel %vm2212_vm4, %v3720_v33, %v3740_v50 }
 0x2af   : > { %v3900_v5 = vsel %vm2353_vm5, %v3860_v52, %v3880_v23  ;;  %v3266_v22 = vmax.f32 %v3146_v25, %v9079_v27  ;;  %v3267_v15 = vmax.f32 %v3147_v13, %v9086_v8  ;;  %v3385_v48 = vmax.f32 %v3265_v26, %v9101_v41 }
 0x2b0   : > { %v3671_v14 = vmax.f32 %v3531_v34, %v3640_v31  ;;  %v3672_v17 = vmax.f32 %v3532_v21, %v3620_v55  ;;  %v3028_v42 = vmax.f32 %v8954_v40, %v9029_v63  ;;  %v3029_v36 = vmax.f32 %v8962_v24, %v9031_v51  ;;  %v2979_v31 = vld [vmem:[#allocation2 + $0x1a8] sm:$0xff]  ;;  %v3097_v21 = vld [vmem:[#allocation2 + $0x1b0] sm:$0xff] }
 0x2b1   : > { %v3386_v46 = vmax.f32 %v3266_v22, %v9118_v37  ;;  %v3387_v11 = vmax.f32 %v3267_v15, %v9120_v28  ;;  %v3421_v60 = vrot.slane %v3385_v48, 7  ;;  %v3561_v19 = vrot.slane %v3385_v48, 6  ;;  %v3101_v55 = vld [vmem:[#allocation2 + $0x1d0] sm:$0xff] }
 0x2b2   : > { %v3811_v43 = vmax.f32 %v3671_v14, %v3780_v1  ;;  %v3812_v35 = vmax.f32 %v3672_v17, %v3760_v62  ;;  %v3701_v20 = vrot.slane %v3385_v48, 2  ;;  %v3841_v9 = vrot.slane %v3385_v48, 1  ;;  %v10233_v17 = vld [vmem:[#allocation18_spill] sm:$0xff] }
 0x2b3   : > { %v3461_v47 = vrot.slane %v3387_v11, 7  ;;  %v3601_v58 = vrot.slane %v3387_v11, 6  ;;  %v3721_v4 = vrot.slane %v3386_v46, 2  ;;  %v3861_v29 = vrot.slane %v3386_v46, 1 }
 0x2b4   : > { %v3951_v45 = vmax.f32 %v3811_v43, %v3920_v56  ;;  %v3952_v59 = vmax.f32 %v3812_v35, %v3900_v5  ;;  %v3441_v40 = vrot.slane %v3386_v46, 7  ;;  %v3581_v25 = vrot.slane %v3386_v46, 6 }
 0x2b5   : > { %v3501_v24 = vsel %vm1930_vm6, %v3461_v47, %v3421_v60  ;;  %v3641_v57 = vsel %vm2071_vm7, %v3601_v58, %v3561_v19  ;;  %v3781_v13 = vsel %vm2212_vm4, %v3701_v20, %v3721_v4  ;;  %v3921_v26 = vsel %vm2353_vm5, %v3841_v9, %v3861_v29  ;;  %v3217_v47 = vld [vmem:[#allocation2 + $0x1c8] sm:$0xff]  ;;  %v3219_v58 = vld [vmem:[#allocation2 + $0x1d8] sm:$0xff] }
 0x2b6   : > { %5576 = vmatprep.mubr.msk.f32.mxu1 %vm1245_vm2, %v3951_v45  ;;  %v3533_v44 = vmax.f32 %v3385_v48, %v3501_v24  ;;  %v3481_v39 = vsel %vm1930_vm6, %v3421_v60, %v3441_v40  ;;  %v3621_v7 = vsel %vm2071_vm7, %v3561_v19, %v3581_v25  ;;  %v3741_v32 = vrot.slane %v3387_v11, 2  ;;  %4205 = vst.msk [vmem:[#allocation2 + $0x138] sm:$0xff] %vm1245_vm2, %v3951_v45  ;;  %v3099_v19 = vld [vmem:[#allocation2 + $0x1c0] sm:$0xff] }
 0x2b7   : > { %4206 = vst.msk [vmem:[#allocation2 + $0x140] sm:$0xff] %vm1245_vm2, %v3952_v59  ;;  %5577 = vmatmul.mubr.msk.f32.gmra.mrb[14].mxu1 %vm1245_vm2, %v3952_v59  ;;  %v3534_v30 = vmax.f32 %v3386_v46, %v3481_v39  ;;  %v3881_v33 = vrot.slane %v3387_v11, 1  ;;  %v3030_v54 = vmax.f32 %v8964_v0, %v9041_v10  ;;  %v3031_v52 = vmax.f32 %v9029_v63, %v9077_v12  ;;  %v9181_v11 = vpop.f32.mrb[40].mxu0  ;;  %v10235_v39 = vld [vmem:[#allocation11_spill] sm:$0xff] }
 0x2b8   : > { %v3673_v18 = vmax.f32 %v3533_v44, %v3641_v57  ;;  %v3761_v1 = vsel %vm2212_vm4, %v3721_v4, %v3741_v32  ;;  %v3032_v49 = vmax.f32 %v9031_v51, %v2915_v2  ;;  %v3034_v50 = vmax.f32 %v9077_v12, %v9101_v41 }
 0x2b9   : > { %v3674_v23 = vmax.f32 %v3534_v30, %v3621_v7  ;;  %v3901_v53 = vsel %vm2353_vm5, %v3861_v29, %v3881_v33  ;;  %v3035_v56 = vmax.f32 %v2915_v2, %v9118_v37  ;;  %v3037_v0 = vmax.f32 %v9101_v41, %v9146_v61  ;;  %v3339_v7 = vld [vmem:[#allocation2 + $0x1f0] sm:$0xff] }
 0x2ba   : > { %v3813_v63 = vmax.f32 %v3673_v18, %v3781_v13  ;;  %v3038_v10 = vmax.f32 %v9118_v37, %v9151_v38  ;;  %v3039_v3 = vmax.f32 %v9120_v28, %v2979_v31  ;;  %v3041_v51 = vmax.f32 %v9151_v38, %v9153_v6 }
 0x2bb   : > { %v3814_v34 = vmax.f32 %v3674_v23, %v3761_v1  ;;  %v3148_v62 = vmax.f32 %v3028_v42, %v9077_v12  ;;  %v3149_v5 = vmax.f32 %v3029_v36, %v9079_v27  ;;  %v3150_v22 = vmax.f32 %v3030_v54, %v9086_v8  ;;  %v10234_v42 = vld [vmem:[#allocation22_spill] sm:$0xff]  ;;  %v9186_v36 = vpop.f32.mrb[41].mxu0 }
 0x2bc   : > { %v3953_v15 = vmax.f32 %v3813_v63, %v3921_v26  ;;  %v3151_v48 = vmax.f32 %v3031_v52, %v9101_v41  ;;  %v3152_v14 = vmax.f32 %v3032_v49, %v9118_v37  ;;  %v3153_v46 = vmax.f32 %v10233_v17, %v9120_v28  ;;  %v10237_v23 = vld [vmem:[#allocation14_spill] sm:$0xff] }
 0x2bd   : > { %v3954_v60 = vmax.f32 %v3814_v34, %v3901_v53  ;;  %v3154_v43 = vmax.f32 %v3034_v50, %v9146_v61  ;;  %v3155_v12 = vmax.f32 %v3035_v56, %v9151_v38  ;;  %v3156_v27 = vmax.f32 %v10234_v42, %v2979_v31  ;;  %v10238_v17 = vld [vmem:[#allocation6_spill] sm:$0xff] }
 0x2be   : > { %5579 = vmatprep.mubr.msk.f32.mxu1 %vm1245_vm2, %v3953_v15  ;;  %v3157_v8 = vmax.f32 %v3037_v0, %v3097_v21  ;;  %v3158_v35 = vmax.f32 %v3038_v10, %v9153_v6  ;;  %v3159_v20 = vmax.f32 %v3039_v3, %v3099_v19  ;;  %v3161_v9 = vmax.f32 %v3041_v51, %v3101_v55 }
 0x2bf   : > { %4207 = vst.msk [vmem:[#allocation2 + $0x150] sm:$0xff] %vm1245_vm2, %v3953_v15  ;;  %5580 = vmatmul.mubr.msk.f32.gmra.mrb[0].mxu1 %vm1245_vm2, %v3954_v60  ;;  %v3268_v4 = vmax.f32 %v3148_v62, %v9101_v41  ;;  %v3269_v29 = vmax.f32 %v3149_v5, %v9118_v37  ;;  %v3270_v45 = vmax.f32 %v3150_v22, %v9120_v28  ;;  %4208 = vst.msk [vmem:[#allocation2 + $0x158] sm:$0xff] %vm1245_vm2, %v3954_v60 }
 0x2c0   : > { %v3271_v59 = vmax.f32 %v3151_v48, %v9146_v61  ;;  %v3272_v40 = vmax.f32 %v3152_v14, %v9151_v38  ;;  %v3273_v25 = vmax.f32 %v3153_v46, %v2979_v31  ;;  %v3274_v2 = vmax.f32 %v3154_v43, %v3097_v21 }
 0x2c1   : > { %v3275_v24 = vmax.f32 %v3155_v12, %v9153_v6  ;;  %v3276_v57 = vmax.f32 %v3156_v27, %v3099_v19  ;;  %v3277_v13 = vmax.f32 %v3157_v8, %v3217_v47  ;;  %v3278_v26 = vmax.f32 %v3158_v35, %v3101_v55  ;;  %v9238_v3 = vpop.f32.mrb[42].mxu0 }
 0x2c2   : > { %v3279_v44 = vmax.f32 %v3159_v20, %v3219_v58  ;;  %v3281_v41 = vmax.f32 %v3161_v9, %v10235_v39  ;;  %v9201_v37 = vmax.f32 %v3268_v4, %v9146_v61  ;;  %v9204_v28 = vmax.f32 %v3269_v29, %v9151_v38  ;;  %v10236_v61 = vld [vmem:[#allocation15_spill] sm:$0xff]  ;;  %v9244_v62 = vpop.f32.mrb[43].mxu0 }
 0x2c3   : > { %v9206_v32 = vmax.f32 %v3270_v45, %v2979_v31  ;;  %v9208_v30 = vmax.f32 %v3271_v59, %v3097_v21  ;;  %v9211_v33 = vmax.f32 %v3272_v40, %v9153_v6  ;;  %v9213_v54 = vmax.f32 %v3273_v25, %v3099_v19 }
 0x2c4   : > { %v9215_v52 = vmax.f32 %v3274_v2, %v3217_v47  ;;  %v9217_v18 = vmax.f32 %v3275_v24, %v3101_v55  ;;  %v9219_v1 = vmax.f32 %v3276_v57, %v3219_v58  ;;  %v9222_v49 = vmax.f32 %v3277_v13, %v10236_v61 }
 0x2c5   : > { %v9225_v38 = vmax.f32 %v3278_v26, %v10235_v39  ;;  %v9227_v50 = vmax.f32 %v3279_v44, %v3339_v7  ;;  %v9230_v53 = vmax.f32 %v3281_v41, %v10237_v23  ;;  %v3422_v6 = vrot.slane %v9201_v37, 7 }
 0x2c6   : > { %v3423_v31 = vrot.slane %v9208_v30, 7  ;;  %v3424_v56 = vrot.slane %v9215_v52, 7  ;;  %v3425_v0 = vrot.slane %v9222_v49, 7  ;;  %v3443_v63 = vrot.slane %v9211_v33, 7 }
 0x2c7   : > { %v3444_v10 = vrot.slane %v9217_v18, 7  ;;  %v3445_v51 = vrot.slane %v9225_v38, 7  ;;  %v3446_v34 = vrot.slane %v9230_v53, 7  ;;  %v3462_v21 = vrot.slane %v9206_v32, 7 }
 0x2c8   : > { %v3463_v55 = vrot.slane %v9213_v54, 7  ;;  %v3464_v5 = vrot.slane %v9219_v1, 7  ;;  %v3465_v22 = vrot.slane %v9227_v50, 7  ;;  %v3483_v15 = vsel %vm1930_vm6, %v3423_v31, %v3443_v63 }
 0x2c9   : > { %v3484_v48 = vsel %vm1930_vm6, %v3424_v56, %v3444_v10  ;;  %v3485_v14 = vsel %vm1930_vm6, %v3425_v0, %v3445_v51  ;;  %v10239_v46 = vrot.slane %v10238_v17, 7  ;;  %v3502_v19 = vsel %vm1930_vm6, %v3462_v21, %v3422_v6 }
 0x2ca   : > { %v3503_v43 = vsel %vm1930_vm6, %v3463_v55, %v3423_v31  ;;  %v3504_v12 = vsel %vm1930_vm6, %v3464_v5, %v3424_v56  ;;  %v3505_v42 = vsel %vm1930_vm6, %v3465_v22, %v3425_v0  ;;  %v3535_v27 = vmax.f32 %v9201_v37, %v3502_v19 }
 0x2cb   : > { %v3486_v60 = vsel %vm1930_vm6, %v10239_v46, %v3446_v34  ;;  %v3537_v8 = vmax.f32 %v9208_v30, %v3503_v43  ;;  %v3538_v35 = vmax.f32 %v9211_v33, %v3483_v15  ;;  %v3539_v20 = vmax.f32 %v9215_v52, %v3504_v12 }
 0x2cc   : > { %v3540_v9 = vmax.f32 %v9217_v18, %v3484_v48  ;;  %v3541_v47 = vmax.f32 %v9222_v49, %v3505_v42  ;;  %v3542_v58 = vmax.f32 %v9225_v38, %v3485_v14  ;;  %v3544_v4 = vmax.f32 %v9230_v53, %v3486_v60 }
 0x2cd   : > { %v3562_v29 = vrot.slane %v9201_v37, 6  ;;  %v3563_v45 = vrot.slane %v9208_v30, 6  ;;  %v3564_v59 = vrot.slane %v9215_v52, 6  ;;  %v3565_v40 = vrot.slane %v9222_v49, 6 }
 0x2ce   : > { %v3583_v25 = vrot.slane %v9211_v33, 6  ;;  %v3584_v2 = vrot.slane %v9217_v18, 6  ;;  %v3585_v24 = vrot.slane %v9225_v38, 6  ;;  %v3586_v57 = vrot.slane %v9230_v53, 6  ;;  %v9326_v60 = vpop.f32.mrb[44].mxu0 }
 0x2cf   : > { %v3602_v13 = vrot.slane %v9206_v32, 6  ;;  %v3603_v26 = vrot.slane %v9213_v54, 6  ;;  %v3604_v44 = vrot.slane %v9219_v1, 6  ;;  %v3605_v39 = vrot.slane %v9227_v50, 6 }
 0x2d0   : > { %v3623_v41 = vsel %vm2071_vm7, %v3563_v45, %v3583_v25  ;;  %v3624_v7 = vsel %vm2071_vm7, %v3564_v59, %v3584_v2  ;;  %v3625_v61 = vsel %vm2071_vm7, %v3565_v40, %v3585_v24  ;;  %v10240_v23 = vrot.slane %v10238_v17, 6 }
 0x2d1   : > { %v3642_v56 = vsel %vm2071_vm7, %v3602_v13, %v3562_v29  ;;  %v3643_v0 = vsel %vm2071_vm7, %v3603_v26, %v3563_v45  ;;  %v3644_v63 = vsel %vm2071_vm7, %v3604_v44, %v3564_v59  ;;  %v3645_v10 = vsel %vm2071_vm7, %v3605_v39, %v3565_v40 }
 0x2d2   : > { %v3626_v31 = vsel %vm2071_vm7, %v10240_v23, %v3586_v57  ;;  %v9308_v51 = vmax.f32 %v3535_v27, %v3642_v56  ;;  %v9310_v34 = vmax.f32 %v3537_v8, %v3643_v0  ;;  %v9312_v21 = vmax.f32 %v3538_v35, %v3623_v41  ;;  %v9332_v27 = vpop.f32.mrb[45].mxu0 }
 0x2d3   : > { %v9314_v55 = vmax.f32 %v3539_v20, %v3644_v63  ;;  %v9316_v5 = vmax.f32 %v3540_v9, %v3624_v7  ;;  %v9318_v22 = vmax.f32 %v3541_v47, %v3645_v10  ;;  %v9320_v15 = vmax.f32 %v3542_v58, %v3625_v61  ;;  %v10243_v63 = vld [vmem:[#allocation33_spill] sm:$0xff] }
 0x2d4   : > { %v9322_v48 = vmax.f32 %v3544_v4, %v3626_v31  ;;  %v3702_v14 = vrot.slane %v9201_v37, 2  ;;  %v3703_v46 = vrot.slane %v9208_v30, 2  ;;  %v3704_v19 = vrot.slane %v9215_v52, 2  ;;  %v10241_v4 = vld [vmem:[#allocation23_spill] sm:$0xff] }
 0x2d5   : > { %v3705_v43 = vrot.slane %v9222_v49, 2  ;;  %v3722_v12 = vrot.slane %v9204_v28, 2  ;;  %v3723_v42 = vrot.slane %v9211_v33, 2  ;;  %v3724_v8 = vrot.slane %v9217_v18, 2 }
 0x2d6   : > { %v3725_v35 = vrot.slane %v9225_v38, 2  ;;  %v3726_v20 = vrot.slane %v9230_v53, 2  ;;  %v3743_v9 = vrot.slane %v9213_v54, 2  ;;  %v3744_v47 = vrot.slane %v9219_v1, 2 }
 0x2d7   : > { %v3745_v58 = vrot.slane %v9227_v50, 2  ;;  %v3746_v45 = vrot.slane %v10241_v4, 2  ;;  %v3782_v59 = vsel %vm2212_vm4, %v3702_v14, %v3722_v12  ;;  %v3783_v25 = vsel %vm2212_vm4, %v3703_v46, %v3723_v42 }
 0x2d8   : > { %v3763_v40 = vsel %vm2212_vm4, %v3723_v42, %v3743_v9  ;;  %v3784_v2 = vsel %vm2212_vm4, %v3704_v19, %v3724_v8  ;;  %v3785_v24 = vsel %vm2212_vm4, %v3705_v43, %v3725_v35  ;;  %v3764_v57 = vsel %vm2212_vm4, %v3724_v8, %v3744_v47  ;;  %v9375_v19 = vpop.f32.mrb[46].mxu0  ;;  %v4225_v47 = vld [vmem:[#allocation2 + $0xa0] sm:$0xff] }
 0x2d9   : > { %v3765_v13 = vsel %vm2212_vm4, %v3725_v35, %v3745_v58  ;;  %v3766_v26 = vsel %vm2212_vm4, %v3726_v20, %v3746_v45  ;;  %v10242_v44 = vrot.slane %v10238_v17, 2  ;;  %v3815_v41 = vmax.f32 %v9308_v51, %v3782_v59 }
 0x2da   : > { %v3817_v7 = vmax.f32 %v9310_v34, %v3783_v25  ;;  %v3818_v61 = vmax.f32 %v9312_v21, %v3763_v40  ;;  %v3819_v23 = vmax.f32 %v9314_v55, %v3784_v2  ;;  %v3820_v31 = vmax.f32 %v9316_v5, %v3764_v57  ;;  %v4247_v40 = vld [vmem:[#allocation2 + $0xa8] sm:$0xff]  ;;  %v4248_v25 = vld [vmem:[#allocation2 + $0xb0] sm:$0xff]  ;;  %v4249_v2 = vld [vmem:[#allocation2 + $0xb8] sm:$0xff] }
 0x2db   : > { %v3786_v39 = vsel %vm2212_vm4, %v10242_v44, %v3726_v20  ;;  %v3821_v56 = vmax.f32 %v9318_v22, %v3785_v24  ;;  %v3822_v0 = vmax.f32 %v9320_v15, %v3765_v13  ;;  %v3824_v14 = vmax.f32 %v9322_v48, %v3766_v26  ;;  %v9381_v15 = vpop.f32.mrb[47].mxu0  ;;  %v9413_v44 = vld [vmem:[#allocation2 + $0xc0] sm:$0xff] }
 0x2dc   : > { %v3823_v10 = vmax.f32 %v10243_v63, %v3786_v39  ;;  %v3842_v46 = vrot.slane %v9201_v37, 1  ;;  %v3843_v51 = vrot.slane %v9208_v30, 1  ;;  %v3844_v34 = vrot.slane %v9215_v52, 1  ;;  %v9415_v39 = vld [vmem:[#allocation2 + $0xd0] sm:$0xff] }
 0x2dd   : > { %v3845_v21 = vrot.slane %v9222_v49, 1  ;;  %v3862_v55 = vrot.slane %v9204_v28, 1  ;;  %v3863_v5 = vrot.slane %v9211_v33, 1  ;;  %v3864_v22 = vrot.slane %v9217_v18, 1  ;;  %v9454_v37 = vld [vmem:[#allocation2 + $0xf0] sm:$0xff] }
 0x2de   : > { %v3865_v48 = vrot.slane %v9225_v38, 1  ;;  %v3866_v43 = vrot.slane %v9230_v53, 1  ;;  %v3883_v30 = vrot.slane %v9213_v54, 1  ;;  %v3884_v52 = vrot.slane %v9219_v1, 1 }
 0x2df   : > { %v3885_v42 = vrot.slane %v9227_v50, 1  ;;  %v3886_v49 = vrot.slane %v10241_v4, 1  ;;  %v3922_v33 = vsel %vm2353_vm5, %v3842_v46, %v3862_v55  ;;  %v3923_v18 = vsel %vm2353_vm5, %v3843_v51, %v3863_v5  ;;  %v9433_v46 = vpop.f32.mrb[48].mxu0 }
 0x2e0   : > { %v3903_v38 = vsel %vm2353_vm5, %v3863_v5, %v3883_v30  ;;  %v3904_v54 = vsel %vm2353_vm5, %v3864_v22, %v3884_v52  ;;  %v3924_v1 = vsel %vm2353_vm5, %v3844_v34, %v3864_v22  ;;  %v3925_v50 = vsel %vm2353_vm5, %v3845_v21, %v3865_v48  ;;  %v9443_v34 = vld [vmem:[#allocation2 + $0xe0] sm:$0xff]  ;;  %v9445_v21 = vld [vmem:[#allocation2 + $0xe8] sm:$0xff]  ;;  %v9448_v22 = vpop.f32.mrb[49].mxu0 }
 0x2e1   : > { %v3905_v53 = vsel %vm2353_vm5, %v3865_v48, %v3885_v42  ;;  %v3906_v8 = vsel %vm2353_vm5, %v3866_v43, %v3886_v49  ;;  %v10244_v35 = vrot.slane %v10238_v17, 1  ;;  %v3955_v9 = vmax.f32 %v3815_v41, %v3922_v33  ;;  %v4223_v17 = vld [vmem:[#allocation2 + $0x90] sm:$0xff]  ;;  %v9464_v42 = vld [vmem:[#allocation2 + $0xf8] sm:$0xff]  ;;  %v9466_v49 = vld [vmem:[#allocation2 + $0x100] sm:$0xff] }
 0x2e2   : > { %v3957_v58 = vmax.f32 %v3817_v7, %v3923_v18  ;;  %v3958_v4 = vmax.f32 %v3818_v61, %v3903_v38  ;;  %v3959_v45 = vmax.f32 %v3819_v23, %v3924_v1  ;;  %v3960_v59 = vmax.f32 %v3820_v31, %v3904_v54  ;;  %v4224_v31 = vld [vmem:[#allocation2 + $0x98] sm:$0xff] }
 0x2e3   : > { %v3926_v20 = vsel %vm2353_vm5, %v10244_v35, %v3866_v43  ;;  %v3961_v24 = vmax.f32 %v3821_v56, %v3925_v50  ;;  %v3962_v57 = vmax.f32 %v3822_v0, %v3905_v53  ;;  %v3964_v26 = vmax.f32 %v3824_v14, %v3906_v8  ;;  %5582 = vmatprep.mubr.msk.f32.mxu1 %vm1245_vm2, %v3955_v9  ;;  %v9425_v56 = vld [vmem:[#allocation2 + $0xc8] sm:$0xff]  ;;  %v9431_v14 = vld [vmem:[#allocation2 + $0xd8] sm:$0xff] }
 0x2e4   : > { %v3963_v13 = vmax.f32 %v3823_v10, %v3926_v20  ;;  %4209 = vst.msk [vmem:[#allocation2 + $0x168] sm:$0xff] %vm1245_vm2, %v3955_v9  ;;  %4211 = vst.msk [vmem:[#allocation2 + $0x180] sm:$0xff] %vm1245_vm2, %v3957_v58  ;;  %v3442_v41 = vrot.slane %v9204_v28, 7  ;;  %v3582_v7 = vrot.slane %v9204_v28, 6  ;;  %v3742_v61 = vrot.slane %v9206_v32, 2  ;;  %v9473_v50 = vld [vmem:[#allocation2 + $0x108] sm:$0xff] }
 0x2e5   : > { %4212 = vst.msk [vmem:[#allocation2 + $0x188] sm:$0xff] %vm1245_vm2, %v3958_v4  ;;  %4213 = vst.msk [vmem:[#allocation2 + $0x198] sm:$0xff] %vm1245_vm2, %v3959_v45  ;;  %v3882_v23 = vrot.slane %v9206_v32, 1  ;;  %v4271_v0 = vmax.f32 %v4223_v17, %v4247_v40  ;;  %v4272_v63 = vmax.f32 %v4224_v31, %v4248_v25  ;;  %v4273_v10 = vmax.f32 %v4225_v47, %v4249_v2  ;;  %v9496_v31 = vld [vmem:[#allocation2 + $0x110] sm:$0xff] }
 0x2e6   : > { %4214 = vst.msk [vmem:[#allocation2 + $0x1a0] sm:$0xff] %vm1245_vm2, %v3960_v59  ;;  %4215 = vst.msk [vmem:[#allocation2 + $0x1b0] sm:$0xff] %vm1245_vm2, %v3961_v24  ;;  %v3482_v32 = vsel %vm1930_vm6, %v3422_v6, %v3442_v41  ;;  %v3622_v51 = vsel %vm2071_vm7, %v3562_v29, %v3582_v7  ;;  %v4274_v5 = vmax.f32 %v4247_v40, %v9413_v44 }
 0x2e7   : > { %4216 = vst.msk [vmem:[#allocation2 + $0x1b8] sm:$0xff] %vm1245_vm2, %v3962_v57  ;;  %4217 = vst.msk [vmem:[#allocation2 + $0x1c8] sm:$0xff] %vm1245_vm2, %v3963_v13  ;;  %v3536_v48 = vmax.f32 %v9204_v28, %v3482_v32  ;;  %v4319_v43 = vmax.f32 %v4271_v0, %v9413_v44  ;;  %v4320_v30 = vmax.f32 %v4272_v63, %v9425_v56 }
 0x2e8   : > { %4218 = vst.msk [vmem:[#allocation2 + $0x1d0] sm:$0xff] %vm1245_vm2, %v3964_v26  ;;  %v4321_v6 = vmax.f32 %v4273_v10, %v9415_v39  ;;  %v3762_v29 = vsel %vm2212_vm4, %v3722_v12, %v3742_v61  ;;  %v3902_v52 = vsel %vm2353_vm5, %v3862_v55, %v3882_v23  ;;  %v4276_v33 = vmax.f32 %v4249_v2, %v9415_v39 }
 0x2e9   : > { %v4322_v18 = vmax.f32 %v4274_v5, %v9431_v14  ;;  %v3676_v38 = vmax.f32 %v3536_v48, %v3622_v51  ;;  %v4367_v54 = vmax.f32 %v4319_v43, %v9431_v14  ;;  %v4368_v1 = vmax.f32 %v4320_v30, %v9443_v34 }
 0x2ea   : > { %v4369_v12 = vmax.f32 %v4321_v6, %v9445_v21  ;;  %v4275_v28 = vmax.f32 %v4248_v25, %v9425_v56  ;;  %v4324_v55 = vmax.f32 %v4276_v33, %v9445_v21  ;;  %v4277_v8 = vmax.f32 %v9413_v44, %v9431_v14 }
 0x2eb   : > { %v4370_v53 = vmax.f32 %v4322_v18, %v9454_v37  ;;  %v3816_v35 = vmax.f32 %v3676_v38, %v3762_v29  ;;  %v4415_v20 = vmax.f32 %v4367_v54, %v9454_v37  ;;  %v4416_v9 = vmax.f32 %v4368_v1, %v9464_v42 }
 0x2ec   : > { %v4417_v47 = vmax.f32 %v4369_v12, %v9466_v49  ;;  %v4323_v58 = vmax.f32 %v4275_v28, %v9443_v34  ;;  %v4372_v4 = vmax.f32 %v4324_v55, %v9466_v49  ;;  %v4278_v59 = vmax.f32 %v9425_v56, %v9443_v34  ;;  %v9498_v56 = vld [vmem:[#allocation2 + $0x118] sm:$0xff]  ;;  %v9511_v33 = vpop.f32.mrb[50].mxu0 }
 0x2ed   : > { %v9486_v45 = vmax.f32 %v4370_v53, %v9473_v50  ;;  %v3956_v40 = vmax.f32 %v3816_v35, %v3902_v52  ;;  %v4439_v25 = vrot.slane %v4415_v20, 7  ;;  %v4447_v2 = vrot.slane %v4416_v9, 7  ;;  %v9517_v1 = vpop.f32.mrb[51].mxu0 }
 0x2ee   : > { %v4455_v24 = vrot.slane %v4417_v47, 7  ;;  %v4495_v57 = vrot.slane %v4415_v20, 6  ;;  %v4503_v13 = vrot.slane %v4416_v9, 6  ;;  %v4511_v26 = vrot.slane %v4417_v47, 6 }
 0x2ef   : > { %v4551_v17 = vrot.slane %v4415_v20, 2  ;;  %5583 = vmatmul.mubr.msk.f32.gmra.mrb[2].mxu1 %vm1245_vm2, %v3956_v40  ;;  %4210 = vst.msk [vmem:[#allocation2 + $0x170] sm:$0xff] %vm1245_vm2, %v3956_v40  ;;  %v4463_v41 = vsel %vm1930_vm6, %v4439_v25, %v4447_v2  ;;  %v4559_v61 = vrot.slane %v4416_v9, 2  ;;  %v4567_v23 = vrot.slane %v4417_v47, 2 }
 0x2f0   : > { %v4471_v7 = vsel %vm1930_vm6, %v4455_v24, %v4439_v25  ;;  %v4519_v63 = vsel %vm2071_vm7, %v4495_v57, %v4503_v13  ;;  %v4371_v10 = vmax.f32 %v4323_v58, %v9464_v42  ;;  %v4279_v32 = vmax.f32 %v9415_v39, %v9445_v21 }
 0x2f1   : > { %v4479_v0 = vmax.f32 %v4415_v20, %v4471_v7  ;;  %v4527_v51 = vsel %vm2071_vm7, %v4511_v26, %v4495_v57  ;;  %v4575_v5 = vsel %vm2212_vm4, %v4559_v61, %v4567_v23  ;;  %v4607_v48 = vrot.slane %v4415_v20, 1 }
 0x2f2   : > { %v4615_v43 = vrot.slane %v4416_v9, 1  ;;  %v4480_v6 = vmax.f32 %v4416_v9, %v4463_v41  ;;  %v4419_v29 = vmax.f32 %v4371_v10, %v9496_v31  ;;  %v4420_v52 = vmax.f32 %v4372_v4, %v9498_v56 }
 0x2f3   : > { %v4535_v30 = vmax.f32 %v4479_v0, %v4527_v51  ;;  %v4583_v18 = vsel %vm2212_vm4, %v4551_v17, %v4559_v61  ;;  %v4623_v39 = vrot.slane %v4417_v47, 1  ;;  %v4440_v38 = vrot.slane %v9486_v45, 7 }
 0x2f4   : > { %v4496_v54 = vrot.slane %v9486_v45, 6  ;;  %v4536_v28 = vmax.f32 %v4480_v6, %v4519_v63  ;;  %v4456_v55 = vrot.slane %v4420_v52, 7  ;;  %v4512_v53 = vrot.slane %v4420_v52, 6 }
 0x2f5   : > { %v4591_v12 = vmax.f32 %v4535_v30, %v4583_v18  ;;  %v4639_v35 = vsel %vm2353_vm5, %v4607_v48, %v4615_v43  ;;  %v4552_v20 = vrot.slane %v9486_v45, 2  ;;  %v4560_v9 = vrot.slane %v4419_v29, 2  ;;  %v9545_v48 = vld [vmem:[#allocation2 + $0x120] sm:$0xff]  ;;  %v9556_v18 = vld [vmem:[#allocation2 + $0x130] sm:$0xff] }
 0x2f6   : > { %v4608_v58 = vrot.slane %v9486_v45, 1  ;;  %v4592_v47 = vmax.f32 %v4536_v28, %v4575_v5  ;;  %v4472_v40 = vsel %vm1930_vm6, %v4456_v55, %v4440_v38  ;;  %v4616_v25 = vrot.slane %v4419_v29, 1 }
 0x2f7   : > { %v4647_v4 = vmax.f32 %v4591_v12, %v4639_v35  ;;  %v4631_v2 = vsel %vm2353_vm5, %v4615_v43, %v4623_v39  ;;  %v4481_v24 = vmax.f32 %v9486_v45, %v4472_v40  ;;  %v4528_v57 = vsel %vm2071_vm7, %v4512_v53, %v4496_v54  ;;  %v9547_v43 = vld [vmem:[#allocation2 + $0x128] sm:$0xff] }
 0x2f8   : > { %v4448_v13 = vrot.slane %v4419_v29, 7  ;;  %v4648_v26 = vmax.f32 %v4592_v47, %v4631_v2  ;;  %v4504_v17 = vrot.slane %v4419_v29, 6  ;;  %v4568_v41 = vrot.slane %v4420_v52, 2 }
 0x2f9   : > { %5587 = vmatprep.mubr.msk.f32.mxu1 %vm1245_vm2, %v4647_v4  ;;  %v4624_v7 = vrot.slane %v4420_v52, 1  ;;  %v4537_v61 = vmax.f32 %v4481_v24, %v4528_v57  ;;  %v4325_v0 = vmax.f32 %v4277_v8, %v9454_v37  ;;  %v4326_v45 = vmax.f32 %v4278_v59, %v9464_v42 }
 0x2fa   : > { %v4464_v23 = vsel %vm1930_vm6, %v4440_v38, %v4448_v13  ;;  %5588 = vmatmul.mubr.msk.f32.vlgmr.msra.gmra.mrb[4].mxu1 %vm1245_vm2, %v4648_v26  ;;  %v4584_v63 = vsel %vm2212_vm4, %v4552_v20, %v4560_v9  ;;  %v4640_v10 = vsel %vm2353_vm5, %v4608_v58, %v4616_v25  ;;  %v4520_v5 = vsel %vm2071_vm7, %v4496_v54, %v4504_v17 }
 0x2fb   : > { %v4482_v51 = vmax.f32 %v4419_v29, %v4464_v23  ;;  %v4593_v44 = vmax.f32 %v4537_v61, %v4584_v63  ;;  %v4327_v8 = vmax.f32 %v4279_v32, %v9466_v49  ;;  %v4373_v59 = vmax.f32 %v4325_v0, %v9473_v50 }
 0x2fc   : > { %v4374_v30 = vmax.f32 %v4326_v45, %v9496_v31  ;;  %v4576_v52 = vsel %vm2212_vm4, %v4560_v9, %v4568_v41  ;;  %v4632_v29 = vsel %vm2353_vm5, %v4616_v25, %v4624_v7  ;;  %v4282_v39 = vmax.f32 %v9445_v21, %v9466_v49 }
 0x2fd   : > { %v4538_v6 = vmax.f32 %v4482_v51, %v4520_v5  ;;  %v4649_v38 = vmax.f32 %v4593_v44, %v4640_v10  ;;  %v4375_v54 = vmax.f32 %v4327_v8, %v9498_v56  ;;  %v4421_v32 = vmax.f32 %v4373_v59, %v9545_v48  ;;  %v9585_v51 = vld [vmem:[#allocation2 + $0x138] sm:$0xff]  ;;  %v9587_v5 = vld [vmem:[#allocation2 + $0x140] sm:$0xff]  ;;  %v9589_v44 = vld [vmem:[#allocation2 + $0x148] sm:$0xff] }
 0x2fe   : > { %v4422_v12 = vmax.f32 %v4374_v30, %v9547_v43  ;;  %v4280_v55 = vmax.f32 %v9431_v14, %v9454_v37  ;;  %v4281_v53 = vmax.f32 %v9443_v34, %v9464_v42  ;;  %v4330_v35 = vmax.f32 %v4282_v39, %v9498_v56 }
 0x2ff   : > { %v4594_v28 = vmax.f32 %v4538_v6, %v4576_v52  ;;  %5590 = vmatprep.mubr.msk.f32.mxu1 %vm1245_vm2, %v4649_v38  ;;  %v4423_v21 = vmax.f32 %v4375_v54, %v9556_v18  ;;  %v4441_v20 = vrot.slane %v4421_v32, 7  ;;  %v4497_v9 = vrot.slane %v4421_v32, 6 }
 0x300   : > { %v4553_v58 = vrot.slane %v4421_v32, 2  ;;  %v4561_v47 = vrot.slane %v4422_v12, 2  ;;  %v4609_v40 = vrot.slane %v4421_v32, 1  ;;  %v4617_v25 = vrot.slane %v4422_v12, 1 }
 0x301   : > { %v4650_v4 = vmax.f32 %v4594_v28, %v4632_v29  ;;  %v4457_v2 = vrot.slane %v4423_v21, 7  ;;  %v4513_v24 = vrot.slane %v4423_v21, 6  ;;  %v4449_v57 = vrot.slane %v4422_v12, 7 }
 0x302   : > { %v4505_v14 = vrot.slane %v4422_v12, 6  ;;  %v4585_v34 = vsel %vm2212_vm4, %v4553_v58, %v4561_v47  ;;  %v4569_v13 = vrot.slane %v4423_v21, 2  ;;  %v4328_v26 = vmax.f32 %v4280_v55, %v9473_v50 }
 0x303   : > { %5591 = vmatmul.mubr.msk.f32.gmra.mrb[6].mxu1 %vm1245_vm2, %v4650_v4  ;;  %v4329_v17 = vmax.f32 %v4281_v53, %v9496_v31  ;;  %v4473_v41 = vsel %vm1930_vm6, %v4457_v2, %v4441_v20  ;;  %v4641_v7 = vsel %vm2353_vm5, %v4609_v40, %v4617_v25  ;;  %v4465_v61 = vsel %vm1930_vm6, %v4441_v20, %v4449_v57 }
 0x304   : > { %v4625_v23 = vrot.slane %v4423_v21, 1  ;;  %v4483_v0 = vmax.f32 %v4421_v32, %v4473_v41  ;;  %v4529_v45 = vsel %vm2071_vm7, %v4513_v24, %v4497_v9  ;;  %v4484_v63 = vmax.f32 %v4422_v12, %v4465_v61  ;;  %v9618_v61 = vld [vmem:[#allocation2 + $0x158] sm:$0xff] }
 0x305   : > { %v4521_v10 = vsel %vm2071_vm7, %v4497_v9, %v4505_v14  ;;  %v4577_v8 = vsel %vm2212_vm4, %v4561_v47, %v4569_v13  ;;  %v4376_v59 = vmax.f32 %v4328_v26, %v9545_v48  ;;  %v4377_v30 = vmax.f32 %v4329_v17, %v9547_v43 }
 0x306   : > { %v4378_v6 = vmax.f32 %v4330_v35, %v9556_v18  ;;  %v4539_v52 = vmax.f32 %v4483_v0, %v4529_v45  ;;  %v4540_v29 = vmax.f32 %v4484_v63, %v4521_v10  ;;  %v4283_v39 = vmax.f32 %v9454_v37, %v9473_v50  ;;  %v9624_v10 = vld [vmem:[#allocation2 + $0x160] sm:$0xff] }
 0x307   : > { %v4285_v38 = vmax.f32 %v9466_v49, %v9498_v56  ;;  %v4633_v54 = vsel %vm2353_vm5, %v4617_v25, %v4625_v23  ;;  %v4424_v32 = vmax.f32 %v4376_v59, %v9585_v51  ;;  %v4425_v12 = vmax.f32 %v4377_v30, %v9587_v5 }
 0x308   : > { %v4426_v28 = vmax.f32 %v4378_v6, %v9589_v44  ;;  %v4595_v55 = vmax.f32 %v4539_v52, %v4585_v34  ;;  %v4596_v53 = vmax.f32 %v4540_v29, %v4577_v8  ;;  %v4284_v35 = vmax.f32 %v9464_v42, %v9496_v31 }
 0x309   : > { %v4331_v21 = vmax.f32 %v4283_v39, %v9545_v48  ;;  %v4442_v37 = vrot.slane %v4424_v32, 7  ;;  %v4498_v9 = vrot.slane %v4424_v32, 6  ;;  %v4554_v47 = vrot.slane %v4424_v32, 2 }
 0x30a   : > { %v4458_v20 = vrot.slane %v4426_v28, 7  ;;  %v4514_v49 = vrot.slane %v4426_v28, 6  ;;  %v4651_v58 = vmax.f32 %v4595_v55, %v4641_v7  ;;  %v4652_v4 = vmax.f32 %v4596_v53, %v4633_v54  ;;  %v9616_v7 = vld [vmem:[#allocation2 + $0x150] sm:$0xff] }
 0x30b   : > { %v4333_v40 = vmax.f32 %v4285_v38, %v9556_v18  ;;  %v4562_v2 = vrot.slane %v4425_v12, 2  ;;  %v4610_v24 = vrot.slane %v4424_v32, 1  ;;  %v4618_v57 = vrot.slane %v4425_v12, 1 }
 0x30c   : > { %v4474_v25 = vsel %vm1930_vm6, %v4458_v20, %v4442_v37  ;;  %5593 = vmatprep.mubr.msk.f32.mxu1 %vm1245_vm2, %v4651_v58  ;;  %v4450_v14 = vrot.slane %v4425_v12, 7  ;;  %v4506_v34 = vrot.slane %v4425_v12, 6  ;;  %v4332_v13 = vmax.f32 %v4284_v35, %v9547_v43 }
 0x30d   : > { %v4485_v42 = vmax.f32 %v4424_v32, %v4474_v25  ;;  %5594 = vmatmul.mubr.msk.f32.gmra.mrb[8].mxu1 %vm1245_vm2, %v4652_v4  ;;  %v4530_v26 = vsel %vm2071_vm7, %v4514_v49, %v4498_v9  ;;  %v4570_v17 = vrot.slane %v4426_v28, 2  ;;  %v4626_v41 = vrot.slane %v4426_v28, 1 }
 0x30e   : > { %v4466_v0 = vsel %vm1930_vm6, %v4442_v37, %v4450_v14  ;;  %v4379_v45 = vmax.f32 %v4331_v21, %v9585_v51  ;;  %v4380_v63 = vmax.f32 %v4332_v13, %v9587_v5  ;;  %v4586_v8 = vsel %vm2212_vm4, %v4554_v47, %v4562_v2 }
 0x30f   : > { %v4541_v23 = vmax.f32 %v4485_v42, %v4530_v26  ;;  %v4642_v59 = vsel %vm2353_vm5, %v4610_v24, %v4618_v57  ;;  %v4486_v30 = vmax.f32 %v4425_v12, %v4466_v0  ;;  %v4381_v6 = vmax.f32 %v4333_v40, %v9589_v44 }
 0x310   : > { %v4522_v29 = vsel %vm2071_vm7, %v4498_v9, %v4506_v34  ;;  %v4427_v39 = vmax.f32 %v4379_v45, %v9616_v7  ;;  %v4428_v38 = vmax.f32 %v4380_v63, %v9618_v61  ;;  %v4578_v32 = vsel %vm2212_vm4, %v4562_v2, %v4570_v17  ;;  %v9659_v63 = vld [vmem:[#allocation2 + $0x168] sm:$0xff] }
 0x311   : > { %v4597_v52 = vmax.f32 %v4541_v23, %v4586_v8  ;;  %v4542_v54 = vmax.f32 %v4486_v30, %v4522_v29  ;;  %v4634_v28 = vsel %vm2353_vm5, %v4618_v57, %v4626_v41  ;;  %v4429_v55 = vmax.f32 %v4381_v6, %v9624_v10  ;;  %v9666_v6 = vld [vmem:[#allocation2 + $0x170] sm:$0xff] }
 0x312   : > { %v4443_v53 = vrot.slane %v4427_v39, 7  ;;  %v4499_v35 = vrot.slane %v4427_v39, 6  ;;  %v4286_v21 = vmax.f32 %v9473_v50, %v9545_v48  ;;  %v4288_v49 = vmax.f32 %v9498_v56, %v9556_v18 }
 0x313   : > { %v4653_v12 = vmax.f32 %v4597_v52, %v4642_v59  ;;  %v4598_v37 = vmax.f32 %v4542_v54, %v4578_v32  ;;  %v4459_v20 = vrot.slane %v4429_v55, 7  ;;  %v4515_v9 = vrot.slane %v4429_v55, 6  ;;  %v9668_v52 = vld [vmem:[#allocation2 + $0x178] sm:$0xff] }
 0x314   : > { %v4555_v58 = vrot.slane %v4427_v39, 2  ;;  %v4563_v4 = vrot.slane %v4428_v38, 2  ;;  %v4451_v47 = vrot.slane %v4428_v38, 7  ;;  %v4507_v40 = vrot.slane %v4428_v38, 6 }
 0x315   : > { %5596 = vmatprep.mubr.msk.f32.mxu1 %vm1245_vm2, %v4653_v12  ;;  %v4654_v25 = vmax.f32 %v4598_v37, %v4634_v28  ;;  %v4475_v2 = vsel %vm1930_vm6, %v4459_v20, %v4443_v53  ;;  %v4611_v24 = vrot.slane %v4427_v39, 1  ;;  %v4619_v57 = vrot.slane %v4428_v38, 1 }
 0x316   : > { %v4487_v42 = vmax.f32 %v4427_v39, %v4475_v2  ;;  %v4531_v50 = vsel %vm2071_vm7, %v4515_v9, %v4499_v35  ;;  %v4467_v14 = vsel %vm1930_vm6, %v4443_v53, %v4451_v47  ;;  %v4287_v56 = vmax.f32 %v9496_v31, %v9547_v43 }
 0x317   : > { %5597 = vmatmul.mubr.msk.f32.gmra.mrb[10].mxu1 %vm1245_vm2, %v4654_v25  ;;  %v4488_v34 = vmax.f32 %v4428_v38, %v4467_v14  ;;  %v4571_v13 = vrot.slane %v4429_v55, 2  ;;  %v4627_v26 = vrot.slane %v4429_v55, 1  ;;  %v4334_v17 = vmax.f32 %v4286_v21, %v9585_v51 }
 0x318   : > { %v4543_v41 = vmax.f32 %v4487_v42, %v4531_v50  ;;  %v4523_v23 = vsel %vm2071_vm7, %v4499_v35, %v4507_v40  ;;  %v4335_v0 = vmax.f32 %v4287_v56, %v9587_v5  ;;  %v4336_v45 = vmax.f32 %v4288_v49, %v9589_v44 }
 0x319   : > { %v4587_v31 = vsel %vm2212_vm4, %v4555_v58, %v4563_v4  ;;  %v4643_v8 = vsel %vm2353_vm5, %v4611_v24, %v4619_v57  ;;  %v4544_v59 = vmax.f32 %v4488_v34, %v4523_v23  ;;  %v4382_v30 = vmax.f32 %v4334_v17, %v9616_v7  ;;  %v4409_v23 = vld [vmem:[#allocation2 + $0x180] sm:$0xff] }
 0x31a   : > { %v4599_v29 = vmax.f32 %v4543_v41, %v4587_v31  ;;  %v4579_v39 = vsel %vm2212_vm4, %v4563_v4, %v4571_v13  ;;  %v4383_v38 = vmax.f32 %v4335_v0, %v9618_v61  ;;  %v4384_v54 = vmax.f32 %v4336_v45, %v9624_v10  ;;  %v4410_v0 = vld [vmem:[#allocation2 + $0x188] sm:$0xff] }
 0x31b   : > { %v4600_v32 = vmax.f32 %v4544_v59, %v4579_v39  ;;  %v4635_v28 = vsel %vm2353_vm5, %v4619_v57, %v4627_v26  ;;  %v4430_v55 = vmax.f32 %v4382_v30, %v9659_v63  ;;  %v4289_v12 = vmax.f32 %v9545_v48, %v9585_v51  ;;  %v4411_v30 = vld [vmem:[#allocation2 + $0x190] sm:$0xff] }
 0x31c   : > { %v4655_v53 = vmax.f32 %v4599_v29, %v4643_v8  ;;  %v4431_v35 = vmax.f32 %v4383_v38, %v9666_v6  ;;  %v4432_v21 = vmax.f32 %v4384_v54, %v9668_v52  ;;  %v4290_v37 = vmax.f32 %v9547_v43, %v9587_v5 }
 0x31d   : > { %v4656_v20 = vmax.f32 %v4600_v32, %v4635_v28  ;;  %v4444_v9 = vrot.slane %v4430_v55, 7  ;;  %v4500_v49 = vrot.slane %v4430_v55, 6  ;;  %v4291_v58 = vmax.f32 %v9556_v18, %v9589_v44 }
 0x31e   : > { %5599 = vmatprep.mubr.msk.f32.mxu1 %vm1245_vm2, %v4655_v53  ;;  %v4460_v4 = vrot.slane %v4432_v21, 7  ;;  %v4516_v47 = vrot.slane %v4432_v21, 6  ;;  %v4556_v40 = vrot.slane %v4430_v55, 2  ;;  %v4564_v48 = vrot.slane %v4431_v35, 2 }
 0x31f   : > { %5600 = vmatmul.mubr.msk.f32.gmra.mrb[12].mxu1 %vm1245_vm2, %v4656_v20  ;;  %v4452_v25 = vrot.slane %v4431_v35, 7  ;;  %v4508_v2 = vrot.slane %v4431_v35, 6  ;;  %v4337_v24 = vmax.f32 %v4289_v12, %v9616_v7  ;;  %v4612_v57 = vrot.slane %v4430_v55, 1 }
 0x320   : > { %v4476_v43 = vsel %vm1930_vm6, %v4460_v4, %v4444_v9  ;;  %v4572_v42 = vrot.slane %v4432_v21, 2  ;;  %v4338_v50 = vmax.f32 %v4290_v37, %v9618_v61  ;;  %v4532_v14 = vsel %vm2071_vm7, %v4516_v47, %v4500_v49 }
 0x321   : > { %v4489_v18 = vmax.f32 %v4430_v55, %v4476_v43  ;;  %v4620_v56 = vrot.slane %v4431_v35, 1  ;;  %v4468_v34 = vsel %vm1930_vm6, %v4444_v9, %v4452_v25  ;;  %v4588_v13 = vsel %vm2212_vm4, %v4556_v40, %v4564_v48 }
 0x322   : > { %v4490_v26 = vmax.f32 %v4431_v35, %v4468_v34  ;;  %v4628_v17 = vrot.slane %v4432_v21, 1  ;;  %v4339_v41 = vmax.f32 %v4291_v58, %v9624_v10  ;;  %v4524_v31 = vsel %vm2071_vm7, %v4500_v49, %v4508_v2 }
 0x323   : > { %v4545_v45 = vmax.f32 %v4489_v18, %v4532_v14  ;;  %v4385_v8 = vmax.f32 %v4337_v24, %v9659_v63  ;;  %v4386_v59 = vmax.f32 %v4338_v50, %v9666_v6  ;;  %v4580_v39 = vsel %vm2212_vm4, %v4564_v48, %v4572_v42  ;;  %v4412_v42 = vld [vmem:[#allocation2 + $0x198] sm:$0xff]  ;;  %v4413_v14 = vld [vmem:[#allocation2 + $0x1a0] sm:$0xff] }
 0x324   : > { %v4546_v29 = vmax.f32 %v4490_v26, %v4524_v31  ;;  %v4387_v38 = vmax.f32 %v4339_v41, %v9668_v52  ;;  %v4292_v54 = vmax.f32 %v9585_v51, %v9616_v7  ;;  %v4294_v12 = vmax.f32 %v9589_v44, %v9624_v10 }
 0x325   : > { %v4601_v32 = vmax.f32 %v4545_v45, %v4588_v13  ;;  %v4433_v28 = vmax.f32 %v4385_v8, %v4409_v23  ;;  %v4434_v55 = vmax.f32 %v4386_v59, %v4410_v0  ;;  %v4644_v53 = vsel %vm2353_vm5, %v4612_v57, %v4620_v56 }
 0x326   : > { %v4602_v35 = vmax.f32 %v4546_v29, %v4580_v39  ;;  %v4636_v21 = vsel %vm2353_vm5, %v4620_v56, %v4628_v17  ;;  %v4435_v37 = vmax.f32 %v4387_v38, %v4411_v30  ;;  %v4293_v49 = vmax.f32 %v9587_v5, %v9618_v61  ;;  %v4414_v56 = vld [vmem:[#allocation2 + $0x1a8] sm:$0xff] }
 0x327   : > { %v4657_v20 = vmax.f32 %v4601_v32, %v4644_v53  ;;  %v4445_v9 = vrot.slane %v4433_v28, 7  ;;  %v4340_v51 = vmax.f32 %v4292_v54, %v9659_v63  ;;  %v4501_v4 = vrot.slane %v4433_v28, 6 }
 0x328   : > { %v4658_v7 = vmax.f32 %v4602_v35, %v4636_v21  ;;  %v4461_v58 = vrot.slane %v4435_v37, 7  ;;  %v4517_v47 = vrot.slane %v4435_v37, 6  ;;  %v4453_v44 = vrot.slane %v4434_v55, 7 }
 0x329   : > { %5602 = vmatprep.mubr.msk.f32.mxu1 %vm1245_vm2, %v4657_v20  ;;  %v4509_v10 = vrot.slane %v4434_v55, 6  ;;  %v4341_v40 = vmax.f32 %v4293_v49, %v9666_v6  ;;  %v4342_v48 = vmax.f32 %v4294_v12, %v9668_v52  ;;  %v4557_v5 = vrot.slane %v4433_v28, 2 }
 0x32a   : > { %5603 = vmatmul.mubr.msk.f32.gmra.mrb[14].mxu1 %vm1245_vm2, %v4658_v7  ;;  %v4477_v25 = vsel %vm1930_vm6, %v4461_v58, %v4445_v9  ;;  %v4565_v61 = vrot.slane %v4434_v55, 2  ;;  %v4613_v63 = vrot.slane %v4433_v28, 1  ;;  %v4621_v24 = vrot.slane %v4434_v55, 1 }
 0x32b   : > { %v4491_v2 = vmax.f32 %v4433_v28, %v4477_v25  ;;  %v4469_v43 = vsel %vm1930_vm6, %v4445_v9, %v4453_v44  ;;  %v4573_v57 = vrot.slane %v4435_v37, 2  ;;  %v4533_v6 = vsel %vm2071_vm7, %v4517_v47, %v4501_v4 }
 0x32c   : > { %v4492_v50 = vmax.f32 %v4434_v55, %v4469_v43  ;;  %v4629_v52 = vrot.slane %v4435_v37, 1  ;;  %v4388_v18 = vmax.f32 %v4340_v51, %v4409_v23  ;;  %v4525_v13 = vsel %vm2071_vm7, %v4501_v4, %v4509_v10 }
 0x32d   : > { %v4547_v34 = vmax.f32 %v4491_v2, %v4533_v6  ;;  %v4389_v26 = vmax.f32 %v4341_v40, %v4410_v0  ;;  %v4390_v17 = vmax.f32 %v4342_v48, %v4411_v30  ;;  %v4589_v41 = vsel %vm2212_vm4, %v4557_v5, %v4565_v61  ;;  %v9759_v6 = vld [vmem:[%s9902_s5] ss:$0 sm:$0xff] }
 0x32e   : > { %v4548_v45 = vmax.f32 %v4492_v50, %v4525_v13  ;;  %v4436_v31 = vmax.f32 %v4388_v18, %v4412_v42  ;;  %v4581_v59 = vsel %vm2212_vm4, %v4565_v61, %v4573_v57  ;;  %v4645_v23 = vsel %vm2353_vm5, %v4613_v63, %v4621_v24  ;;  %v9765_v18 = vld [vmem:[%s9903_s6] ss:$0 sm:$0xff] }
 0x32f   : > { %v4603_v8 = vmax.f32 %v4547_v34, %v4589_v41  ;;  %v4437_v29 = vmax.f32 %v4389_v26, %v4413_v14  ;;  %v4438_v39 = vmax.f32 %v4390_v17, %v4414_v56  ;;  %v4637_v54 = vsel %vm2353_vm5, %v4621_v24, %v4629_v52 }
 0x330   : > { %v4604_v38 = vmax.f32 %v4548_v45, %v4581_v59  ;;  %v4446_v0 = vrot.slane %v4436_v31, 7  ;;  %v4502_v28 = vrot.slane %v4436_v31, 6  ;;  %v4558_v21 = vrot.slane %v4436_v31, 2 }
 0x331   : > { %v4659_v30 = vmax.f32 %v4603_v8, %v4645_v23  ;;  %v4462_v32 = vrot.slane %v4438_v39, 7  ;;  %v4518_v55 = vrot.slane %v4438_v39, 6  ;;  %v4454_v53 = vrot.slane %v4437_v29, 7 }
 0x332   : > { %v4660_v12 = vmax.f32 %v4604_v38, %v4637_v54  ;;  %v4566_v37 = vrot.slane %v4437_v29, 2  ;;  %v4510_v20 = vrot.slane %v4437_v29, 6  ;;  %v4574_v51 = vrot.slane %v4438_v39, 2 }
 0x333   : > { %5605 = vmatprep.mubr.msk.f32.mxu1 %vm1245_vm2, %v4659_v30  ;;  %v4478_v35 = vsel %vm1930_vm6, %v4462_v32, %v4446_v0  ;;  %v4470_v49 = vsel %vm1930_vm6, %v4446_v0, %v4454_v53  ;;  %v4534_v7 = vsel %vm2071_vm7, %v4518_v55, %v4502_v28  ;;  %v4614_v58 = vrot.slane %v4436_v31, 1 }
 0x334   : > { %5606 = vmatmul.mubr.msk.f32.gmra.mrb[0].mxu1 %vm1245_vm2, %v4660_v12  ;;  %v4493_v9 = vmax.f32 %v4436_v31, %v4478_v35  ;;  %v4622_v4 = vrot.slane %v4437_v29, 1  ;;  %v4494_v47 = vmax.f32 %v4437_v29, %v4470_v49  ;;  %v4526_v10 = vsel %vm2071_vm7, %v4502_v28, %v4510_v20 }
 0x335   : > { %v4630_v40 = vrot.slane %v4438_v39, 1  ;;  %v4590_v48 = vsel %vm2212_vm4, %v4558_v21, %v4566_v37  ;;  %v4582_v61 = vsel %vm2212_vm4, %v4566_v37, %v4574_v51 }
 0x336   : > { %v4549_v44 = vmax.f32 %v4493_v9, %v4534_v7  ;;  %v4550_v25 = vmax.f32 %v4494_v47, %v4526_v10  ;;  %v4646_v63 = vsel %vm2353_vm5, %v4614_v58, %v4622_v4 }
 0x337   : > { %v4638_v43 = vsel %vm2353_vm5, %v4622_v4, %v4630_v40 }
 0x338   : > { %v4605_v5 = vmax.f32 %v4549_v44, %v4590_v48  ;;  %v4606_v2 = vmax.f32 %v4550_v25, %v4582_v61 }
 0x33a   : > { %v4661_v24 = vmax.f32 %v4605_v5, %v4646_v63  ;;  %v4662_v57 = vmax.f32 %v4606_v2, %v4638_v43 }
 0x33c   : > { %5608 = vmatprep.mubr.msk.f32.mxu1 %vm1245_vm2, %v4661_v24 }
 0x33d   : > { %5609 = vmatmul.mubr.msk.f32.gmra.mrb[2].mxu1 %vm1245_vm2, %v4662_v57  ;;  %vm10245_vm2 = vcmask 31744  }
 0x33e   : > { %vm10246_vm15 = vmmov %vm10245_vm2 }
 0x33f   : > { %vm10247_vm4 = vmmov %vm10245_vm2 }
 0x340   : > { %vm10248_vm5 = vmmov %vm10245_vm2 }
 0x341   : > { %vm10249_vm6 = vmmov %vm10245_vm2 }
 0x342   : > { %vm10250_vm7 = vmmov %vm10245_vm2 }
 0x343   : > { %vm10251_vm3 = vmmov %vm10245_vm2 }
 0x344   : > { %vm10252_vm8 = vmmov %vm10245_vm2 }
 0x345   : > { %vm10253_vm9 = vmmov %vm10245_vm2 }
 0x346   : > { %vm10254_vm10 = vmmov %vm10245_vm2 }
 0x347   : > { %vm10255_vm13 = vmmov %vm10245_vm2 }
 0x348   : > { %vm10256_vm11 = vmmov %vm10245_vm2 }
 0x349   : > { %vm10257_vm12 = vmmov %vm10245_vm2 }
 0x34a   : > { %vm10258_vm14 = vmmov %vm10245_vm2 }
 0x34b   : > { %vm10259_vm0 = vmmov %vm10245_vm2 }
 0x34c   : > { %vm10260_vm1 = vmmov %vm10259_vm0 }
 0x3cd   : > { %v5589_v42 = vpop.f32.mrb[4].mxu1 }
 0x3ce   : > { %v5613_v50 = vadd.f32 %v5589_v42, %v9181_v11  ;;  %v4782_v52 = vpop.f32.mrb[5].mxu1 }
 0x3cf   : > { %v5614_v16 = vadd.f32 %v4782_v52, %v9186_v36 }
 0x3d0   : > { %v4885_v14 = vmul.f32 %v5613_v50, %v9759_v6 }
 0x3d1   : > { %v4884_v56 = vmul.f32 %v5614_v16, %v9759_v6 }
 0x3d2   : > { %v4908_v34 = vadd.f32 %v9765_v18, %v4885_v14 }
 0x3d3   : > { %v4907_v13 = vadd.f32 %v9765_v18, %v4884_v56 }
 0x3d4   : > { %v5319_v26 = vmul.f32 -1.442695, %v4908_v34 }
 0x3d5   : > { %v5318_v17 = vmul.f32 -1.442695, %v4907_v13 }
 0x3d6   : > { %v5592_v11 = vpop.f32.mrb[6].mxu1  ;;  %5864 = vpow2.f32 %v5319_v26 }
 0x3d7   : > { %v5615_v41 = vadd.f32 %v5592_v11, %v9238_v3  ;;  %v4792_v45 = vpop.f32.mrb[7].mxu1  ;;  %5866 = vpow2.f32 %v5318_v17 }
 0x3d8   : > { %v5616_v36 = vadd.f32 %v4792_v45, %v9244_v62 }
 0x3d9   : > { %v4887_v31 = vmul.f32 %v5615_v41, %v9759_v6 }
 0x3da   : > { %v4886_v8 = vmul.f32 %v5616_v36, %v9759_v6 }
 0x3db   : > { %v9777_v59 = vadd.f32 %v9765_v18, %v4887_v31 }
 0x3dc   : > { %v9780_v29 = vadd.f32 %v9765_v18, %v4886_v8 }
 0x3dd   : > { %v5321_v39 = vmul.f32 -1.442695, %v9777_v59 }
 0x3de   : > { %v5320_v3 = vmul.f32 -1.442695, %v9780_v29 }
 0x3df   : > { %5868 = vpow2.f32 %v5321_v39 }
 0x3e0   : > { %5870 = vpow2.f32 %v5320_v3  ;;  %v5865_v23 = vpop.eup %5864  ;;  %v5595_v62 = vpop.f32.mrb[8].mxu1 }
 0x3e1   : > { %v5867_v38 = vpop.eup %5866  ;;  %v4972_v54 = vadd.f32 1.0, %v5865_v23  ;;  %v5617_v0 = vadd.f32 %v5595_v62, %v9326_v60  ;;  %v4802_v30 = vpop.f32.mrb[9].mxu1 }
 0x3e2   : > { %v4971_v32 = vadd.f32 1.0, %v5867_v38  ;;  %v5618_v28 = vadd.f32 %v4802_v30, %v9332_v27 }
 0x3e3   : > { %5872 = vrcp.f32 %v4972_v54  ;;  %v4889_v55 = vmul.f32 %v5617_v0, %v9759_v6 }
 0x3e4   : > { %5874 = vrcp.f32 %v4971_v32  ;;  %v4888_v12 = vmul.f32 %v5618_v28, %v9759_v6 }
 0x3e5   : > { %v9792_v53 = vadd.f32 %v9765_v18, %v4889_v55 }
 0x3e6   : > { %v9795_v35 = vadd.f32 %v9765_v18, %v4888_v12 }
 0x3e7   : > { %v5323_v60 = vmul.f32 -1.442695, %v9792_v53 }
 0x3e8   : > { %v5322_v27 = vmul.f32 -1.442695, %v9795_v35 }
 0x3e9   : > { %v5869_v21 = vpop.eup %5868  ;;  %5876 = vpow2.f32 %v5323_v60 }
 0x3ea   : > { %v5871_v37 = vpop.eup %5870  ;;  %v4974_v20 = vadd.f32 1.0, %v5869_v21  ;;  %5878 = vpow2.f32 %v5322_v27  ;;  %v5598_v49 = vpop.f32.mrb[10].mxu1 }
 0x3eb   : > { %v4973_v9 = vadd.f32 1.0, %v5871_v37  ;;  %v5619_v51 = vadd.f32 %v5598_v49, %v9375_v19  ;;  %v4812_v7 = vpop.f32.mrb[11].mxu1 }
 0x3ec   : > { %5880 = vrcp.f32 %v4974_v20  ;;  %v5620_v58 = vadd.f32 %v4812_v7, %v9381_v15 }
 0x3ed   : > { %5882 = vrcp.f32 %v4973_v9  ;;  %v5873_v4 = vpop.eup %5872  ;;  %v4891_v47 = vmul.f32 %v5619_v51, %v9759_v6 }
 0x3ee   : > { %v5875_v44 = vpop.eup %5874  ;;  %v5020_v10 = vmul.f32 %v5873_v4, %v4908_v34  ;;  %v4890_v40 = vmul.f32 %v5620_v58, %v9759_v6 }
 0x3ef   : > { %v5019_v48 = vmul.f32 %v5875_v44, %v4907_v13  ;;  %v9809_v19 = vadd.f32 %v9765_v18, %v4891_v47 }
 0x3f0   : > { %5036 = vst.msk [vmem:[%s9804_s13 + $0x8] sm:$0xff] %vm10245_vm2, %v5020_v10  ;;  %v9814_v15 = vadd.f32 %v9765_v18, %v4890_v40 }
 0x3f1   : > { %5035 = vst.msk [vmem:[%s9804_s13] sm:$0xff] %vm10246_vm15, %v5019_v48  ;;  %v5325_v25 = vmul.f32 -1.442695, %v9809_v19 }
 0x3f2   : > { %v5324_v5 = vmul.f32 -1.442695, %v9814_v15  ;;  %v5601_v61 = vpop.f32.mrb[12].mxu1 }
 0x3f3   : > { %v5877_v63 = vpop.eup %5876  ;;  %5884 = vpow2.f32 %v5325_v25  ;;  %v5621_v2 = vadd.f32 %v5601_v61, %v9433_v46  ;;  %v4822_v24 = vpop.f32.mrb[13].mxu1 }
 0x3f4   : > { %v5879_v43 = vpop.eup %5878  ;;  %v4976_v57 = vadd.f32 1.0, %v5877_v63  ;;  %5886 = vpow2.f32 %v5324_v5  ;;  %v5622_v42 = vadd.f32 %v4822_v24, %v9448_v22 }
 0x3f5   : > { %v4975_v52 = vadd.f32 1.0, %v5879_v43  ;;  %v4893_v16 = vmul.f32 %v5621_v2, %v9759_v6 }
 0x3f6   : > { %v5881_v50 = vpop.eup %5880  ;;  %5888 = vrcp.f32 %v4976_v57  ;;  %v4892_v34 = vmul.f32 %v5622_v42, %v9759_v6 }
 0x3f7   : > { %v5883_v14 = vpop.eup %5882  ;;  %v5022_v56 = vmul.f32 %v5881_v50, %v9777_v59  ;;  %5890 = vrcp.f32 %v4975_v52  ;;  %v9827_v13 = vadd.f32 %v9765_v18, %v4893_v16 }
 0x3f8   : > { %v5021_v46 = vmul.f32 %v5883_v14, %v9780_v29  ;;  %v9832_v22 = vadd.f32 %v9765_v18, %v4892_v34 }
 0x3f9   : > { %5038 = vst.msk [vmem:[%s9804_s13 + $0x18] sm:$0xff] %vm10247_vm4, %v5022_v56  ;;  %v5327_v26 = vmul.f32 -1.442695, %v9827_v13 }
 0x3fa   : > { %5037 = vst.msk [vmem:[%s9804_s13 + $0x10] sm:$0xff] %vm10248_vm5, %v5021_v46  ;;  %v5326_v17 = vmul.f32 -1.442695, %v9832_v22 }
 0x3fb   : > { %5892 = vpow2.f32 %v5327_v26 }
 0x3fc   : > { %5894 = vpow2.f32 %v5326_v17 }
 0x3fd   : > { %v5885_v11 = vpop.eup %5884  ;;  %v5604_v41 = vpop.f32.mrb[14].mxu1 }
 0x3fe   : > { %v5887_v45 = vpop.eup %5886  ;;  %v4978_v36 = vadd.f32 1.0, %v5885_v11  ;;  %v5623_v31 = vadd.f32 %v5604_v41, %v9511_v33  ;;  %v4832_v8 = vpop.f32.mrb[15].mxu1 }
 0x3ff   : > { %v4977_v59 = vadd.f32 1.0, %v5887_v45  ;;  %v5624_v29 = vadd.f32 %v4832_v8, %v9517_v1 }
 0x400   : > { %v5889_v39 = vpop.eup %5888  ;;  %5896 = vrcp.f32 %v4978_v36  ;;  %v4895_v3 = vmul.f32 %v5623_v31, %v9759_v6 }
 0x401   : > { %v5891_v23 = vpop.eup %5890  ;;  %v5024_v62 = vmul.f32 %v5889_v39, %v9792_v53  ;;  %5898 = vrcp.f32 %v4977_v59  ;;  %v4894_v38 = vmul.f32 %v5624_v29, %v9759_v6 }
 0x402   : > { %v5023_v54 = vmul.f32 %v5891_v23, %v9795_v35  ;;  %v4918_v0 = vadd.f32 %v9765_v18, %v4895_v3 }
 0x403   : > { %5040 = vst.msk [vmem:[%s9804_s13 + $0x28] sm:$0xff] %vm10249_vm6, %v5024_v62  ;;  %v4917_v33 = vadd.f32 %v9765_v18, %v4894_v38 }
 0x404   : > { %5039 = vst.msk [vmem:[%s9804_s13 + $0x20] sm:$0xff] %vm10250_vm7, %v5023_v54  ;;  %v5329_v1 = vmul.f32 -1.442695, %v4918_v0 }
 0x405   : > { %v5893_v30 = vpop.eup %5892  ;;  %v5328_v32 = vmul.f32 -1.442695, %v4917_v33 }
 0x406   : > { %v5895_v28 = vpop.eup %5894  ;;  %v4980_v55 = vadd.f32 1.0, %v5893_v30  ;;  %5900 = vpow2.f32 %v5329_v1 }
 0x407   : > { %v4979_v12 = vadd.f32 1.0, %v5895_v28  ;;  %5902 = vpow2.f32 %v5328_v32  ;;  %v5607_v53 = vpop.f32.mrb[0].mxu1 }
 0x408   : > { %5904 = vrcp.f32 %v4980_v55  ;;  %v4897_v35 = vmul.f32 %v5607_v53, %v9759_v6  ;;  %v4842_v60 = vpop.f32.mrb[1].mxu1 }
 0x409   : > { %5906 = vrcp.f32 %v4979_v12  ;;  %v4896_v21 = vmul.f32 %v9759_v6, %v4842_v60 }
 0x40a   : > { %v5897_v27 = vpop.eup %5896  ;;  %v4920_v37 = vadd.f32 %v9765_v18, %v4897_v35 }
 0x40b   : > { %v5899_v20 = vpop.eup %5898  ;;  %v5026_v9 = vmul.f32 %v5897_v27, %v9809_v19  ;;  %v4919_v49 = vadd.f32 %v9765_v18, %v4896_v21 }
 0x40c   : > { %v5025_v51 = vmul.f32 %v5899_v20, %v9814_v15  ;;  %v5331_v7 = vmul.f32 -1.442695, %v4920_v37 }
 0x40d   : > { %5042 = vst.msk [vmem:[%s9804_s13 + $0x38] sm:$0xff] %vm10251_vm3, %v5026_v9  ;;  %v5330_v58 = vmul.f32 -1.442695, %v4919_v49 }
 0x40e   : > { %5041 = vst.msk [vmem:[%s9804_s13 + $0x30] sm:$0xff] %vm10252_vm8, %v5025_v51  ;;  %5908 = vpow2.f32 %v5331_v7 }
 0x40f   : > { %5910 = vpow2.f32 %v5330_v58 }
 0x410   : > { %v5901_v4 = vpop.eup %5900  ;;  %v5610_v47 = vpop.f32.mrb[2].mxu1 }
 0x411   : > { %v5903_v44 = vpop.eup %5902  ;;  %v4982_v10 = vadd.f32 1.0, %v5901_v4  ;;  %v4899_v40 = vmul.f32 %v5610_v47, %v9759_v6  ;;  %v4852_v48 = vpop.f32.mrb[3].mxu1 }
 0x412   : > { %v5905_v19 = vpop.eup %5904  ;;  %v4981_v25 = vadd.f32 1.0, %v5903_v44  ;;  %v4898_v15 = vmul.f32 %v9759_v6, %v4852_v48 }
 0x413   : > { %v5907_v5 = vpop.eup %5906  ;;  %v5028_v61 = vmul.f32 %v5905_v19, %v9827_v13  ;;  %5912 = vrcp.f32 %v4982_v10  ;;  %v4922_v63 = vadd.f32 %v9765_v18, %v4899_v40 }
 0x414   : > { %v5027_v2 = vmul.f32 %v5907_v5, %v9832_v22  ;;  %5914 = vrcp.f32 %v4981_v25  ;;  %v4921_v24 = vadd.f32 %v9765_v18, %v4898_v15 }
 0x415   : > { %5044 = vst.msk [vmem:[%s9804_s13 + $0x48] sm:$0xff] %vm10253_vm9, %v5028_v61  ;;  %v5333_v43 = vmul.f32 -1.442695, %v4922_v63 }
 0x416   : > { %5043 = vst.msk [vmem:[%s9804_s13 + $0x40] sm:$0xff] %vm10254_vm10, %v5027_v2  ;;  %v5332_v57 = vmul.f32 -1.442695, %v4921_v24 }
 0x417   : > { %5916 = vpow2.f32 %v5333_v43 }
 0x418   : > { %v5909_v6 = vpop.eup %5908  ;;  %5918 = vpow2.f32 %v5332_v57 }
 0x419   : > { %v5911_v42 = vpop.eup %5910  ;;  %v4984_v50 = vadd.f32 1.0, %v5909_v6 }
 0x41a   : > { %v4983_v52 = vadd.f32 1.0, %v5911_v42 }
 0x41b   : > { %5920 = vrcp.f32 %v4984_v50 }
 0x41c   : > { %5922 = vrcp.f32 %v4983_v52 }
 0x41d   : > { %v5913_v16 = vpop.eup %5912 }
 0x41e   : > { %v5915_v14 = vpop.eup %5914  ;;  %v5030_v18 = vmul.f32 %v5913_v16, %v4918_v0 }
 0x41f   : > { %v5029_v56 = vmul.f32 %v5915_v14, %v4917_v33 }
 0x420   : > { %5046 = vst.msk [vmem:[%s9804_s13 + $0x58] sm:$0xff] %vm10255_vm13, %v5030_v18 }
 0x421   : > { %v5917_v34 = vpop.eup %5916  ;;  %5045 = vst.msk [vmem:[%s9804_s13 + $0x50] sm:$0xff] %vm10256_vm11, %v5029_v56 }
 0x422   : > { %v5919_v46 = vpop.eup %5918  ;;  %v4986_v13 = vadd.f32 1.0, %v5917_v34 }
 0x423   : > { %v4985_v22 = vadd.f32 1.0, %v5919_v46 }
 0x424   : > { %5924 = vrcp.f32 %v4986_v13 }
 0x425   : > { %v5921_v26 = vpop.eup %5920  ;;  %5926 = vrcp.f32 %v4985_v22 }
 0x426   : > { %v5923_v17 = vpop.eup %5922  ;;  %v5032_v11 = vmul.f32 %v5921_v26, %v4920_v37 }
 0x427   : > { %v5031_v41 = vmul.f32 %v5923_v17, %v4919_v49 }
 0x428   : > { %5048 = vst.msk [vmem:[%s9804_s13 + $0x68] sm:$0xff] %vm10257_vm12, %v5032_v11 }
 0x429   : > { %5047 = vst.msk [vmem:[%s9804_s13 + $0x60] sm:$0xff] %vm10258_vm14, %v5031_v41 }
 0x42e   : > { %v5925_v45 = vpop.eup %5924 }
 0x42f   : > { %v5927_v36 = vpop.eup %5926  ;;  %v5034_v31 = vmul.f32 %v5925_v45, %v4922_v63 }
 0x430   : > { %v5033_v8 = vmul.f32 %v5927_v36, %v4921_v24 }
 0x431   : > { %5050 = vst.msk [vmem:[%s9804_s13 + $0x78] sm:$0xff] %vm10259_vm0, %v5034_v31 }
 0x432   : > { %5049 = vst.msk [vmem:[%s9804_s13 + $0x70] sm:$0xff] %vm10260_vm1, %v5033_v8 }
 0x433 PF: > { %s17_s28 = sadd.s32 1, %s5971_s28   ;;  %s10261_s24 = smov %s5963_s26 }
 0x434   : > { %p14_p8 = scmp.ge.s32.totalorder %s17_s28, 6   ;;  %s10262_s25 = smov %s5967_s27 }
 0x435   : > { %s10263_s26 = smov %s10266_s29  ;;  %s10264_s27 = smov %s10270_s30 }
 0x436   :  { %16 = sbr.rel (!%p14_p8) target bundleno = 3 (0x3), region = 86 }

</bundles_post_ra>
